<compile_context>
chip_gen: v7x
topology: tpu7x:2x2x1
jax: 0.10.0
libtpu: 0.0.40
codegen_flags: <defaults>
</compile_context>

<pallas_src>
import jax
import jax.numpy as jnp
from jax.experimental import pallas as pl
from jax.experimental.pallas import tpu as pltpu


# ---------------------------------------------------------------------------
# Fused kernel factory (all tiling parameters are static Python values).
# Grid: (B // Bt, n_point_tiles).  The pooled max lives in a (Bt, 1024) VMEM
# scratch accumulated across the point-tile axis; the classifier runs on the
# last point tile and writes the (Bt, c_pad) logits block.
# ---------------------------------------------------------------------------
def _make_fused_kernel(*, Bt, nt, rc, n_points, needs_mask):
    R = Bt * nt  # rows per grid step

    def kernel(pts_ref, w1_ref, b1_ref, w2_ref, b2_ref, w3_ref, b3_ref,
               w4_ref, b4_ref, w5_ref, b5_ref, w6_ref, b6_ref,
               out_ref, pooled_ref):
        pt = pl.program_id(1)

        x = pts_ref[...].reshape(R, 3)                     # (R, 3) f32

        # ----- layer 1 (3 -> 64): K=3 would waste the MXU -> 3 VPU FMAs -----
        w1 = w1_ref[...]                                   # (3, 64) f32
        h = (x[:, 0:1] * w1[0:1, :]
             + x[:, 1:2] * w1[1:2, :]
             + x[:, 2:3] * w1[2:3, :]) + b1_ref[...]
        h = jnp.maximum(h, 0.0)

        # ----- layer 2 (64 -> 128): MXU, bf16 operands, f32 accumulation ----
        h = jnp.dot(h.astype(jnp.bfloat16), w2_ref[...],
                    preferred_element_type=jnp.float32) + b2_ref[...]
        h = jnp.maximum(h, 0.0).astype(jnp.bfloat16)       # (R, 128) bf16

        w3 = w3_ref[...]                                   # (128, 1024) bf16
        b3 = b3_ref[...]                                   # (1, 1024) f32

        if Bt == 1:
            # ----- layer 3 chunked, max fused into each chunk epilogue ------
            tile_max = None
            for ci in range(nt // rc):
                r0 = ci * rc
                z = jnp.dot(h[r0:r0 + rc, :], w3,
                            preferred_element_type=jnp.float32) + b3
                if needs_mask:
                    rows = (pt * nt + r0
                            + jax.lax.broadcasted_iota(jnp.int32, (rc, 1), 0))
                    z = jnp.where(rows < n_points, z, -jnp.inf)
                cm = jnp.max(z, axis=0, keepdims=True)     # (1, 1024)
                tile_max = cm if tile_max is None else jnp.maximum(tile_max, cm)

            @pl.when(pt == 0)
            def _init():
                pooled_ref[...] = tile_max                 # direct write, no -inf fill

            @pl.when(pt > 0)
            def _acc():
                pooled_ref[...] = jnp.maximum(pooled_ref[...], tile_max)
        else:
            # Bt > 1: small-N batch-packing path (single point tile, nt == N).
            z = jnp.dot(h, w3, preferred_element_type=jnp.float32) + b3  # (R, 1024)
            for b in range(Bt):
                zb = z[b * nt:(b + 1) * nt, :]
                pooled_ref[b:b + 1, :] = jnp.max(zb, axis=0, keepdims=True)

        # ----- classifier (1024 -> 512 -> 256 -> c_pad), fused, last tile ---
        @pl.when(pt == pl.num_programs(1) - 1)
        def _cls():
            g = pooled_ref[...].astype(jnp.bfloat16)       # (Bt, 1024)
            z = jnp.dot(g, w4_ref[...],
                        preferred_element_type=jnp.float32) + b4_ref[...]
            z = jnp.maximum(z, 0.0)
            z = jnp.dot(z.astype(jnp.bfloat16), w5_ref[...],
                        preferred_element_type=jnp.float32) + b5_ref[...]
            z = jnp.maximum(z, 0.0)                        # Dropout == identity (eval)
            out_ref[...] = jnp.dot(z.astype(jnp.bfloat16), w6_ref[...],
                                   preferred_element_type=jnp.float32) + b6_ref[...]

    return kernel


# ---------------------------------------------------------------------------
# Glue: BN folding, weight prep, tiling selection, pallas_call wrapper.
# ---------------------------------------------------------------------------
def fold_bn(w_io, b, gamma, beta, mean, var, eps=1e-5):
    """Fold eval-mode BatchNorm into an (in, out) weight and (out,) bias."""
    scale = gamma / jnp.sqrt(var + eps)
    return w_io * scale[None, :], (b - mean) * scale + beta


def _prep(w_oi, b, bn=None, dtype=jnp.float32):
    """(out,in) PyTorch weight -> (in,out) layout, BN folded, optional cast."""
    w_io = jnp.transpose(w_oi).astype(jnp.float32)
    b = b.astype(jnp.float32)
    if bn is not None:
        w_io, b = fold_bn(w_io, b, *bn)
    return w_io.astype(dtype), b.reshape(1, -1).astype(jnp.float32)


def cls_model_forward(points, params, point_tile=2048, row_cap=1024):
    B, N, C_in = points.shape
    assert C_in == 3
    num_classes = params["fc3_w"].shape[0]
    hidden = params["conv3_w"].shape[0]                    # 1024

    # Weights: (in, out) layout, BN folded; MXU weights in bf16, biases f32.
    w1, b1 = _prep(params["conv1_w"], params["conv1_b"], params["bn1"], jnp.float32)
    w2, b2 = _prep(params["conv2_w"], params["conv2_b"], params["bn2"], jnp.bfloat16)
    w3, b3 = _prep(params["conv3_w"], params["conv3_b"], params["bn3"], jnp.bfloat16)
    w4, b4 = _prep(params["fc1_w"], params["fc1_b"], params["bn4"], jnp.bfloat16)
    w5, b5 = _prep(params["fc2_w"], params["fc2_b"], params["bn5"], jnp.bfloat16)
    w6, b6 = _prep(params["fc3_w"], params["fc3_b"], None, jnp.bfloat16)

    # Lane-dense logits: pad class dim to a multiple of 128.
    c_pad = max(128, -(-num_classes // 128) * 128)
    w6 = jnp.pad(w6, ((0, 0), (0, c_pad - num_classes)))
    b6 = jnp.pad(b6, ((0, 0), (0, c_pad - num_classes)))

    # ---- tiling regime: batch packing (small N) vs point tiling (large N) --
    Bt = 1
    if B > 1 and N % 8 == 0 and N <= row_cap:
        for d in range(B, 1, -1):
            # Bt must divide B and give lane/sublane-clean blocks (== B or %8).
            if B % d == 0 and d * N <= row_cap and (d == B or d % 8 == 0):
                Bt = d
                break
    nt = N if Bt > 1 else min(N, point_tile)
    n_tiles = -(-N // nt)
    needs_mask = (N % nt) != 0                             # only when Bt == 1

    rc = nt
    if Bt == 1:
        for cand in (512, 256, 128, 64):
            if nt % cand == 0:
                rc = cand
                break

    kernel = _make_fused_kernel(Bt=Bt, nt=nt, rc=rc, n_points=N,
                                needs_mask=needs_mask)

    weights = [w1, b1, w2, b2, w3, b3, w4, b4, w5, b5, w6, b6]

    def const_spec(arr):
        nd = arr.ndim
        return pl.BlockSpec(arr.shape, lambda bt, pt, _nd=nd: (0,) * _nd)

    flops = int(2 * B * N * (3 * 64 + 64 * 128 + 128 * hidden)
                + 2 * B * (hidden * 512 + 512 * 256 + 256 * c_pad))
    bytes_accessed = int(points.size * 4
                         + sum(int(w.size) * w.dtype.itemsize for w in weights)
                         + B * c_pad * 4)
    cost = pl.CostEstimate(flops=flops, transcendentals=0,
                           bytes_accessed=bytes_accessed)

    pts = points.astype(jnp.float32)                       # no host-side N padding

    logits_padded = pl.pallas_call(
        kernel,
        out_shape=jax.ShapeDtypeStruct((B, c_pad), jnp.float32),
        grid=(B // Bt, n_tiles),
        in_specs=[pl.BlockSpec((Bt, nt, C_in), lambda bt, pt: (bt, pt, 0))]
                 + [const_spec(w) for w in weights],
        out_specs=pl.BlockSpec((Bt, c_pad), lambda bt, pt: (bt, 0)),
        scratch_shapes=[pltpu.VMEM((Bt, hidden), jnp.float32)],
        compiler_params=pltpu.CompilerParams(
            dimension_semantics=("parallel", "arbitrary")),
        cost_estimate=cost,
    )(pts, *weights)

    return logits_padded[:, :num_classes]


# ---------------------------------------------------------------------------
# Pure-JAX reference (explicit eval-mode BN, f32) for correctness checking.
# ---------------------------------------------------------------------------
def reference_forward(points, params, eps=1e-5):
    def bn(x, stats):
        gamma, beta, mean, var = stats
        return (x - mean) / jnp.sqrt(var + eps) * gamma + beta

    x = points                                             # (B, N, 3)
    x = jnp.einsum("bnc,oc->bno", x, params["conv1_w"]) + params["conv1_b"]
    x = jnp.maximum(bn(x, params["bn1"]), 0.0)
    x = jnp.einsum("bnc,oc->bno", x, params["conv2_w"]) + params["conv2_b"]
    x = jnp.maximum(bn(x, params["bn2"]), 0.0)
    x = jnp.einsum("bnc,oc->bno", x, params["conv3_w"]) + params["conv3_b"]
    x = bn(x, params["bn3"])
    x = jnp.max(x, axis=1)                                 # (B, 1024)
    x = x @ params["fc1_w"].T + params["fc1_b"]
    x = jnp.maximum(bn(x, params["bn4"]), 0.0)
    x = x @ params["fc2_w"].T + params["fc2_b"]
    x = jnp.maximum(bn(x, params["bn5"]), 0.0)             # dropout == identity (eval)
    return x @ params["fc3_w"].T + params["fc3_b"]


# ---------------------------------------------------------------------------
# Deterministic parameter construction (synthetic, PyTorch-default-like init).
# ---------------------------------------------------------------------------
def make_params(key, num_classes=3):
    dims = {
        "conv1": (64, 3), "conv2": (128, 64), "conv3": (1024, 128),
        "fc1": (512, 1024), "fc2": (256, 512), "fc3": (num_classes, 256),
    }
    params = {}
    keys = jax.random.split(key, 2 * len(dims))
    for i, (name, (out_c, in_c)) in enumerate(dims.items()):
        bound = 1.0 / jnp.sqrt(in_c)
        params[f"{name}_w"] = jax.random.uniform(
            keys[2 * i], (out_c, in_c), jnp.float32, -bound, bound)
        params[f"{name}_b"] = jax.random.uniform(
            keys[2 * i + 1], (out_c,), jnp.float32, -bound, bound)
    # BatchNorm: default gamma=1, beta=0, running_mean=0, running_var=1
    for name, c in (("bn1", 64), ("bn2", 128), ("bn3", 1024),
                    ("bn4", 512), ("bn5", 256)):
        params[name] = (jnp.ones((c,), jnp.float32),
                        jnp.zeros((c,), jnp.float32),
                        jnp.zeros((c,), jnp.float32),
                        jnp.ones((c,), jnp.float32))
    return params


if __name__ == "__main__":
    key = jax.random.PRNGKey(0)
    kp, kx = jax.random.split(key)

    B, N, num_classes = 2, 64, 3
    params = make_params(kp, num_classes)
    points = jax.random.normal(kx, (B, N, 3), jnp.float32)

    out = cls_model_forward(points, params)
    jax.block_until_ready(out)

    ref = reference_forward(points, params)
    assert out.shape == (B, num_classes)
    max_err = jnp.max(jnp.abs(out - ref))
    # bf16 matmuls with f32 accumulation -> loosened tolerance vs f32 reference.
    assert jnp.allclose(out, ref, atol=1e-2, rtol=2e-2), \
        f"mismatch vs reference (max abs err {max_err})"

    print("KERNEL_OK")
</pallas_src>

<mosaic_0001>
module attributes {stable_mosaic.version = 11 : i64} {
  func.func @kernel(%arg0: i32, %arg1: i32, %arg2: memref<2x64x3xf32, #tpu.memory_space<vmem>>, %arg3: memref<3x64xf32, #tpu.memory_space<vmem>>, %arg4: memref<1x64xf32, #tpu.memory_space<vmem>>, %arg5: memref<64x128xbf16, #tpu.memory_space<vmem>>, %arg6: memref<1x128xf32, #tpu.memory_space<vmem>>, %arg7: memref<128x1024xbf16, #tpu.memory_space<vmem>>, %arg8: memref<1x1024xf32, #tpu.memory_space<vmem>>, %arg9: memref<1024x512xbf16, #tpu.memory_space<vmem>>, %arg10: memref<1x512xf32, #tpu.memory_space<vmem>>, %arg11: memref<512x256xbf16, #tpu.memory_space<vmem>>, %arg12: memref<1x256xf32, #tpu.memory_space<vmem>>, %arg13: memref<256x128xbf16, #tpu.memory_space<vmem>>, %arg14: memref<1x128xf32, #tpu.memory_space<vmem>>, %arg15: memref<2x128xf32, #tpu.memory_space<vmem>>, %arg16: memref<2x1024xf32, #tpu.memory_space<vmem>>) attributes {dimension_semantics = [#tpu.dimension_semantics<parallel>, #tpu.dimension_semantics<arbitrary>], iteration_bounds = array<i64: 1, 1>, scalar_prefetch = 0 : i64, scratch_operands = 1 : i64, tpu.core_type = #tpu.core_type<tc>, window_params = [{transform_indices = @transform_0, window_bounds = array<i64: 2, 64, 3>}, {pipeline_mode = #tpu.pipeline_mode<synchronous>, transform_indices = @transform_1, window_bounds = array<i64: 3, 64>}, {pipeline_mode = #tpu.pipeline_mode<synchronous>, transform_indices = @transform_2, window_bounds = array<i64: 1, 64>}, {pipeline_mode = #tpu.pipeline_mode<synchronous>, transform_indices = @transform_3, window_bounds = array<i64: 64, 128>}, {pipeline_mode = #tpu.pipeline_mode<synchronous>, transform_indices = @transform_4, window_bounds = array<i64: 1, 128>}, {pipeline_mode = #tpu.pipeline_mode<synchronous>, transform_indices = @transform_5, window_bounds = array<i64: 128, 1024>}, {pipeline_mode = #tpu.pipeline_mode<synchronous>, transform_indices = @transform_6, window_bounds = array<i64: 1, 1024>}, {pipeline_mode = #tpu.pipeline_mode<synchronous>, transform_indices = @transform_7, window_bounds = array<i64: 1024, 512>}, {pipeline_mode = #tpu.pipeline_mode<synchronous>, transform_indices = @transform_8, window_bounds = array<i64: 1, 512>}, {pipeline_mode = #tpu.pipeline_mode<synchronous>, transform_indices = @transform_9, window_bounds = array<i64: 512, 256>}, {pipeline_mode = #tpu.pipeline_mode<synchronous>, transform_indices = @transform_10, window_bounds = array<i64: 1, 256>}, {pipeline_mode = #tpu.pipeline_mode<synchronous>, transform_indices = @transform_11, window_bounds = array<i64: 256, 128>}, {pipeline_mode = #tpu.pipeline_mode<synchronous>, transform_indices = @transform_12, window_bounds = array<i64: 1, 128>}, {transform_indices = @transform_13, window_bounds = array<i64: 2, 128>}]} {
    %c0 = arith.constant 0 : index
    %c0_0 = arith.constant 0 : index
    %c0_1 = arith.constant 0 : index
    %0 = vector.load %arg2[%c0, %c0_0, %c0_1] : memref<2x64x3xf32, #tpu.memory_space<vmem>>, vector<2x64x3xf32>
    %1 = vector.shape_cast %0 : vector<2x64x3xf32> to vector<128x3xf32>
    %c0_2 = arith.constant 0 : index
    %c0_3 = arith.constant 0 : index
    %2 = vector.load %arg3[%c0_2, %c0_3] : memref<3x64xf32, #tpu.memory_space<vmem>>, vector<3x64xf32>
    %3 = vector.extract_strided_slice %1 {offsets = [0, 0], sizes = [128, 1], strides = [1, 1]} : vector<128x3xf32> to vector<128x1xf32>
    %4 = vector.extract_strided_slice %2 {offsets = [0, 0], sizes = [1, 64], strides = [1, 1]} : vector<3x64xf32> to vector<1x64xf32>
    %5 = vector.broadcast %3 : vector<128x1xf32> to vector<128x64xf32>
    %6 = vector.broadcast %4 : vector<1x64xf32> to vector<128x64xf32>
    %7 = arith.mulf %5, %6 : vector<128x64xf32>
    %8 = vector.extract_strided_slice %1 {offsets = [0, 1], sizes = [128, 1], strides = [1, 1]} : vector<128x3xf32> to vector<128x1xf32>
    %9 = vector.extract_strided_slice %2 {offsets = [1, 0], sizes = [1, 64], strides = [1, 1]} : vector<3x64xf32> to vector<1x64xf32>
    %10 = vector.broadcast %8 : vector<128x1xf32> to vector<128x64xf32>
    %11 = vector.broadcast %9 : vector<1x64xf32> to vector<128x64xf32>
    %12 = arith.mulf %10, %11 : vector<128x64xf32>
    %13 = arith.addf %7, %12 : vector<128x64xf32>
    %14 = vector.extract_strided_slice %1 {offsets = [0, 2], sizes = [128, 1], strides = [1, 1]} : vector<128x3xf32> to vector<128x1xf32>
    %15 = vector.extract_strided_slice %2 {offsets = [2, 0], sizes = [1, 64], strides = [1, 1]} : vector<3x64xf32> to vector<1x64xf32>
    %16 = vector.broadcast %14 : vector<128x1xf32> to vector<128x64xf32>
    %17 = vector.broadcast %15 : vector<1x64xf32> to vector<128x64xf32>
    %18 = arith.mulf %16, %17 : vector<128x64xf32>
    %19 = arith.addf %13, %18 : vector<128x64xf32>
    %c0_4 = arith.constant 0 : index
    %c0_5 = arith.constant 0 : index
    %20 = vector.load %arg4[%c0_4, %c0_5] : memref<1x64xf32, #tpu.memory_space<vmem>>, vector<1x64xf32>
    %21 = vector.broadcast %20 : vector<1x64xf32> to vector<128x64xf32>
    %22 = arith.addf %19, %21 : vector<128x64xf32>
    %cst = arith.constant 0.000000e+00 : f32
    %23 = vector.broadcast %cst : f32 to vector<128x64xf32>
    %24 = arith.maximumf %22, %23 : vector<128x64xf32>
    %25 = arith.truncf %24 : vector<128x64xf32> to vector<128x64xbf16>
    %c0_6 = arith.constant 0 : index
    %c0_7 = arith.constant 0 : index
    %26 = vector.load %arg5[%c0_6, %c0_7] : memref<64x128xbf16, #tpu.memory_space<vmem>>, vector<64x128xbf16>
    %cst_8 = arith.constant dense<0.000000e+00> : vector<128x128xf32>
    %27 = tpu.matmul %25, %26, %cst_8 {dimension_numbers = #tpu.dot_dimension_numbers<[1], [0], [0], [1], [0, 0, 1, 1], [], []>} : vector<128x64xbf16>, vector<64x128xbf16>, vector<128x128xf32> -> vector<128x128xf32>
    %c0_9 = arith.constant 0 : index
    %c0_10 = arith.constant 0 : index
    %28 = vector.load %arg6[%c0_9, %c0_10] : memref<1x128xf32, #tpu.memory_space<vmem>>, vector<1x128xf32>
    %29 = vector.broadcast %28 : vector<1x128xf32> to vector<128x128xf32>
    %30 = arith.addf %27, %29 : vector<128x128xf32>
    %cst_11 = arith.constant 0.000000e+00 : f32
    %31 = vector.broadcast %cst_11 : f32 to vector<128x128xf32>
    %32 = arith.maximumf %30, %31 : vector<128x128xf32>
    %33 = arith.truncf %32 : vector<128x128xf32> to vector<128x128xbf16>
    %c0_12 = arith.constant 0 : index
    %c0_13 = arith.constant 0 : index
    %34 = vector.load %arg7[%c0_12, %c0_13] : memref<128x1024xbf16, #tpu.memory_space<vmem>>, vector<128x1024xbf16>
    %c0_14 = arith.constant 0 : index
    %c0_15 = arith.constant 0 : index
    %35 = vector.load %arg8[%c0_14, %c0_15] : memref<1x1024xf32, #tpu.memory_space<vmem>>, vector<1x1024xf32>
    %cst_16 = arith.constant dense<0.000000e+00> : vector<128x1024xf32>
    %36 = tpu.matmul %33, %34, %cst_16 {dimension_numbers = #tpu.dot_dimension_numbers<[1], [0], [0], [1], [0, 0, 1, 1], [], []>} : vector<128x128xbf16>, vector<128x1024xbf16>, vector<128x1024xf32> -> vector<128x1024xf32>
    %37 = vector.broadcast %35 : vector<1x1024xf32> to vector<128x1024xf32>
    %38 = arith.addf %36, %37 : vector<128x1024xf32>
    %39 = vector.extract_strided_slice %38 {offsets = [0, 0], sizes = [64, 1024], strides = [1, 1]} : vector<128x1024xf32> to vector<64x1024xf32>
    %cst_17 = arith.constant dense<0xFF800000> : vector<1024xf32>
    %40 = vector.multi_reduction <maximumf>, %39, %cst_17 [0] : vector<64x1024xf32> to vector<1024xf32>
    %41 = vector.shape_cast %40 : vector<1024xf32> to vector<1x1024xf32>
    %c0_18 = arith.constant 0 : index
    %c0_19 = arith.constant 0 : index
    %42 = vector.load %arg16[%c0_18, %c0_19] : memref<2x1024xf32, #tpu.memory_space<vmem>>, vector<1x1024xf32>
    tpu.vector_store %arg16[%c0_18, %c0_19], %41 {strides = array<i32>} : memref<2x1024xf32, #tpu.memory_space<vmem>>, vector<1x1024xf32>,
    %43 = vector.extract_strided_slice %38 {offsets = [64, 0], sizes = [64, 1024], strides = [1, 1]} : vector<128x1024xf32> to vector<64x1024xf32>
    %cst_20 = arith.constant dense<0xFF800000> : vector<1024xf32>
    %44 = vector.multi_reduction <maximumf>, %43, %cst_20 [0] : vector<64x1024xf32> to vector<1024xf32>
    %45 = vector.shape_cast %44 : vector<1024xf32> to vector<1x1024xf32>
    %c1 = arith.constant 1 : index
    %c0_21 = arith.constant 0 : index
    %46 = vector.load %arg16[%c1, %c0_21] : memref<2x1024xf32, #tpu.memory_space<vmem>>, vector<1x1024xf32>
    tpu.vector_store %arg16[%c1, %c0_21], %45 {strides = array<i32>} : memref<2x1024xf32, #tpu.memory_space<vmem>>, vector<1x1024xf32>,
    %c0_i32 = arith.constant 0 : i32
    %47 = arith.cmpi eq, %arg1, %c0_i32 : i32
    %48 = arith.extui %47 : i1 to i32
    %c0_i32_22 = arith.constant 0 : i32
    %49 = arith.cmpi ne, %48, %c0_i32_22 : i32
    scf.if %49 {
      %c0_23 = arith.constant 0 : index
      %c0_24 = arith.constant 0 : index
      %50 = vector.load %arg16[%c0_23, %c0_24] : memref<2x1024xf32, #tpu.memory_space<vmem>>, vector<2x1024xf32>
      %51 = arith.truncf %50 : vector<2x1024xf32> to vector<2x1024xbf16>
      %c0_25 = arith.constant 0 : index
      %c0_26 = arith.constant 0 : index
      %52 = vector.load %arg9[%c0_25, %c0_26] : memref<1024x512xbf16, #tpu.memory_space<vmem>>, vector<1024x512xbf16>
      %cst_27 = arith.constant dense<0.000000e+00> : vector<2x512xf32>
      %53 = tpu.matmul %51, %52, %cst_27 {dimension_numbers = #tpu.dot_dimension_numbers<[1], [0], [0], [1], [0, 0, 1, 1], [], []>} : vector<2x1024xbf16>, vector<1024x512xbf16>, vector<2x512xf32> -> vector<2x512xf32>
      %c0_28 = arith.constant 0 : index
      %c0_29 = arith.constant 0 : index
      %54 = vector.load %arg10[%c0_28, %c0_29] : memref<1x512xf32, #tpu.memory_space<vmem>>, vector<1x512xf32>
      %55 = vector.broadcast %54 : vector<1x512xf32> to vector<2x512xf32>
      %56 = arith.addf %53, %55 : vector<2x512xf32>
      %cst_30 = arith.constant 0.000000e+00 : f32
      %57 = vector.broadcast %cst_30 : f32 to vector<2x512xf32>
      %58 = arith.maximumf %56, %57 : vector<2x512xf32>
      %59 = arith.truncf %58 : vector<2x512xf32> to vector<2x512xbf16>
      %c0_31 = arith.constant 0 : index
      %c0_32 = arith.constant 0 : index
      %60 = vector.load %arg11[%c0_31, %c0_32] : memref<512x256xbf16, #tpu.memory_space<vmem>>, vector<512x256xbf16>
      %cst_33 = arith.constant dense<0.000000e+00> : vector<2x256xf32>
      %61 = tpu.matmul %59, %60, %cst_33 {dimension_numbers = #tpu.dot_dimension_numbers<[1], [0], [0], [1], [0, 0, 1, 1], [], []>} : vector<2x512xbf16>, vector<512x256xbf16>, vector<2x256xf32> -> vector<2x256xf32>
      %c0_34 = arith.constant 0 : index
      %c0_35 = arith.constant 0 : index
      %62 = vector.load %arg12[%c0_34, %c0_35] : memref<1x256xf32, #tpu.memory_space<vmem>>, vector<1x256xf32>
      %63 = vector.broadcast %62 : vector<1x256xf32> to vector<2x256xf32>
      %64 = arith.addf %61, %63 : vector<2x256xf32>
      %cst_36 = arith.constant 0.000000e+00 : f32
      %65 = vector.broadcast %cst_36 : f32 to vector<2x256xf32>
      %66 = arith.maximumf %64, %65 : vector<2x256xf32>
      %67 = arith.truncf %66 : vector<2x256xf32> to vector<2x256xbf16>
      %c0_37 = arith.constant 0 : index
      %c0_38 = arith.constant 0 : index
      %68 = vector.load %arg13[%c0_37, %c0_38] : memref<256x128xbf16, #tpu.memory_space<vmem>>, vector<256x128xbf16>
      %cst_39 = arith.constant dense<0.000000e+00> : vector<2x128xf32>
      %69 = tpu.matmul %67, %68, %cst_39 {dimension_numbers = #tpu.dot_dimension_numbers<[1], [0], [0], [1], [0, 0, 1, 1], [], []>} : vector<2x256xbf16>, vector<256x128xbf16>, vector<2x128xf32> -> vector<2x128xf32>
      %c0_40 = arith.constant 0 : index
      %c0_41 = arith.constant 0 : index
      %70 = vector.load %arg14[%c0_40, %c0_41] : memref<1x128xf32, #tpu.memory_space<vmem>>, vector<1x128xf32>
      %71 = vector.broadcast %70 : vector<1x128xf32> to vector<2x128xf32>
      %72 = arith.addf %69, %71 : vector<2x128xf32>
      %c0_42 = arith.constant 0 : index
      %c0_43 = arith.constant 0 : index
      %73 = vector.load %arg15[%c0_42, %c0_43] : memref<2x128xf32, #tpu.memory_space<vmem>>, vector<2x128xf32>
      tpu.vector_store %arg15[%c0_42, %c0_43], %72 {strides = array<i32>} : memref<2x128xf32, #tpu.memory_space<vmem>>, vector<2x128xf32>,
    } else {
    }
    return
  }
  func.func @transform_0(%arg0: i32, %arg1: i32) -> (i32, i32, i32) {
    %c0_i32 = arith.constant 0 : i32
    %c0_i32_0 = arith.constant 0 : i32
    return %arg0, %arg1, %c0_i32 : i32, i32, i32
  }
  func.func @transform_1(%arg0: i32, %arg1: i32) -> (i32, i32) {
    %c0_i32 = arith.constant 0 : i32
    %c0_i32_0 = arith.constant 0 : i32
    %c0_i32_1 = arith.constant 0 : i32
    return %c0_i32, %c0_i32_0 : i32, i32
  }
  func.func @transform_2(%arg0: i32, %arg1: i32) -> (i32, i32) {
    %c0_i32 = arith.constant 0 : i32
    %c0_i32_0 = arith.constant 0 : i32
    %c0_i32_1 = arith.constant 0 : i32
    return %c0_i32, %c0_i32_0 : i32, i32
  }
  func.func @transform_3(%arg0: i32, %arg1: i32) -> (i32, i32) {
    %c0_i32 = arith.constant 0 : i32
    %c0_i32_0 = arith.constant 0 : i32
    %c0_i32_1 = arith.constant 0 : i32
    return %c0_i32, %c0_i32_0 : i32, i32
  }
  func.func @transform_4(%arg0: i32, %arg1: i32) -> (i32, i32) {
    %c0_i32 = arith.constant 0 : i32
    %c0_i32_0 = arith.constant 0 : i32
    %c0_i32_1 = arith.constant 0 : i32
    return %c0_i32, %c0_i32_0 : i32, i32
  }
  func.func @transform_5(%arg0: i32, %arg1: i32) -> (i32, i32) {
    %c0_i32 = arith.constant 0 : i32
    %c0_i32_0 = arith.constant 0 : i32
    %c0_i32_1 = arith.constant 0 : i32
    return %c0_i32, %c0_i32_0 : i32, i32
  }
  func.func @transform_6(%arg0: i32, %arg1: i32) -> (i32, i32) {
    %c0_i32 = arith.constant 0 : i32
    %c0_i32_0 = arith.constant 0 : i32
    %c0_i32_1 = arith.constant 0 : i32
    return %c0_i32, %c0_i32_0 : i32, i32
  }
  func.func @transform_7(%arg0: i32, %arg1: i32) -> (i32, i32) {
    %c0_i32 = arith.constant 0 : i32
    %c0_i32_0 = arith.constant 0 : i32
    %c0_i32_1 = arith.constant 0 : i32
    return %c0_i32, %c0_i32_0 : i32, i32
  }
  func.func @transform_8(%arg0: i32, %arg1: i32) -> (i32, i32) {
    %c0_i32 = arith.constant 0 : i32
    %c0_i32_0 = arith.constant 0 : i32
    %c0_i32_1 = arith.constant 0 : i32
    return %c0_i32, %c0_i32_0 : i32, i32
  }
  func.func @transform_9(%arg0: i32, %arg1: i32) -> (i32, i32) {
    %c0_i32 = arith.constant 0 : i32
    %c0_i32_0 = arith.constant 0 : i32
    %c0_i32_1 = arith.constant 0 : i32
    return %c0_i32, %c0_i32_0 : i32, i32
  }
  func.func @transform_10(%arg0: i32, %arg1: i32) -> (i32, i32) {
    %c0_i32 = arith.constant 0 : i32
    %c0_i32_0 = arith.constant 0 : i32
    %c0_i32_1 = arith.constant 0 : i32
    return %c0_i32, %c0_i32_0 : i32, i32
  }
  func.func @transform_11(%arg0: i32, %arg1: i32) -> (i32, i32) {
    %c0_i32 = arith.constant 0 : i32
    %c0_i32_0 = arith.constant 0 : i32
    %c0_i32_1 = arith.constant 0 : i32
    return %c0_i32, %c0_i32_0 : i32, i32
  }
  func.func @transform_12(%arg0: i32, %arg1: i32) -> (i32, i32) {
    %c0_i32 = arith.constant 0 : i32
    %c0_i32_0 = arith.constant 0 : i32
    %c0_i32_1 = arith.constant 0 : i32
    return %c0_i32, %c0_i32_0 : i32, i32
  }
  func.func @transform_13(%arg0: i32, %arg1: i32) -> (i32, i32) {
    %c0_i32 = arith.constant 0 : i32
    %c0_i32_0 = arith.constant 0 : i32
    return %arg0, %c0_i32 : i32, i32
  }
}

</mosaic_0001>

<bundles_post_ra>
// kernel: tpu_custom_call.1
= control target key start
LH: loop header
LB: loop body
LE: loop exit
PB: predicated region body
PF: predicated region fallthrough
CT: control target
= control target key end

     0   :  { %18 = vsyncpa [#allocation4], 0  ;;  %s6475_s0 = inlined_call_operand.vmem [shape: f32[2,64,3], index: 0, kind: input, shape index: {}]   ;;  %s6476_s1 = inlined_call_operand.vmem [shape: f32[3,64], index: 1, kind: input, shape index: {}]   ;;  %s6477_s2 = inlined_call_operand.vmem [shape: f32[1,64], index: 2, kind: input, shape index: {}]   ;;  %s6478_s3 = inlined_call_operand.vmem [shape: bf16[64,128], index: 3, kind: input, shape index: {}]   ;;  %s6479_s4 = inlined_call_operand.hbm [shape: f32[1,128], index: 4, kind: input, shape index: {}]   ;;  %s6480_s5 = inlined_call_operand.hbm [shape: bf16[128,1024], index: 5, kind: input, shape index: {}]   ;;  %s6481_s6 = inlined_call_operand.vmem [shape: f32[1,1024], index: 6, kind: input, shape index: {}]   ;;  %s6482_s7 = inlined_call_operand.hbm [shape: bf16[1024,512], index: 7, kind: input, shape index: {}]   ;;  %s6483_s8 = inlined_call_operand.hbm [shape: f32[1,512], index: 8, kind: input, shape index: {}]   ;;  %s6484_s9 = inlined_call_operand.hbm [shape: bf16[512,256], index: 9, kind: input, shape index: {}]   ;;  %s6485_s10 = inlined_call_operand.vmem [shape: f32[1,256], index: 10, kind: input, shape index: {}]   ;;  %s6486_s11 = inlined_call_operand.vmem [shape: bf16[256,128], index: 11, kind: input, shape index: {}]   ;;  %s6487_s12 = inlined_call_operand.vmem [shape: f32[1,128], index: 12, kind: input, shape index: {}]   ;;  %s6488_s13 = inlined_call_operand.hbm [shape: f32[2,128], index: 13, kind: output, shape index: {}]  }
   0x1   :  { %19 = vsyncpa [#allocation7], 0 }
   0x2   :  { %20 = vsyncpa [#allocation10], 0 }
   0x3   :  { %21 = vsyncpa [#allocation5], 0  ;;  %s5700_s25 = smov [#allocation6]   ;;  %s5560_s29 = scalar_lea.hbm %s6480_s5, 8192 }
   0x4   :  { %s45_s26 = sshll.u32 %s5700_s25, 4  ;;  %p5561_p0 = scmp.ne.s32.totalorder %s6480_s5, %s5560_s29  ;;  %s46_s26 = int_to_ptr.vmem [resolvable:$true] %s45_s26 }
   0x5   :  { %p5564_p1 = scmp.lt.u32.totalorder %s5560_s29, %s6480_s5 }
   0x7   :  { %p5566_p2 = pnand %p5564_p1, %p5561_p0 }
   0x9   :  { %5569 = shalt.err (!%p5566_p2)
}
   0xa   :  { %s5570_s17 = scalar_lea.vmem %s46_s26, 8192  ;;  %p5575_p4 = scmp.lt.s32.totalorder %s46_s26, %s46_s26 }
   0xb   :  { %p5571_p3 = scmp.ne.s32.totalorder %s46_s26, %s5570_s17  ;;  %p5576_p5 = scmp.lt.s32.totalorder %s5570_s17, %s5570_s17 }
   0xd   :  { %p5577_p6 = por %p5576_p5, %p5575_p4 }
   0xf   :  { %p5578_p7 = pnand %p5577_p6, %p5571_p3 }
  0x11   :  { %5581 = shalt.err (!%p5578_p7)
}
  0x12   :  { %s5701_s18 = smov 512   ;;  %s5702_s19 = smov 32  }
  0x13   :  { %51 = dma.hbm_to_vmem [thread:$0]  %s6480_s5, 8192, %s46_s26, [#allocation7], %s5701_s18, %s5701_s18, %s5702_s19  }
  0x14   :  { %s5703_s22 = smov [#allocation9]   ;;  %s5704_s24 = smov [#allocation3]  }
  0x15   :  { %s72_s23 = sshll.u32 %s5703_s22, 4  ;;  %s36_s25 = sshll.u32 %s5704_s24, 4  ;;  %s73_s23 = int_to_ptr.vmem [resolvable:$true] %s72_s23  ;;  %s37_s25 = int_to_ptr.vmem [resolvable:$true] %s36_s25 }
  0x16   :  { %s5582_s29 = scalar_lea.hbm %s6483_s8, 64 }
  0x17   :  { %p5583_p8 = scmp.ne.s32.totalorder %s6483_s8, %s5582_s29  ;;  %p5586_p9 = scmp.lt.u32.totalorder %s5582_s29, %s6483_s8 }
  0x19   :  { %p5588_p10 = pnand %p5586_p9, %p5583_p8 }
  0x1b   :  { %5591 = shalt.err (!%p5588_p10)
}
  0x1c   :  { %s5592_s5 = scalar_lea.vmem %s73_s23, 64  ;;  %p5597_p12 = scmp.lt.s32.totalorder %s73_s23, %s73_s23 }
  0x1d   :  { %p5593_p11 = scmp.ne.s32.totalorder %s73_s23, %s5592_s5  ;;  %p5598_p13 = scmp.lt.s32.totalorder %s5592_s5, %s5592_s5 }
  0x1f   :  { %p5599_p0 = por %p5598_p13, %p5597_p12 }
  0x21   :  { %p5600_p1 = pnand %p5599_p0, %p5593_p11 }
  0x23   :  { %5603 = shalt.err (!%p5600_p1)
}
  0x24   :  { %75 = dma.hbm_to_vmem [thread:$0]  %s6483_s8, 64, %s73_s23, [#allocation10]  }
  0x25   :  { %s5604_s20 = scalar_lea.hbm %s6479_s4, 16 }
  0x26   :  { %p5605_p2 = scmp.ne.s32.totalorder %s6479_s4, %s5604_s20  ;;  %p5608_p3 = scmp.lt.u32.totalorder %s5604_s20, %s6479_s4 }
  0x28   :  { %p5610_p4 = pnand %p5608_p3, %p5605_p2 }
  0x2a   :  { %5613 = shalt.err (!%p5610_p4)
}
  0x2b   :  { %s5614_s28 = scalar_lea.vmem %s37_s25, 16  ;;  %s5618_s29 = scalar_lea.vmem %s37_s25, 32 }
  0x2c   :  { %p5615_p5 = scmp.ne.s32.totalorder %s37_s25, %s5614_s28  ;;  %p5619_p6 = scmp.lt.s32.totalorder %s37_s25, %s37_s25 }
  0x2d   :  { %p5620_p7 = scmp.lt.s32.totalorder %s5618_s29, %s5614_s28 }
  0x2f   :  { %p5621_p8 = por %p5620_p7, %p5619_p6 }
  0x31   :  { %p5622_p9 = pnand %p5621_p8, %p5615_p5 }
  0x33   :  { %5625 = shalt.err (!%p5622_p9)
}
  0x34   :  { %39 = dma.hbm_to_vmem [thread:$0]  %s6479_s4, 16, %s37_s25, [#allocation4]  }
  0x35   :  { %s5705_s30 = smov [#allocation8]   ;;  %s5626_s5 = scalar_lea.hbm %s6482_s7, 32768 }
  0x36   :  { %s59_s14 = sshll.u32 %s5705_s30, 4  ;;  %p5627_p10 = scmp.ne.s32.totalorder %s6482_s7, %s5626_s5  ;;  %s60_s14 = int_to_ptr.vmem [resolvable:$true] %s59_s14 }
  0x37   :  { %p5630_p11 = scmp.lt.u32.totalorder %s5626_s5, %s6482_s7 }
  0x39   :  { %p5632_p12 = pnand %p5630_p11, %p5627_p10 }
  0x3b   :  { %5635 = shalt.err (!%p5632_p12)
}
  0x3c   :  { %s5636_s20 = scalar_lea.vmem %s60_s14, 32768  ;;  %p5641_p0 = scmp.lt.s32.totalorder %s60_s14, %s60_s14 }
  0x3d   :  { %p5637_p13 = scmp.ne.s32.totalorder %s60_s14, %s5636_s20  ;;  %p5642_p1 = scmp.lt.s32.totalorder %s5636_s20, %s5636_s20 }
  0x3f   :  { %p5643_p2 = por %p5642_p1, %p5641_p0 }
  0x41   :  { %p5644_p3 = pnand %p5643_p2, %p5637_p13 }
  0x43   :  { %5647 = shalt.err (!%p5644_p3)
}
  0x44   :  { %s5706_s4 = smov 256   ;;  %s5707_s25 = smov 16  }
  0x45   :  { %65 = dma.hbm_to_vmem [thread:$0]  %s6482_s7, 32768, %s60_s14, [#allocation7], %s5706_s4, %s5706_s4, %s5707_s25  }
  0x46   :  { %s5708_s24 = smov [#allocation11]   ;;  %s5648_s8 = scalar_lea.hbm %s6484_s9, 8192 }
  0x47   :  { %s81_s27 = sshll.u32 %s5708_s24, 4  ;;  %p5649_p4 = scmp.ne.s32.totalorder %s6484_s9, %s5648_s8  ;;  %s82_s27 = int_to_ptr.vmem [resolvable:$true] %s81_s27 }
  0x48   :  { %p5652_p5 = scmp.lt.u32.totalorder %s5648_s8, %s6484_s9 }
  0x4a   :  { %p5654_p6 = pnand %p5652_p5, %p5649_p4 }
  0x4c   :  { %5657 = shalt.err (!%p5654_p6)
}
  0x4d   :  { %s5658_s5 = scalar_lea.vmem %s82_s27, 8192  ;;  %p5663_p8 = scmp.lt.s32.totalorder %s82_s27, %s82_s27 }
  0x4e   :  { %p5659_p7 = scmp.ne.s32.totalorder %s82_s27, %s5658_s5  ;;  %p5664_p9 = scmp.lt.s32.totalorder %s5658_s5, %s5658_s5 }
  0x50   :  { %p5665_p10 = por %p5664_p9, %p5663_p8 }
  0x52   :  { %p5666_p11 = pnand %p5665_p10, %p5659_p7 }
  0x54   :  { %5669 = shalt.err (!%p5666_p11)
}
  0x55   :  { %s5709_s7 = smov 128   ;;  %s5710_s14 = smov 8  }
  0x56   :  { %87 = dma.hbm_to_vmem [thread:$0]  %s6484_s9, 8192, %s82_s27, [#allocation10], %s5709_s7, %s5709_s7, %s5710_s14  }
  0x57   :  { %5692 = dma.done.wait [#allocation4], 16  }
  0x58   :  { %5693 = vsyncadd [#allocation4], 4294967280 }
  0x59   :  { %5694 = dma.done.wait [#allocation7], 40960  }
  0x5a   :  { %5695 = vsyncadd [#allocation7], 4294926336 }
  0x5b   :  { %5696 = dma.done.wait [#allocation10], 8256  }
  0x5c   :  { %5697 = vsyncadd [#allocation10], 4294959040  ;;  %v5711_v0 = vmov 1   ;;  %v5712_v1 = vmov 0   ;;  %v110_v2 = vld [vmem:[%s6475_s0] sm:$0xff]  ;;  %v111_v3 = vld [vmem:[%s6475_s0 + $0x8] sm:$0xff]  ;;  %v207_v23 = vlaneseq }
  0x5d   :  { %5032 = vset.pattern.permute.xlu1 %v5711_v0  ;;  %5031 = vset.pattern.permute.xlu0 %v5712_v1  ;;  %v5713_v4 = vmov 2   ;;  %v113_v5 = vld [vmem:[%s6475_s0 + $0x18] sm:$0xff]  ;;  %v112_v6 = vld [vmem:[%s6475_s0 + $0x10] sm:$0xff]  ;;  %v114_v7 = vld [vmem:[%s6475_s0 + $0x20] sm:$0xff]  ;;  %vm513_vm0 = vcmask 523264  }
  0x5e   :  { %1157 = vmatprep.mubr.bf16.mxu1 %v5712_v1  ;;  %228 = vperm.xlu1 %5032, %v110_v2   ;;  %v5058_v8 = vld [vmem:[%s6478_s3] sm:$0xff]   ;;  %v115_v9 = vld [vmem:[%s6475_s0 + $0x28] sm:$0xff]  ;;  %v116_v11 = vld [vmem:[%s6475_s0 + $0x30] sm:$0xff]  ;;  %v5935_v25 = vshrl.u32 %v207_v23, 7 }
  0x5f   :  { %129 = vperm.xlu0 %5031, %v110_v2   ;;  %4940 = vmatprep.subr.bf16.mxu0 %v5058_v8  ;;  %v5059_v10 = vld [vmem:[%s6478_s3 + $0x8] sm:$0xff]   ;;  %v5060_v12 = vld [vmem:[%s6478_s3 + $0x10] sm:$0xff]   ;;  %v5061_v13 = vld [vmem:[%s6478_s3 + $0x18] sm:$0xff]  }
  0x60   :  { %4941 = vmatpush3.bf16.msra.mxu0 %v5058_v8  ;;  %v117_v14 = vld [vmem:[%s6475_s0 + $0x38] sm:$0xff]  ;;  %v119_v15 = vld [vmem:[%s6475_s0 + $0x48] sm:$0xff]  ;;  %v120_v16 = vld [vmem:[%s6475_s0 + $0x50] sm:$0xff]  ;;  %v5938_v28 = vsub.s32 0, %v5935_v25  ;;  %v5944_v31 = vsub.s32 1, %v5935_v25  ;;  %v5947_v32 = vsub.s32 2, %v5935_v25 }
  0x61   :  { %4942 = vmatprep.subr.bf16.mxu0 %v5059_v10  ;;  %v122_v17 = vld [vmem:[%s6475_s0 + $0x60] sm:$0xff]  ;;  %v123_v19 = vld [vmem:[%s6475_s0 + $0x68] sm:$0xff]  ;;  %v124_v20 = vld [vmem:[%s6475_s0 + $0x70] sm:$0xff] }
  0x62   :  { %232 = vperm.xlu1 %5032, %v111_v3   ;;  %v118_v18 = vld [vmem:[%s6475_s0 + $0x40] sm:$0xff]  ;;  %v121_v21 = vld [vmem:[%s6475_s0 + $0x58] sm:$0xff] }
  0x63   :  { %5036 = vset.pattern.permute.xlu0 %v5713_v4  ;;  %v125_v22 = vld [vmem:[%s6475_s0 + $0x78] sm:$0xff]  ;;  %v126_v30 = vld [vmem:[%s6476_s1] sm:$0x7] }
  0x64   :  { %332 = vperm.xlu0 %5036, %v111_v3   ;;  %4943 = vmatpush3.bf16.msra.mxu0 %v5059_v10  ;;  %v5950_v33 = vrot.slane %v126_v30, %v5938_v28  ;;  %v5953_v35 = vrot.slane %v126_v30, %v5944_v31  ;;  %v5956_v36 = vrot.slane %v126_v30, %v5947_v32  ;;  %v659_v40 = vld [vmem:[#allocation6] sm:$0xff]  ;;  %v5973_v58 = vld [vmem:[%s6477_s2] ss:$0 sm:$0xff] }
  0x65   :  { %4944 = vmatprep.subr.bf16.mxu0 %v5060_v12  ;;  %v663_v41 = vld [vmem:[#allocation6 + $0x20] sm:$0xff] }
  0x66   :  { %5033 = vset.pattern.permute.xlu1 %v5712_v1  ;;  %v4506_v46 = vcombine.high %v659_v40, %v663_v41  ;;  %v667_v47 = vld [vmem:[#allocation6 + $0x40] sm:$0xff]  ;;  %v5963_v51 = vcombine.low %v659_v40, %v663_v41 }
  0x67   :  { %144 = vperm.xlu1 %5033, %v113_v5   ;;  %v671_v48 = vld [vmem:[#allocation6 + $0x60] sm:$0xff] }
  0x68   :  { %5037 = vset.pattern.permute.xlu0 %v5712_v1  ;;  %4945 = vmatpush3.bf16.msra.mxu0 %v5060_v12  ;;  %v5965_v52 = vcombine.high %v667_v47, %v671_v48  ;;  %v675_v55 = vld [vmem:[#allocation6 + $0x80] sm:$0xff]  ;;  %v4513_v61 = vcombine.low %v667_v47, %v671_v48 }
  0x69   :  { %134 = vperm.xlu0 %5037, %v111_v3   ;;  %4946 = vmatprep.subr.bf16.mxu0 %v5061_v13  ;;  %v679_v56 = vld [vmem:[#allocation6 + $0xa0] sm:$0xff] }
  0x6a   :  { %4964 = vmatprep.subr.bf16.mxu1 %v4506_v46  ;;  %v4522_v62 = vcombine.high %v675_v55, %v679_v56  ;;  %v683_v3 = vld [vmem:[#allocation6 + $0xc0] sm:$0xff]  ;;  %v4521_v10 = vcombine.low %v675_v55, %v679_v56 }
  0x6b   :  { %5034 = vset.pattern.permute.xlu1 %v5711_v0  ;;  %4972 = vmatpush1.bf16.msra.mxu1 %v5963_v51  ;;  %v699_v30 = vld [vmem:[#allocation6 + $0x140] sm:$0xff] }
  0x6c   :  { %240 = vperm.xlu1 %5034, %v113_v5   ;;  %4947 = vmatpush3.bf16.msra.mxu0 %v5061_v13 }
  0x6d   :  { %139 = vperm.xlu0 %5037, %v112_v6   ;;  %1085 = vmatprep.subr.bf16.mxu0 %v4506_v46 }
  0x6e   :  { %4965 = vmatprep.subr.bf16.mxu1 %v5965_v52 }
  0x6f   :  { %4973 = vmatpush1.bf16.msra.mxu1 %v4513_v61 }
  0x70   :  { %5035 = vset.pattern.permute.xlu1 %v5713_v4  ;;  %4966 = vmatprep.subr.bf16.mxu1 %v4522_v62 }
  0x71   :  { %149 = vperm.xlu0 %5037, %v114_v7   ;;  %328 = vperm.xlu1 %5035, %v110_v2  }
  0x73   :  { %4974 = vmatpush1.bf16.msra.mxu1 %v4521_v10 }
  0x75   :  { %5038 = vset.pattern.permute.xlu0 %v5711_v0  ;;  %336 = vperm.xlu1 %5035, %v112_v6  }
  0x76   :  { %236 = vperm.xlu0 %5038, %v112_v6  }
  0x79   :  { %340 = vperm.xlu1 %5035, %v113_v5  }
  0x7a   :  { %248 = vperm.xlu0 %5038, %v115_v9  }
  0x7d   :  { %5039 = vset.pattern.permute.xlu1 %v5712_v1 }
  0x7e   :  { %252 = vperm.xlu0 %5038, %v116_v11   ;;  %154 = vperm.xlu1 %5039, %v115_v9  }
  0x82   :  { %5043 = vset.pattern.permute.xlu0 %v5713_v4  ;;  %5040 = vset.pattern.permute.xlu1 %v5711_v0 }
  0x83   :  { %344 = vperm.xlu0 %5043, %v114_v7   ;;  %244 = vperm.xlu1 %5040, %v114_v7  }
  0x87   :  { %356 = vperm.xlu0 %5043, %v117_v14   ;;  %5041 = vset.pattern.permute.xlu1 %v5712_v1 }
  0x88   :  { %159 = vperm.xlu1 %5041, %v116_v11  }
  0x8b   :  { %364 = vperm.xlu0 %5043, %v119_v15  }
  0x8c   :  { %164 = vperm.xlu1 %5041, %v117_v14  }
  0x8f   :  { %5050 = vset.pattern.permute.xlu0 %v5712_v1 }
  0x90   :  { %174 = vperm.xlu0 %5050, %v119_v15   ;;  %5042 = vset.pattern.permute.xlu1 %v5711_v0 }
  0x91   :  { %256 = vperm.xlu1 %5042, %v117_v14  }
  0x94   :  { %179 = vperm.xlu0 %5050, %v120_v16  }
  0x95   :  { %5044 = vset.pattern.permute.xlu1 %v5713_v4 }
  0x96   :  { %348 = vperm.xlu1 %5044, %v115_v9  }
  0x98   :  { %189 = vperm.xlu0 %5050, %v122_v17  }
  0x9a   :  { %352 = vperm.xlu1 %5044, %v116_v11  }
  0x9c   :  { %5051 = vset.pattern.permute.xlu0 %v5711_v0 }
  0x9d   :  { %268 = vperm.xlu0 %5051, %v120_v16  }
  0x9e   :  { %5045 = vset.pattern.permute.xlu1 %v5712_v1 }
  0x9f   :  { %169 = vperm.xlu1 %5045, %v118_v18  }
  0xa1   :  { %280 = vperm.xlu0 %5051, %v123_v19  }
  0xa3   :  { %5046 = vset.pattern.permute.xlu1 %v5711_v0 }
  0xa4   :  { %260 = vperm.xlu1 %5046, %v118_v18  }
  0xa5   :  { %284 = vperm.xlu0 %5051, %v124_v20  }
  0xa8   :  { %264 = vperm.xlu1 %5046, %v119_v15  }
  0xa9   :  { %5056 = vset.pattern.permute.xlu0 %v5713_v4 }
  0xaa   :  { %376 = vperm.xlu0 %5056, %v122_v17  }
  0xac   :  { %5047 = vset.pattern.permute.xlu1 %v5712_v1 }
  0xad   :  { %184 = vperm.xlu1 %5047, %v121_v21  }
  0xae   :  { %388 = vperm.xlu0 %5056, %v125_v22  }
  0xb1   :  { %5048 = vset.pattern.permute.xlu1 %v5711_v0 }
  0xb2   :  { %272 = vperm.xlu1 %5048, %v121_v21  }
  0xb6   :  { %5049 = vset.pattern.permute.xlu1 %v5713_v4 }
  0xb7   :  { %360 = vperm.xlu1 %5049, %v118_v18   ;;  %v695_v18 = vld [vmem:[#allocation6 + $0x120] sm:$0xff] }
  0xbb   :  { %368 = vperm.xlu1 %5049, %v120_v16  }
  0xbf   :  { %372 = vperm.xlu1 %5049, %v121_v21  }
  0xc3   :  { %5052 = vset.pattern.permute.xlu1 %v5712_v1 }
  0xc4   :  { %194 = vperm.xlu1 %5052, %v123_v19  }
  0xc8   :  { %5053 = vset.pattern.permute.xlu1 %v5711_v0 }
  0xc9   :  { %276 = vperm.xlu1 %5053, %v122_v17   ;;  %v691_v17 = vld [vmem:[#allocation6 + $0x100] sm:$0xff] }
  0xcd   :  { %5054 = vset.pattern.permute.xlu1 %v5712_v1 }
  0xce   :  { %199 = vperm.xlu1 %5054, %v124_v20  }
  0xd2   :  { %204 = vperm.xlu1 %5054, %v125_v22  }
  0xd6   :  { %5055 = vset.pattern.permute.xlu1 %v5711_v0 }
  0xd7   :  { %288 = vperm.xlu1 %5055, %v125_v22  }
  0xdb   :  { %5057 = vset.pattern.permute.xlu1 %v5713_v4  ;;  %v687_v4 = vld [vmem:[#allocation6 + $0xe0] sm:$0xff] }
  0xdc   :  { %380 = vperm.xlu1 %5057, %v123_v19   ;;  %v4530_v12 = vcombine.high %v683_v3, %v687_v4 }
  0xdd   :  { %v229_v24 = vpop.permute.xlu1 %228 }
  0xde   :  { %v130_v26 = vpop.permute.xlu0 %129  ;;  %v295_v49 = vmul.f32 %v5953_v35, %v229_v24  ;;  %4967 = vmatprep.subr.bf16.mxu1 %v4530_v12 }
  0xdf   :  { %v211_v50 = vmul.f32 %v5950_v33, %v130_v26  ;;  %v4538_v26 = vcombine.high %v691_v17, %v695_v18 }
  0xe0   :  { %384 = vperm.xlu1 %5057, %v124_v20   ;;  %v4529_v20 = vcombine.low %v683_v3, %v687_v4 }
  0xe1   :  { %v233_v27 = vpop.permute.xlu1 %232  ;;  %v311_v59 = vadd.f32 %v295_v49, %v211_v50 }
  0xe2   :  { %v296_v39 = vmul.f32 %v5953_v35, %v233_v27  ;;  %4975 = vmatpush1.bf16.msra.mxu1 %v4529_v20 }
  0xe3   :  { %v333_v29 = vpop.permute.xlu0 %332  ;;  %4968 = vmatprep.subr.bf16.mxu1 %v4538_v26 }
  0xe4   :  { %v396_v42 = vmul.f32 %v5956_v36, %v333_v29 }
  0xe6   :  { %v145_v34 = vpop.permute.xlu1 %144 }
  0xe7   :  { %v214_v11 = vmul.f32 %v5950_v33, %v145_v34  ;;  %v703_v34 = vld [vmem:[#allocation6 + $0x160] sm:$0xff] }
  0xe8   :  { %v135_v37 = vpop.permute.xlu0 %134  ;;  %v4546_v40 = vcombine.high %v699_v30, %v703_v34 }
  0xe9   :  { %v212_v38 = vmul.f32 %v5950_v33, %v135_v37 }
  0xeb   :  { %v312_v43 = vadd.f32 %v296_v39, %v212_v38  ;;  %v241_v44 = vpop.permute.xlu1 %240  ;;  %v4537_v39 = vcombine.low %v691_v17, %v695_v18 }
  0xec   :  { %v140_v45 = vpop.permute.xlu0 %139  ;;  %v298_v7 = vmul.f32 %v5953_v35, %v241_v44 }
  0xed   :  { %v412_v53 = vadd.f32 %v396_v42, %v312_v43  ;;  %v213_v63 = vmul.f32 %v5950_v33, %v140_v45  ;;  %4976 = vmatpush1.bf16.msra.mxu1 %v4537_v39  ;;  %v4545_v45 = vcombine.low %v699_v30, %v703_v34 }
  0xee   :  { %v314_v21 = vadd.f32 %v298_v7, %v214_v11  ;;  %4969 = vmatprep.subr.bf16.mxu1 %v4546_v40 }
  0xef   :  { %v435_v2 = vadd.f32 %v5973_v58, %v412_v53 }
  0xf0   :  { %v5967_v54 = vpop.permute.xlu0 %149  ;;  %v329_v57 = vpop.permute.xlu1 %328 }
  0xf1   :  { %v395_v60 = vmul.f32 %v5956_v36, %v329_v57  ;;  %v451_v16 = vmax.f32 %v435_v2, 0.0  ;;  %4977 = vmatpush1.bf16.msra.mxu1 %v4545_v45  ;;  %v215_v55 = vmul.f32 %v5950_v33, %v5967_v54 }
  0xf3   :  { %v411_v0 = vadd.f32 %v395_v60, %v311_v59 }
  0xf4   :  { %v337_v5 = vpop.permute.xlu1 %336 }
  0xf5   :  { %v237_v6 = vpop.permute.xlu0 %236  ;;  %v434_v9 = vadd.f32 %v5973_v58, %v411_v0  ;;  %v397_v13 = vmul.f32 %v5956_v36, %v337_v5 }
  0xf6   :  { %v297_v8 = vmul.f32 %v5953_v35, %v237_v6 }
  0xf7   :  { %v450_v15 = vmax.f32 %v434_v9, 0.0 }
  0xf8   :  { %v313_v14 = vadd.f32 %v297_v8, %v213_v63  ;;  %v341_v19 = vpop.permute.xlu1 %340 }
  0xf9   :  { %v398_v23 = vmul.f32 %v5956_v36, %v341_v19  ;;  %v466_v24 = vpack.c.bf16 %v451_v16, %v450_v15  ;;  %v249_v44 = vpop.permute.xlu0 %248 }
  0xfa   :  { %v413_v22 = vadd.f32 %v397_v13, %v313_v14  ;;  %v300_v60 = vmul.f32 %v5953_v35, %v249_v44 }
  0xfb   :  { %v414_v29 = vadd.f32 %v398_v23, %v314_v21  ;;  %4948 = vmatprep.mubr.msk.bf16.mxu0 %vm513_vm0, %v466_v24 }
  0xfc   :  { %v436_v27 = vadd.f32 %v5973_v58, %v413_v22 }
  0xfd   :  { %v437_v37 = vadd.f32 %v5973_v58, %v414_v29  ;;  %v155_v38 = vpop.permute.xlu1 %154  ;;  %v253_v47 = vpop.permute.xlu0 %252 }
  0xfe   :  { %v452_v41 = vmax.f32 %v436_v27, 0.0  ;;  %v301_v4 = vmul.f32 %v5953_v35, %v253_v47 }
  0xff   :  { %v453_v42 = vmax.f32 %v437_v37, 0.0 }
 0x101   :  { %v467_v43 = vpack.c.bf16 %v453_v42, %v452_v41 }
 0x102   :  { %v245_v46 = vpop.permute.xlu1 %244  ;;  %v345_v53 = vpop.permute.xlu0 %344 }
 0x103   :  { %4949 = vmatmul.mubr.msk.bf16.vlgmr.msra.gmra.mrb[0].mxu0 %vm513_vm0, %v467_v43  ;;  %v299_v50 = vmul.f32 %v5953_v35, %v245_v46  ;;  %v399_v57 = vmul.f32 %v5956_v36, %v345_v53 }
 0x104   :  { %1086 = vmatpush1.bf16.msra.mxu0 %v5963_v51 }
 0x105   :  { %1087 = vmatprep.subr.bf16.mxu0 %v5965_v52  ;;  %v315_v56 = vadd.f32 %v299_v50, %v215_v55 }
 0x106   :  { %v357_v52 = vpop.permute.xlu0 %356 }
 0x107   :  { %v160_v48 = vpop.permute.xlu1 %159  ;;  %v415_v63 = vadd.f32 %v399_v57, %v315_v56  ;;  %v402_v2 = vmul.f32 %v5956_v36, %v357_v52 }
 0x108   :  { %1088 = vmatpush1.bf16.msra.mxu0 %v4513_v61  ;;  %v216_v61 = vmul.f32 %v5950_v33, %v155_v38  ;;  %v217_v5 = vmul.f32 %v5950_v33, %v160_v48 }
 0x109   :  { %1089 = vmatprep.subr.bf16.mxu0 %v4522_v62  ;;  %v438_v7 = vadd.f32 %v5973_v58, %v415_v63 }
 0x10a   :  { %v316_v3 = vadd.f32 %v300_v60, %v216_v61  ;;  %v317_v11 = vadd.f32 %v301_v4, %v217_v5 }
 0x10b   :  { %v165_v49 = vpop.permute.xlu1 %164  ;;  %v454_v14 = vmax.f32 %v438_v7, 0.0 }
 0x10c   :  { %1090 = vmatpush1.bf16.msra.mxu0 %v4521_v10  ;;  %v218_v62 = vmul.f32 %v5950_v33, %v165_v49 }
 0x10d   :  { %1091 = vmatprep.subr.bf16.mxu0 %v4530_v12 }
 0x110   :  { %v257_v59 = vpop.permute.xlu1 %256  ;;  %1092 = vmatpush1.bf16.msra.mxu0 %v4529_v20  ;;  %v365_v20 = vpop.permute.xlu0 %364 }
 0x111   :  { %v302_v51 = vmul.f32 %v5953_v35, %v257_v59  ;;  %1093 = vmatprep.subr.bf16.mxu0 %v4538_v26  ;;  %v404_v43 = vmul.f32 %v5956_v36, %v365_v20  ;;  %v707_v20 = vld [vmem:[#allocation6 + $0x180] sm:$0xff] }
 0x113   :  { %v318_v0 = vadd.f32 %v302_v51, %v218_v62 }
 0x114   :  { %1094 = vmatpush1.bf16.msra.mxu0 %v4537_v39  ;;  %v175_v26 = vpop.permute.xlu0 %174 }
 0x115   :  { %v349_v54 = vpop.permute.xlu1 %348  ;;  %1095 = vmatprep.subr.bf16.mxu0 %v4546_v40  ;;  %v418_v8 = vadd.f32 %v402_v2, %v318_v0  ;;  %v220_v39 = vmul.f32 %v5950_v33, %v175_v26 }
 0x116   :  { %v400_v6 = vmul.f32 %v5956_v36, %v349_v54 }
 0x117   :  { %v441_v15 = vadd.f32 %v5973_v58, %v418_v8 }
 0x118   :  { %v416_v9 = vadd.f32 %v400_v6, %v316_v3  ;;  %1096 = vmatpush1.bf16.msra.mxu0 %v4545_v45  ;;  %v180_v29 = vpop.permute.xlu0 %179 }
 0x119   :  { %v353_v10 = vpop.permute.xlu1 %352  ;;  %v457_v22 = vmax.f32 %v441_v15, 0.0  ;;  %v221_v47 = vmul.f32 %v5950_v33, %v180_v29 }
 0x11a   :  { %v439_v12 = vadd.f32 %v5973_v58, %v416_v9  ;;  %v401_v13 = vmul.f32 %v5956_v36, %v353_v10 }
 0x11c   :  { %v455_v16 = vmax.f32 %v439_v12, 0.0  ;;  %v417_v17 = vadd.f32 %v401_v13, %v317_v11  ;;  %v190_v37 = vpop.permute.xlu0 %189 }
 0x11e   :  { %v468_v18 = vpack.c.bf16 %v455_v16, %v454_v14  ;;  %v440_v19 = vadd.f32 %v5973_v58, %v417_v17  ;;  %v170_v21 = vpop.permute.xlu1 %169 }
 0x11f   :  { %v219_v45 = vmul.f32 %v5950_v33, %v170_v21  ;;  %v711_v21 = vld [vmem:[#allocation6 + $0x1a0] sm:$0xff] }
 0x120   :  { %v456_v23 = vmax.f32 %v440_v19, 0.0  ;;  %4952 = vmatprep.mubr.msk.bf16.mxu0 %vm513_vm0, %v468_v18  ;;  %v269_v42 = vpop.permute.xlu0 %268  ;;  %v223_v19 = vmul.f32 %v5950_v33, %v190_v37  ;;  %v4554_v26 = vcombine.high %v707_v20, %v711_v21  ;;  %v715_v37 = vld [vmem:[#allocation6 + $0x1c0] sm:$0xff] }
 0x121   :  { %v305_v48 = vmul.f32 %v5953_v35, %v269_v42 }
 0x122   :  { %v469_v24 = vpack.c.bf16 %v457_v22, %v456_v23  ;;  %1097 = vmatprep.subr.bf16.mxu0 %v4554_v26  ;;  %4970 = vmatprep.subr.bf16.mxu1 %v4554_v26 }
 0x123   :  { %v261_v27 = vpop.permute.xlu1 %260  ;;  %v321_v57 = vadd.f32 %v305_v48, %v221_v47 }
 0x124   :  { %4953 = vmatmul.mubr.msk.bf16.gmra.mrb[4].mxu0 %vm513_vm0, %v469_v24  ;;  %v303_v44 = vmul.f32 %v5953_v35, %v261_v27  ;;  %v281_v12 = vpop.permute.xlu0 %280 }
 0x126   :  { %v319_v50 = vadd.f32 %v303_v44, %v219_v45 }
 0x127   :  { %v265_v30 = vpop.permute.xlu1 %264 }
 0x128   :  { %v304_v38 = vmul.f32 %v5953_v35, %v265_v30  ;;  %v285_v14 = vpop.permute.xlu0 %284  ;;  %v4553_v30 = vcombine.low %v707_v20, %v711_v21  ;;  %v668_v20 = vld [vmem:[#allocation6 + $0x48] sm:$0xff] }
 0x129   :  { %v309_v45 = vmul.f32 %v5953_v35, %v285_v14  ;;  %v672_v21 = vld [vmem:[#allocation6 + $0x68] sm:$0xff] }
 0x12a   :  { %v320_v40 = vadd.f32 %v304_v38, %v220_v39  ;;  %1098 = vmatpush1.bf16.msra.mxu0 %v4553_v30  ;;  %4978 = vmatpush1.bf16.msra.mxu1 %v4553_v30  ;;  %v680_v30 = vld [vmem:[#allocation6 + $0xa8] sm:$0xff] }
 0x12c   :  { %v185_v34 = vpop.permute.xlu1 %184  ;;  %v420_v46 = vadd.f32 %v404_v43, %v320_v40  ;;  %v377_v18 = vpop.permute.xlu0 %376  ;;  %v719_v40 = vld [vmem:[#allocation6 + $0x1e0] sm:$0xff] }
 0x12d   :  { %v222_v62 = vmul.f32 %v5950_v33, %v185_v34  ;;  %v407_v23 = vmul.f32 %v5956_v36, %v377_v18  ;;  %v308_v34 = vmul.f32 %v5953_v35, %v281_v12  ;;  %v4562_v44 = vcombine.high %v715_v37, %v719_v40 }
 0x12e   :  { %v443_v55 = vadd.f32 %v5973_v58, %v420_v46  ;;  %v4561_v47 = vcombine.low %v715_v37, %v719_v40  ;;  %v688_v37 = vld [vmem:[#allocation6 + $0xe8] sm:$0xff] }
 0x12f   :  { %1099 = vmatprep.subr.bf16.mxu0 %v4562_v44  ;;  %4971 = vmatprep.subr.bf16.mxu1 %v4562_v44 }
 0x130   :  { %v459_v61 = vmax.f32 %v443_v55, 0.0  ;;  %v389_v29 = vpop.permute.xlu0 %388  ;;  %1100 = vmatpush1.bf16.msra.mxu0 %v4561_v47  ;;  %4979 = vmatpush1.bf16.msra.mxu1 %v4561_v47  ;;  %v704_v47 = vld [vmem:[#allocation6 + $0x168] sm:$0xff] }
 0x131   :  { %v273_v41 = vpop.permute.xlu1 %272  ;;  %v410_v43 = vmul.f32 %v5956_v36, %v389_v29  ;;  %v676_v29 = vld [vmem:[#allocation6 + $0x88] sm:$0xff] }
 0x132   :  { %v306_v51 = vmul.f32 %v5953_v35, %v273_v41  ;;  %v4523_v40 = vcombine.low %v676_v29, %v680_v30 }
 0x134   :  { %v322_v54 = vadd.f32 %v306_v51, %v222_v62 }
 0x136   :  { %v361_v49 = vpop.permute.xlu1 %360 }
 0x137   :  { %v403_v53 = vmul.f32 %v5956_v36, %v361_v49 }
 0x139   :  { %v419_v56 = vadd.f32 %v403_v53, %v319_v50 }
 0x13a   :  { %v369_v59 = vpop.permute.xlu1 %368 }
 0x13b   :  { %v442_v52 = vadd.f32 %v5973_v58, %v419_v56  ;;  %v405_v60 = vmul.f32 %v5956_v36, %v369_v59 }
 0x13d   :  { %v458_v63 = vmax.f32 %v442_v52, 0.0  ;;  %v421_v0 = vadd.f32 %v405_v60, %v321_v57 }
 0x13e   :  { %v373_v2 = vpop.permute.xlu1 %372 }
 0x13f   :  { %v470_v3 = vpack.c.bf16 %v459_v61, %v458_v63  ;;  %v406_v4 = vmul.f32 %v5956_v36, %v373_v2  ;;  %v444_v5 = vadd.f32 %v5973_v58, %v421_v0 }
 0x141   :  { %v422_v6 = vadd.f32 %v406_v4, %v322_v54  ;;  %4956 = vmatprep.mubr.msk.bf16.mxu0 %vm513_vm0, %v470_v3  ;;  %v460_v9 = vmax.f32 %v444_v5, 0.0  ;;  %v660_v3 = vld [vmem:[#allocation6 + $0x8] sm:$0xff] }
 0x142   :  { %v664_v4 = vld [vmem:[#allocation6 + $0x28] sm:$0xff] }
 0x143   :  { %v445_v7 = vadd.f32 %v5973_v58, %v422_v6  ;;  %v195_v8 = vpop.permute.xlu1 %194  ;;  %v4507_v5 = vcombine.low %v660_v3, %v664_v4  ;;  %v4508_v6 = vcombine.high %v660_v3, %v664_v4 }
 0x144   :  { %v224_v38 = vmul.f32 %v5950_v33, %v195_v8 }
 0x145   :  { %v461_v10 = vmax.f32 %v445_v7, 0.0  ;;  %1198 = vmatprep.subr.bf16.mxu0 %v4508_v6  ;;  %v6049_v7 = vld [vmem:[#allocation6 + $0x30] sm:$0xff] }
 0x146   :  { %v324_v48 = vadd.f32 %v308_v34, %v224_v38  ;;  %v4515_v34 = vcombine.low %v668_v20, %v672_v21  ;;  %v4524_v38 = vcombine.high %v676_v29, %v680_v30  ;;  %v694_v30 = vld [vmem:[#allocation6 + $0x118] sm:$0xff] }
 0x147   :  { %v471_v11 = vpack.c.bf16 %v461_v10, %v460_v9  ;;  %v6055_v9 = vld [vmem:[#allocation3] ss:$0 sm:$0xff] }
 0x148   :  { %v277_v13 = vpop.permute.xlu1 %276 }
 0x149   :  { %4957 = vmatmul.mubr.msk.bf16.gmra.mrb[8].mxu0 %vm513_vm0, %v471_v11  ;;  %v307_v17 = vmul.f32 %v5953_v35, %v277_v13 }
 0x14b   :  { %v323_v22 = vadd.f32 %v307_v17, %v223_v19 }
 0x14d   :  { %v200_v15 = vpop.permute.xlu1 %199  ;;  %v423_v41 = vadd.f32 %v407_v23, %v323_v22 }
 0x14e   :  { %v225_v49 = vmul.f32 %v5950_v33, %v200_v15 }
 0x14f   :  { %v446_v53 = vadd.f32 %v5973_v58, %v423_v41 }
 0x150   :  { %v325_v59 = vadd.f32 %v309_v45, %v225_v49 }
 0x151   :  { %v205_v16 = vpop.permute.xlu1 %204  ;;  %v462_v52 = vmax.f32 %v446_v53, 0.0  ;;  %v712_v53 = vld [vmem:[#allocation6 + $0x1a8] sm:$0xff] }
 0x152   :  { %v226_v39 = vmul.f32 %v5950_v33, %v205_v16 }
 0x156   :  { %v289_v24 = vpop.permute.xlu1 %288 }
 0x157   :  { %v310_v27 = vmul.f32 %v5953_v35, %v289_v24 }
 0x159   :  { %v326_v42 = vadd.f32 %v310_v27, %v226_v39  ;;  %v4516_v27 = vcombine.high %v668_v20, %v672_v21  ;;  %v684_v39 = vld [vmem:[#allocation6 + $0xc8] sm:$0xff] }
 0x15a   :  { %v4532_v41 = vcombine.high %v684_v39, %v688_v37  ;;  %v4531_v44 = vcombine.low %v684_v39, %v688_v37 }
 0x15b   :  { %v381_v46 = vpop.permute.xlu1 %380  ;;  %v426_v55 = vadd.f32 %v410_v43, %v326_v42  ;;  %v692_v42 = vld [vmem:[#allocation6 + $0x108] sm:$0xff] }
 0x15c   :  { %v408_v50 = vmul.f32 %v5956_v36, %v381_v46  ;;  %v696_v43 = vld [vmem:[#allocation6 + $0x128] sm:$0xff] }
 0x15d   :  { %v449_v60 = vadd.f32 %v5973_v58, %v426_v55  ;;  %v4540_v45 = vcombine.high %v692_v42, %v696_v43  ;;  %v700_v46 = vld [vmem:[#allocation6 + $0x148] sm:$0xff] }
 0x15e   :  { %v424_v56 = vadd.f32 %v408_v50, %v324_v48  ;;  %v4539_v48 = vcombine.low %v692_v42, %v696_v43  ;;  %v4548_v49 = vcombine.high %v700_v46, %v704_v47  ;;  %v708_v50 = vld [vmem:[#allocation6 + $0x188] sm:$0xff]  ;;  %v4547_v55 = vcombine.low %v700_v46, %v704_v47 }
 0x15f   :  { %v385_v57 = vpop.permute.xlu1 %384  ;;  %v465_v0 = vmax.f32 %v449_v60, 0.0  ;;  %v662_v60 = vld [vmem:[#allocation6 + $0x18] sm:$0xff] }
 0x160   :  { %v447_v51 = vadd.f32 %v5973_v58, %v424_v56  ;;  %v409_v35 = vmul.f32 %v5956_v36, %v385_v57  ;;  %v6047_v36 = vld [vmem:[#allocation6 + $0x10] sm:$0xff]  ;;  %v4556_v56 = vcombine.high %v708_v50, %v712_v53  ;;  %v716_v57 = vld [vmem:[#allocation6 + $0x1c8] sm:$0xff] }
 0x161   :  { %v4510_v8 = vcombine.high %v6047_v36, %v6049_v7 }
 0x162   :  { %v463_v33 = vmax.f32 %v447_v51, 0.0  ;;  %v425_v61 = vadd.f32 %v409_v35, %v325_v59  ;;  %v720_v59 = vld [vmem:[#allocation6 + $0x1e8] sm:$0xff]  ;;  %v4555_v51 = vcombine.low %v708_v50, %v712_v53  ;;  %v669_v53 = vld [vmem:[#allocation6 + $0x50] sm:$0xff] }
 0x163   :  { %1311 = vmatprep.subr.bf16.mxu1 %v4510_v8  ;;  %v4564_v35 = vcombine.high %v716_v57, %v720_v59 }
 0x164   :  { %v472_v62 = vpack.c.bf16 %v463_v33, %v462_v52  ;;  %v448_v63 = vadd.f32 %v5973_v58, %v425_v61  ;;  %v4509_v58 = vcombine.low %v6047_v36, %v6049_v7  ;;  %v666_v33 = vld [vmem:[#allocation6 + $0x38] sm:$0xff]  ;;  %v693_v36 = vld [vmem:[#allocation6 + $0x110] sm:$0xff] }
 0x165   :  { %v4512_v4 = vcombine.high %v662_v60, %v666_v33  ;;  %v697_v7 = vld [vmem:[#allocation6 + $0x130] sm:$0xff] }
 0x166   :  { %v464_v2 = vmax.f32 %v448_v63, 0.0  ;;  %4960 = vmatprep.mubr.msk.bf16.mxu0 %vm513_vm0, %v472_v62 }
 0x168   :  { %v473_v54 = vpack.c.bf16 %v465_v0, %v464_v2  ;;  %v4563_v2 = vcombine.low %v716_v57, %v720_v59  ;;  %v673_v57 = vld [vmem:[#allocation6 + $0x70] sm:$0xff]  ;;  %v710_v59 = vld [vmem:[#allocation6 + $0x198] sm:$0xff] }
 0x16a   :  { %4961 = vmatmul.mubr.msk.bf16.gmra.mrb[12].mxu0 %vm513_vm0, %v473_v54 }
 0x16b   :  { %1117 = vmatprep.mubr.bf16.mxu0 %v5712_v1 }
 0x1d6   :  { %v4950_v10 = vpop.f32.mrb[0].mxu0 }
 0x1d7   :  { %v581_v11 = vadd.f32 %v4950_v10, %v6055_v9  ;;  %v572_v12 = vpop.f32.mrb[1].mxu0 }
 0x1d8   :  { %v573_v13 = vadd.f32 %v6055_v9, %v572_v12  ;;  %v4951_v14 = vpop.f32.mrb[2].mxu0 }
 0x1d9   :  { %v584_v15 = vadd.f32 %v4951_v14, %v6055_v9  ;;  %v575_v16 = vpop.f32.mrb[3].mxu0  ;;  %v637_v18 = vmax.f32 %v581_v11, 0.0  ;;  %v670_v14 = vld [vmem:[#allocation6 + $0x58] sm:$0xff] }
 0x1da   :  { %v576_v17 = vadd.f32 %v6055_v9, %v575_v16  ;;  %v635_v22 = vmax.f32 %v573_v13, 0.0  ;;  %v4511_v16 = vcombine.low %v662_v60, %v666_v33 }
 0x1db   :  { %v638_v19 = vmax.f32 %v584_v15, 0.0  ;;  %v674_v15 = vld [vmem:[#allocation6 + $0x78] sm:$0xff] }
 0x1dc   :  { %v636_v23 = vmax.f32 %v576_v17, 0.0  ;;  %v4520_v17 = vcombine.high %v670_v14, %v674_v15  ;;  %v4519_v20 = vcombine.low %v670_v14, %v674_v15 }
 0x1dd   :  { %v6061_v24 = vpack.c.bf16 %v638_v19, %v637_v18  ;;  %v678_v18 = vld [vmem:[#allocation6 + $0x98] sm:$0xff] }
 0x1de   :  { %v6063_v26 = vpack.c.bf16 %v636_v23, %v635_v22  ;;  %v682_v19 = vld [vmem:[#allocation6 + $0xb8] sm:$0xff] }
 0x1df   :  { %v4528_v21 = vcombine.high %v678_v18, %v682_v19  ;;  %v686_v22 = vld [vmem:[#allocation6 + $0xd8] sm:$0xff] }
 0x1e0   :  { %1118 = vmatmul.mubr.bf16.vlgmr.msra.gmra.mrb[16].mxu0 %v6063_v26  ;;  %v690_v23 = vld [vmem:[#allocation6 + $0xf8] sm:$0xff] }
 0x1e1   :  { %1127 = vmatprep.mubr.bf16.mxu0 %v5712_v1  ;;  %1199 = vmatpush1.bf16.msra.mxu0 %v4507_v5  ;;  %v4536_v29 = vcombine.high %v686_v22, %v690_v23 }
 0x1e2   :  { %1200 = vmatprep.subr.bf16.mxu0 %v4516_v27  ;;  %v4527_v27 = vcombine.low %v678_v18, %v682_v19  ;;  %v701_v18 = vld [vmem:[#allocation6 + $0x150] sm:$0xff] }
 0x1e3   :  { %v705_v19 = vld [vmem:[#allocation6 + $0x170] sm:$0xff] }
 0x1e5   :  { %1201 = vmatpush1.bf16.msra.mxu0 %v4515_v34  ;;  %v698_v34 = vld [vmem:[#allocation6 + $0x138] sm:$0xff] }
 0x1e6   :  { %1202 = vmatprep.subr.bf16.mxu0 %v4524_v38  ;;  %v4535_v38 = vcombine.low %v686_v22, %v690_v23  ;;  %v4544_v39 = vcombine.high %v694_v30, %v698_v34  ;;  %v4543_v46 = vcombine.low %v694_v30, %v698_v34  ;;  %v709_v22 = vld [vmem:[#allocation6 + $0x190] sm:$0xff] }
 0x1e7   :  { %v713_v23 = vld [vmem:[#allocation6 + $0x1b0] sm:$0xff] }
 0x1e8   :  { %1128 = vmatmul.mubr.bf16.gmra.mrb[20].mxu0 %v6061_v24  ;;  %v717_v30 = vld [vmem:[#allocation6 + $0x1d0] sm:$0xff] }
 0x1e9   :  { %1203 = vmatpush1.bf16.msra.mxu0 %v4523_v40  ;;  %1137 = vmatprep.mubr.bf16.mxu0 %v5712_v1  ;;  %v702_v40 = vld [vmem:[#allocation6 + $0x158] sm:$0xff]  ;;  %v721_v34 = vld [vmem:[#allocation6 + $0x1f0] sm:$0xff] }
 0x1ea   :  { %1204 = vmatprep.subr.bf16.mxu0 %v4532_v41  ;;  %v706_v41 = vld [vmem:[#allocation6 + $0x178] sm:$0xff] }
 0x1eb   :  { %v4551_v60 = vcombine.low %v702_v40, %v706_v41 }
 0x1ed   :  { %1205 = vmatpush1.bf16.msra.mxu0 %v4531_v44 }
 0x1ee   :  { %1206 = vmatprep.subr.bf16.mxu0 %v4540_v45 }
 0x1f1   :  { %1207 = vmatpush1.bf16.msra.mxu0 %v4539_v48 }
 0x1f2   :  { %1208 = vmatprep.subr.bf16.mxu0 %v4548_v49  ;;  %v4552_v49 = vcombine.high %v702_v40, %v706_v41 }
 0x1f5   :  { %1209 = vmatpush1.bf16.msra.mxu0 %v4547_v55 }
 0x1f6   :  { %1210 = vmatprep.subr.bf16.mxu0 %v4556_v56 }
 0x1f7   :  { %v4954_v52 = vpop.f32.mrb[4].mxu0 }
 0x1f8   :  { %v597_v61 = vadd.f32 %v4954_v52, %v6055_v9  ;;  %v588_v62 = vpop.f32.mrb[5].mxu0 }
 0x1f9   :  { %v589_v63 = vadd.f32 %v6055_v9, %v588_v62  ;;  %v4955_v0 = vpop.f32.mrb[6].mxu0  ;;  %1211 = vmatpush1.bf16.msra.mxu0 %v4555_v51  ;;  %v714_v51 = vld [vmem:[#allocation6 + $0x1b8] sm:$0xff]  ;;  %v4518_v62 = vcombine.high %v669_v53, %v673_v57 }
 0x1fa   :  { %v600_v54 = vadd.f32 %v4955_v0, %v6055_v9  ;;  %v591_v3 = vpop.f32.mrb[7].mxu0  ;;  %1212 = vmatprep.subr.bf16.mxu0 %v4564_v35  ;;  %v641_v6 = vmax.f32 %v597_v61, 0.0  ;;  %v718_v0 = vld [vmem:[#allocation6 + $0x1d8] sm:$0xff] }
 0x1fb   :  { %v592_v5 = vadd.f32 %v6055_v9, %v591_v3  ;;  %v639_v10 = vmax.f32 %v589_v63, 0.0  ;;  %v4560_v63 = vcombine.high %v710_v59, %v714_v51  ;;  %v681_v3 = vld [vmem:[#allocation6 + $0xb0] sm:$0xff] }
 0x1fc   :  { %v642_v8 = vmax.f32 %v600_v54, 0.0  ;;  %v677_v54 = vld [vmem:[#allocation6 + $0x90] sm:$0xff] }
 0x1fd   :  { %v640_v11 = vmax.f32 %v592_v5, 0.0  ;;  %1213 = vmatpush1.bf16.msra.mxu0 %v4563_v2  ;;  %v722_v2 = vld [vmem:[#allocation6 + $0x1f8] sm:$0xff]  ;;  %v4517_v5 = vcombine.low %v669_v53, %v673_v57  ;;  %v4525_v15 = vcombine.low %v677_v54, %v681_v3 }
 0x1fe   :  { %v6073_v12 = vpack.c.bf16 %v642_v8, %v641_v6  ;;  %1424 = vmatprep.subr.bf16.mxu0 %v4512_v4  ;;  %v4559_v4 = vcombine.low %v710_v59, %v714_v51  ;;  %v4568_v6 = vcombine.high %v718_v0, %v722_v2  ;;  %v4526_v8 = vcombine.high %v677_v54, %v681_v3 }
 0x1ff   :  { %v6075_v13 = vpack.c.bf16 %v640_v11, %v639_v10  ;;  %v685_v10 = vld [vmem:[#allocation6 + $0xd0] sm:$0xff]  ;;  %v4567_v14 = vcombine.low %v718_v0, %v722_v2 }
 0x200   :  { %v689_v11 = vld [vmem:[#allocation6 + $0xf0] sm:$0xff] }
 0x201   :  { %1138 = vmatmul.mubr.bf16.gmra.mrb[24].mxu0 %v6075_v13 }
 0x202   :  { %1147 = vmatprep.mubr.bf16.mxu0 %v5712_v1 }
 0x209   :  { %1148 = vmatmul.mubr.bf16.gmra.mrb[28].mxu0 %v6073_v12 }
 0x20a   :  { %1230 = vmatprep.mubr.bf16.mxu0 %v5712_v1 }
 0x211   :  { %1231 = vmatmul.mubr.bf16.vlgmr.msra.gmra.mrb[32].mxu0 %v6063_v26 }
 0x212   :  { %1425 = vmatpush1.bf16.msra.mxu0 %v4511_v16  ;;  %1240 = vmatprep.mubr.bf16.mxu0 %v5712_v1  ;;  %v4534_v16 = vcombine.high %v685_v10, %v689_v11 }
 0x213   :  { %1426 = vmatprep.subr.bf16.mxu0 %v4520_v17  ;;  %v4542_v17 = vcombine.high %v693_v36, %v697_v7 }
 0x216   :  { %1427 = vmatpush1.bf16.msra.mxu0 %v4519_v20  ;;  %v4541_v20 = vcombine.low %v693_v36, %v697_v7  ;;  %v5070_v36 = vld [vmem:[#allocation8 + $0x24] ss:$16 sps:$4 sm:$0xff]   ;;  %v5073_v7 = vld [vmem:[#allocation8 + $0x2c] ss:$16 sps:$4 sm:$0xff]  }
 0x217   :  { %1428 = vmatprep.subr.bf16.mxu0 %v4528_v21  ;;  %v4550_v21 = vcombine.high %v701_v18, %v705_v19 }
 0x219   :  { %1241 = vmatmul.mubr.bf16.gmra.mrb[36].mxu0 %v6061_v24 }
 0x21a   :  { %1250 = vmatprep.mubr.bf16.mxu0 %v5712_v1  ;;  %1429 = vmatpush1.bf16.msra.mxu0 %v4527_v27  ;;  %v4549_v27 = vcombine.low %v701_v18, %v705_v19 }
 0x21b   :  { %1430 = vmatprep.subr.bf16.mxu0 %v4536_v29  ;;  %v4558_v29 = vcombine.high %v709_v22, %v713_v23 }
 0x21c   :  { %v4958_v37 = vpop.f32.mrb[8].mxu0 }
 0x21d   :  { %v613_v42 = vadd.f32 %v4958_v37, %v6055_v9  ;;  %v604_v43 = vpop.f32.mrb[9].mxu0 }
 0x21e   :  { %v605_v44 = vadd.f32 %v6055_v9, %v604_v43  ;;  %v4959_v45 = vpop.f32.mrb[10].mxu0  ;;  %1431 = vmatpush1.bf16.msra.mxu0 %v4535_v38  ;;  %v4557_v38 = vcombine.low %v709_v22, %v713_v23  ;;  %v5079_v22 = vld [vmem:[#allocation8 + $0x4c] ss:$16 sps:$4 sm:$0xff]  }
 0x21f   :  { %v616_v47 = vadd.f32 %v4959_v45, %v6055_v9  ;;  %v607_v48 = vpop.f32.mrb[11].mxu0  ;;  %1432 = vmatprep.subr.bf16.mxu0 %v4544_v39  ;;  %v645_v55 = vmax.f32 %v613_v42, 0.0  ;;  %v4566_v39 = vcombine.high %v717_v30, %v721_v34 }
 0x220   :  { %v608_v50 = vadd.f32 %v6055_v9, %v607_v48  ;;  %v643_v35 = vmax.f32 %v605_v44, 0.0  ;;  %v4565_v44 = vcombine.low %v717_v30, %v721_v34  ;;  %v5077_v30 = vld [vmem:[#allocation8 + $0x48] ss:$16 sps:$4 sm:$0xff]  }
 0x221   :  { %v646_v56 = vmax.f32 %v616_v47, 0.0  ;;  %1251 = vmatmul.mubr.bf16.gmra.mrb[40].mxu0 %v6075_v13 }
 0x222   :  { %v644_v52 = vmax.f32 %v608_v50, 0.0  ;;  %1260 = vmatprep.mubr.bf16.mxu0 %v5712_v1  ;;  %1433 = vmatpush1.bf16.msra.mxu0 %v4543_v46 }
 0x223   :  { %v6091_v33 = vpack.c.bf16 %v646_v56, %v645_v55  ;;  %1434 = vmatprep.subr.bf16.mxu0 %v4552_v49 }
 0x224   :  { %v6093_v61 = vpack.c.bf16 %v644_v52, %v643_v35 }
 0x226   :  { %1158 = vmatmul.mubr.bf16.vlgmr.msra.gmra.mrb[0].mxu1 %v6093_v61  ;;  %1435 = vmatpush1.bf16.msra.mxu0 %v4551_v60 }
 0x227   :  { %1167 = vmatprep.mubr.bf16.mxu1 %v5712_v1  ;;  %1312 = vmatpush1.bf16.msra.mxu1 %v4509_v58  ;;  %v4533_v58 = vcombine.low %v685_v10, %v689_v11  ;;  %v5064_v11 = vld [vmem:[#allocation8 + $0x4] ss:$16 sps:$4 sm:$0xff]  }
 0x228   :  { %1313 = vmatprep.subr.bf16.mxu1 %v4518_v62  ;;  %1436 = vmatprep.subr.bf16.mxu0 %v4560_v63 }
 0x229   :  { %1261 = vmatmul.mubr.bf16.gmra.mrb[44].mxu0 %v6073_v12 }
 0x22a   :  { %1270 = vmatprep.mubr.bf16.mxu0 %v5712_v1  ;;  %1437 = vmatpush1.bf16.msra.mxu0 %v4559_v4 }
 0x22b   :  { %1314 = vmatpush1.bf16.msra.mxu1 %v4517_v5  ;;  %1438 = vmatprep.subr.bf16.mxu0 %v4568_v6 }
 0x22c   :  { %1315 = vmatprep.subr.bf16.mxu1 %v4526_v8 }
 0x22e   :  { %1168 = vmatmul.mubr.bf16.gmra.mrb[4].mxu1 %v6091_v33  ;;  %1439 = vmatpush1.bf16.msra.mxu0 %v4567_v14  ;;  %v5067_v14 = vld [vmem:[#allocation8 + $0xc] ss:$16 sps:$4 sm:$0xff]  }
 0x22f   :  { %1316 = vmatpush1.bf16.msra.mxu1 %v4525_v15  ;;  %1177 = vmatprep.mubr.bf16.mxu1 %v5712_v1  ;;  %v5062_v15 = vld [vmem:[#allocation8] ss:$16 sps:$4 sm:$0xff]  }
 0x230   :  { %1317 = vmatprep.subr.bf16.mxu1 %v4534_v16  ;;  %v5065_v16 = vld [vmem:[#allocation8 + $0x8] ss:$16 sps:$4 sm:$0xff]   ;;  %3644 = vmatprep.subr.bf16.mxu0 %v5067_v14 }
 0x231   :  { %1271 = vmatmul.mubr.bf16.gmra.mrb[48].mxu0 %v6093_v61 }
 0x232   :  { %1280 = vmatprep.mubr.bf16.mxu0 %v5712_v1 }
 0x233   :  { %1318 = vmatpush1.bf16.msra.mxu1 %v4533_v58  ;;  %v5068_v58 = vld [vmem:[#allocation8 + $0x20] ss:$16 sps:$4 sm:$0xff]  }
 0x234   :  { %1319 = vmatprep.subr.bf16.mxu1 %v4542_v17  ;;  %v5071_v17 = vld [vmem:[#allocation8 + $0x28] ss:$16 sps:$4 sm:$0xff]  }
 0x237   :  { %1320 = vmatpush1.bf16.msra.mxu1 %v4541_v20 }
 0x238   :  { %1321 = vmatprep.subr.bf16.mxu1 %v4550_v21  ;;  %v5076_v21 = vld [vmem:[#allocation8 + $0x44] ss:$16 sps:$4 sm:$0xff]  }
 0x239   :  { %1281 = vmatmul.mubr.bf16.gmra.mrb[52].mxu0 %v6091_v33 }
 0x23a   :  { %1290 = vmatprep.mubr.bf16.mxu0 %v5712_v1 }
 0x23b   :  { %1322 = vmatpush1.bf16.msra.mxu1 %v4549_v27 }
 0x23c   :  { %1323 = vmatprep.subr.bf16.mxu1 %v4558_v29  ;;  %v5074_v29 = vld [vmem:[#allocation8 + $0x40] ss:$16 sps:$4 sm:$0xff]  }
 0x23d   :  { %v4962_v37 = vpop.f32.mrb[12].mxu0 }
 0x23e   :  { %v629_v40 = vadd.f32 %v4962_v37, %v6055_v9  ;;  %v620_v41 = vpop.f32.mrb[13].mxu0 }
 0x23f   :  { %v621_v42 = vadd.f32 %v6055_v9, %v620_v41  ;;  %v4963_v43 = vpop.f32.mrb[14].mxu0  ;;  %1324 = vmatpush1.bf16.msra.mxu1 %v4557_v38 }
 0x240   :  { %v632_v45 = vadd.f32 %v4963_v43, %v6055_v9  ;;  %v623_v46 = vpop.f32.mrb[15].mxu0  ;;  %1325 = vmatprep.subr.bf16.mxu1 %v4566_v39  ;;  %v649_v48 = vmax.f32 %v629_v40, 0.0  ;;  %v5085_v43 = vld [vmem:[#allocation8 + $0x6c] ss:$16 sps:$4 sm:$0xff]  }
 0x241   :  { %v624_v47 = vadd.f32 %v6055_v9, %v623_v46  ;;  %v647_v50 = vmax.f32 %v621_v42, 0.0  ;;  %v6145_v9 = vld [vmem:[%s6481_s6] sm:$0xff]  ;;  %v5083_v46 = vld [vmem:[#allocation8 + $0x68] ss:$16 sps:$4 sm:$0xff]  }
 0x242   :  { %v650_v49 = vmax.f32 %v632_v45, 0.0  ;;  %v5082_v42 = vld [vmem:[#allocation8 + $0x64] ss:$16 sps:$4 sm:$0xff]   ;;  %v5080_v45 = vld [vmem:[#allocation8 + $0x60] ss:$16 sps:$4 sm:$0xff]  }
 0x243   :  { %v648_v53 = vmax.f32 %v624_v47, 0.0  ;;  %1326 = vmatpush1.bf16.msra.mxu1 %v4565_v44 }
 0x244   :  { %v658_v55 = vpack.c.bf16 %v650_v49, %v649_v48  ;;  %3480 = vmatprep.subr.bf16.mxu1 %v5064_v11  ;;  %v5103_v11 = vld [vmem:[#allocation8 + $0xcc] ss:$16 sps:$4 sm:$0xff]  }
 0x245   :  { %v657_v56 = vpack.c.bf16 %v648_v53, %v647_v50  ;;  %v5088_v50 = vld [vmem:[#allocation8 + $0x84] ss:$16 sps:$4 sm:$0xff]   ;;  %v5091_v53 = vld [vmem:[#allocation8 + $0x8c] ss:$16 sps:$4 sm:$0xff]  }
 0x247   :  { %1178 = vmatmul.mubr.bf16.gmra.mrb[8].mxu1 %v657_v56  ;;  %1291 = vmatmul.mubr.bf16.gmra.mrb[56].mxu0 %v657_v56 }
 0x248   :  { %1187 = vmatprep.mubr.bf16.mxu1 %v5712_v1  ;;  %1300 = vmatprep.mubr.bf16.mxu0 %v5712_v1 }
 0x24f   :  { %1188 = vmatmul.mubr.bf16.gmra.mrb[12].mxu1 %v658_v55  ;;  %1301 = vmatmul.mubr.bf16.gmra.mrb[60].mxu0 %v658_v55 }
 0x250   :  { %1343 = vmatprep.mubr.bf16.mxu1 %v5712_v1  ;;  %1456 = vmatprep.mubr.bf16.mxu0 %v5712_v1 }
 0x257   :  { %1344 = vmatmul.mubr.bf16.vlgmr.msra.gmra.mrb[16].mxu1 %v6063_v26  ;;  %1457 = vmatmul.mubr.bf16.vlgmr.msra.gmra.mrb[64].mxu0 %v6063_v26 }
 0x258   :  { %1353 = vmatprep.mubr.bf16.mxu1 %v5712_v1  ;;  %1466 = vmatprep.mubr.bf16.mxu0 %v5712_v1 }
 0x259   :  { %3481 = vmatpush1.bf16.msra.mxu1 %v5062_v15  ;;  %3645 = vmatpush1.bf16.msra.mxu0 %v5065_v16  ;;  %v5098_v16 = vld [vmem:[#allocation8 + $0xc0] ss:$16 sps:$4 sm:$0xff]  }
 0x25a   :  { %3482 = vmatprep.subr.bf16.mxu1 %v5070_v36  ;;  %3646 = vmatprep.subr.bf16.mxu0 %v5073_v7  ;;  %v5101_v36 = vld [vmem:[#allocation8 + $0xc8] ss:$16 sps:$4 sm:$0xff]  }
 0x25d   :  { %3483 = vmatpush1.bf16.msra.mxu1 %v5068_v58  ;;  %3647 = vmatpush1.bf16.msra.mxu0 %v5071_v17 }
 0x25e   :  { %3484 = vmatprep.subr.bf16.mxu1 %v5076_v21  ;;  %3648 = vmatprep.subr.bf16.mxu0 %v5079_v22 }
 0x25f   :  { %1354 = vmatmul.mubr.bf16.gmra.mrb[20].mxu1 %v6061_v24  ;;  %1467 = vmatmul.mubr.bf16.gmra.mrb[68].mxu0 %v6061_v24  ;;  %v6149_v24 = vrot.slane %v6145_v9, %v5938_v28 }
 0x260   :  { %1363 = vmatprep.mubr.bf16.mxu1 %v5712_v1  ;;  %1476 = vmatprep.mubr.bf16.mxu0 %v5712_v1 }
 0x261   :  { %3485 = vmatpush1.bf16.msra.mxu1 %v5074_v29  ;;  %3649 = vmatpush1.bf16.msra.mxu0 %v5077_v30  ;;  %v5109_v29 = vld [vmem:[#allocation8 + $0xec] ss:$16 sps:$4 sm:$0xff]  }
 0x262   :  { %3486 = vmatprep.subr.bf16.mxu1 %v5082_v42  ;;  %3650 = vmatprep.subr.bf16.mxu0 %v5085_v43 }
 0x265   :  { %3487 = vmatpush1.bf16.msra.mxu1 %v5080_v45  ;;  %3651 = vmatpush1.bf16.msra.mxu0 %v5083_v46  ;;  %v5112_v45 = vld [vmem:[#allocation8 + $0x104] ss:$16 sps:$4 sm:$0xff]   ;;  %v5115_v46 = vld [vmem:[#allocation8 + $0x10c] ss:$16 sps:$4 sm:$0xff]  }
 0x266   :  { %3488 = vmatprep.subr.bf16.mxu1 %v5088_v50  ;;  %3652 = vmatprep.subr.bf16.mxu0 %v5091_v53  ;;  %v5110_v50 = vld [vmem:[#allocation8 + $0x100] ss:$16 sps:$4 sm:$0xff]   ;;  %v5113_v53 = vld [vmem:[#allocation8 + $0x108] ss:$16 sps:$4 sm:$0xff]  }
 0x267   :  { %1364 = vmatmul.mubr.bf16.gmra.mrb[24].mxu1 %v6075_v13  ;;  %1477 = vmatmul.mubr.bf16.gmra.mrb[72].mxu0 %v6075_v13 }
 0x268   :  { %1373 = vmatprep.mubr.bf16.mxu1 %v5712_v1  ;;  %1486 = vmatprep.mubr.bf16.mxu0 %v5712_v1 }
 0x26f   :  { %1374 = vmatmul.mubr.bf16.gmra.mrb[28].mxu1 %v6073_v12  ;;  %1487 = vmatmul.mubr.bf16.gmra.mrb[76].mxu0 %v6073_v12  ;;  %v6153_v12 = vrot.slane %v6145_v9, %v5944_v31 }
 0x270   :  { %1383 = vmatprep.mubr.bf16.mxu1 %v5712_v1  ;;  %1496 = vmatprep.mubr.bf16.mxu0 %v5712_v1 }
 0x277   :  { %1384 = vmatmul.mubr.bf16.gmra.mrb[32].mxu1 %v6093_v61  ;;  %1497 = vmatmul.mubr.bf16.gmra.mrb[80].mxu0 %v6093_v61 }
 0x278   :  { %1393 = vmatprep.mubr.bf16.mxu1 %v5712_v1  ;;  %1506 = vmatprep.mubr.bf16.mxu0 %v5712_v1 }
 0x27f   :  { %1394 = vmatmul.mubr.bf16.gmra.mrb[36].mxu1 %v6091_v33  ;;  %1507 = vmatmul.mubr.bf16.gmra.mrb[84].mxu0 %v6091_v33 }
 0x280   :  { %1403 = vmatprep.mubr.bf16.mxu1 %v5712_v1  ;;  %1516 = vmatprep.mubr.bf16.mxu0 %v5712_v1 }
 0x287   :  { %1404 = vmatmul.mubr.bf16.gmra.mrb[40].mxu1 %v657_v56  ;;  %1517 = vmatmul.mubr.bf16.gmra.mrb[88].mxu0 %v657_v56 }
 0x288   :  { %1413 = vmatprep.mubr.bf16.mxu1 %v5712_v1  ;;  %1526 = vmatprep.mubr.bf16.mxu0 %v5712_v1 }
 0x28f   :  { %1414 = vmatmul.mubr.bf16.gmra.mrb[44].mxu1 %v658_v55  ;;  %1527 = vmatmul.mubr.bf16.gmra.mrb[92].mxu0 %v658_v55 }
 0x2b3   :  { %v1119_v26 = vpop.f32.mrb[16].mxu0 }
 0x2b4   :  { %v1121_v13 = vpop.f32.mrb[17].mxu0  ;;  %v1120_v1 = vadd.f32 %v1119_v26, %v6149_v24  ;;  %v5086_v26 = vld [vmem:[#allocation8 + $0x80] ss:$16 sps:$4 sm:$0xff]  }
 0x2b5   :  { %v1123_v57 = vpop.f32.mrb[18].mxu0  ;;  %v1122_v35 = vadd.f32 %v1121_v13, %v6153_v12  ;;  %v5089_v13 = vld [vmem:[#allocation8 + $0x88] ss:$16 sps:$4 sm:$0xff]   ;;  %3489 = vmatpush1.bf16.msra.mxu1 %v5086_v26 }
 0x2b6   :  { %v1124_v59 = vadd.f32 %v1123_v57, %v6149_v24  ;;  %v1125_v51 = vpop.f32.mrb[19].mxu0  ;;  %3653 = vmatpush1.bf16.msra.mxu0 %v5089_v13 }
 0x2b7   :  { %v1126_v52 = vadd.f32 %v1125_v51, %v6153_v12 }
 0x2b8   :  { %v1537_v60 = vmax.f32 %v1120_v1, %v1124_v59 }
 0x2b9   :  { %v1550_v33 = vmax.f32 %v1122_v35, %v1126_v52  ;;  %v739_v52 = vsub.s32 3, %v5935_v25 }
 0x2bb   :  { %v1129_v61 = vpop.f32.mrb[20].mxu0 }
 0x2bc   :  { %v1130_v62 = vadd.f32 %v1129_v61, %v6149_v24  ;;  %v1131_v63 = vpop.f32.mrb[21].mxu0  ;;  %v5097_v61 = vld [vmem:[#allocation8 + $0xac] ss:$16 sps:$4 sm:$0xff]  }
 0x2bd   :  { %v1132_v0 = vadd.f32 %v1131_v63, %v6153_v12  ;;  %v1133_v2 = vpop.f32.mrb[22].mxu0  ;;  %v5092_v63 = vld [vmem:[#allocation8 + $0xa0] ss:$16 sps:$4 sm:$0xff]   ;;  %3654 = vmatprep.subr.bf16.mxu0 %v5097_v61  ;;  %v5119_v61 = vld [vmem:[#allocation8 + $0x128] ss:$16 sps:$4 sm:$0xff]  }
 0x2be   :  { %v1538_v54 = vmax.f32 %v1537_v60, %v1130_v62  ;;  %v1134_v3 = vadd.f32 %v1133_v2, %v6149_v24  ;;  %v1135_v4 = vpop.f32.mrb[23].mxu0 }
 0x2bf   :  { %v1551_v5 = vmax.f32 %v1550_v33, %v1132_v0  ;;  %v1136_v6 = vadd.f32 %v1135_v4, %v6153_v12  ;;  %v5094_v33 = vld [vmem:[#allocation8 + $0xa4] ss:$16 sps:$4 sm:$0xff]   ;;  %v5095_v0 = vld [vmem:[#allocation8 + $0xa8] ss:$16 sps:$4 sm:$0xff]  }
 0x2c0   :  { %v1539_v8 = vmax.f32 %v1538_v54, %v1134_v3  ;;  %v6174_v54 = vrot.slane %v6145_v9, %v5947_v32  ;;  %3490 = vmatprep.subr.bf16.mxu1 %v5094_v33  ;;  %3655 = vmatpush1.bf16.msra.mxu0 %v5095_v0  ;;  %v5116_v33 = vld [vmem:[#allocation8 + $0x120] ss:$16 sps:$4 sm:$0xff]  }
 0x2c1   :  { %v1552_v10 = vmax.f32 %v1551_v5, %v1136_v6  ;;  %v6179_v5 = vrot.slane %v6145_v9, %v739_v52  ;;  %3491 = vmatpush1.bf16.msra.mxu1 %v5092_v63  ;;  %3656 = vmatprep.subr.bf16.mxu0 %v5103_v11 }
 0x2c4   :  { %3657 = vmatpush1.bf16.msra.mxu0 %v5101_v36 }
 0x2c5   :  { %3658 = vmatprep.subr.bf16.mxu0 %v5109_v29 }
 0x2d4   :  { %v1139_v18 = vpop.f32.mrb[24].mxu0 }
 0x2d5   :  { %v1140_v19 = vadd.f32 %v1139_v18, %v6149_v24  ;;  %v1141_v20 = vpop.f32.mrb[25].mxu0 }
 0x2d6   :  { %v1142_v23 = vadd.f32 %v1141_v20, %v6153_v12  ;;  %v1143_v27 = vpop.f32.mrb[26].mxu0 }
 0x2d7   :  { %v1540_v34 = vmax.f32 %v1539_v8, %v1140_v19  ;;  %v1144_v38 = vadd.f32 %v1143_v27, %v6149_v24  ;;  %v1145_v39 = vpop.f32.mrb[27].mxu0  ;;  %v5106_v27 = vld [vmem:[#allocation8 + $0xe4] ss:$16 sps:$4 sm:$0xff]  }
 0x2d8   :  { %v1553_v37 = vmax.f32 %v1552_v10, %v1142_v23  ;;  %v1146_v40 = vadd.f32 %v1145_v39, %v6153_v12  ;;  %v5100_v10 = vld [vmem:[#allocation8 + $0xc4] ss:$16 sps:$4 sm:$0xff]   ;;  %v5107_v39 = vld [vmem:[#allocation8 + $0xe8] ss:$16 sps:$4 sm:$0xff]  }
 0x2d9   :  { %v1541_v41 = vmax.f32 %v1540_v34, %v1144_v38  ;;  %3492 = vmatprep.subr.bf16.mxu1 %v5100_v10  ;;  %v5104_v38 = vld [vmem:[#allocation8 + $0xe0] ss:$16 sps:$4 sm:$0xff]   ;;  %3659 = vmatpush1.bf16.msra.mxu0 %v5107_v39  ;;  %v5125_v10 = vld [vmem:[#allocation8 + $0x148] ss:$16 sps:$4 sm:$0xff]  }
 0x2da   :  { %v1554_v44 = vmax.f32 %v1553_v37, %v1146_v40  ;;  %3493 = vmatpush1.bf16.msra.mxu1 %v5098_v16  ;;  %3660 = vmatprep.subr.bf16.mxu0 %v5115_v46 }
 0x2db   :  { %3494 = vmatprep.subr.bf16.mxu1 %v5106_v27 }
 0x2dc   :  { %v1149_v47 = vpop.f32.mrb[28].mxu0 }
 0x2dd   :  { %v1150_v48 = vadd.f32 %v1149_v47, %v6149_v24  ;;  %v1151_v49 = vpop.f32.mrb[29].mxu0  ;;  %3661 = vmatpush1.bf16.msra.mxu0 %v5113_v53 }
 0x2de   :  { %v1152_v55 = vadd.f32 %v1151_v49, %v6153_v12  ;;  %v1153_v56 = vpop.f32.mrb[30].mxu0  ;;  %3495 = vmatpush1.bf16.msra.mxu1 %v5104_v38 }
 0x2df   :  { %v1542_v57 = vmax.f32 %v1541_v41, %v1150_v48  ;;  %v1154_v1 = vadd.f32 %v1153_v56, %v6149_v24  ;;  %v1155_v59 = vpop.f32.mrb[31].mxu0  ;;  %3496 = vmatprep.subr.bf16.mxu1 %v5112_v45 }
 0x2e0   :  { %v1555_v51 = vmax.f32 %v1554_v44, %v1152_v55  ;;  %v1156_v35 = vadd.f32 %v1155_v59, %v6153_v12 }
 0x2e1   :  { %v1543_v60 = vmax.f32 %v1542_v57, %v1154_v1 }
 0x2e2   :  { %v1556_v62 = vmax.f32 %v1555_v51, %v1156_v35  ;;  %3497 = vmatpush1.bf16.msra.mxu1 %v5110_v50  ;;  %v5118_v51 = vld [vmem:[#allocation8 + $0x124] ss:$16 sps:$4 sm:$0xff]   ;;  %v5121_v35 = vld [vmem:[#allocation8 + $0x12c] ss:$16 sps:$4 sm:$0xff]  }
 0x2e3   :  { %v1544_v2 = vrot.slane %v1543_v60, 4  ;;  %3498 = vmatprep.subr.bf16.mxu1 %v5118_v51  ;;  %3662 = vmatprep.subr.bf16.mxu0 %v5121_v35  ;;  %v5143_v51 = vld [vmem:[#allocation8 + $0x1a8] ss:$16 sps:$4 sm:$0xff]  }
 0x2e4   :  { %v1557_v3 = vrot.slane %v1556_v62, 4  ;;  %v1232_v4 = vpop.f32.mrb[32].mxu0  ;;  %3663 = vmatpush1.bf16.msra.mxu0 %v5119_v61 }
 0x2e5   :  { %v1545_v6 = vmax.f32 %v1543_v60, %v1544_v2  ;;  %v1234_v8 = vpop.f32.mrb[33].mxu0  ;;  %v1233_v58 = vadd.f32 %v1232_v4, %v6174_v54  ;;  %v5124_v2 = vld [vmem:[#allocation8 + $0x144] ss:$16 sps:$4 sm:$0xff]  }
 0x2e6   :  { %v1558_v14 = vmax.f32 %v1556_v62, %v1557_v3  ;;  %v1236_v15 = vpop.f32.mrb[34].mxu0  ;;  %v1235_v20 = vadd.f32 %v1234_v8, %v6179_v5  ;;  %3499 = vmatpush1.bf16.msra.mxu1 %v5116_v33  ;;  %v5127_v3 = vld [vmem:[#allocation8 + $0x14c] ss:$16 sps:$4 sm:$0xff]   ;;  %v5122_v8 = vld [vmem:[#allocation8 + $0x140] ss:$16 sps:$4 sm:$0xff]  }
 0x2e7   :  { %v1546_v7 = vrot.slane %v1545_v6, 2  ;;  %v1237_v17 = vadd.f32 %v1236_v15, %v6174_v54  ;;  %v1238_v18 = vpop.f32.mrb[35].mxu0  ;;  %3500 = vmatprep.subr.bf16.mxu1 %v5124_v2  ;;  %3664 = vmatprep.subr.bf16.mxu0 %v5127_v3  ;;  %v5145_v33 = vld [vmem:[#allocation8 + $0x1ac] ss:$16 sps:$4 sm:$0xff]  }
 0x2e8   :  { %v1559_v19 = vrot.slane %v1558_v14, 2  ;;  %v1239_v21 = vadd.f32 %v1238_v18, %v6179_v5  ;;  %3665 = vmatpush1.bf16.msra.mxu0 %v5125_v10  ;;  %v5133_v18 = vld [vmem:[#allocation8 + $0x16c] ss:$16 sps:$4 sm:$0xff]  }
 0x2e9   :  { %v1547_v22 = vmax.f32 %v1545_v6, %v1546_v7  ;;  %v1563_v23 = vmax.f32 %v1233_v58, %v1237_v17  ;;  %v5130_v17 = vld [vmem:[#allocation8 + $0x164] ss:$16 sps:$4 sm:$0xff]   ;;  %3666 = vmatprep.subr.bf16.mxu0 %v5133_v18 }
 0x2ea   :  { %v1560_v30 = vmax.f32 %v1558_v14, %v1559_v19  ;;  %v1576_v34 = vmax.f32 %v1235_v20, %v1239_v21  ;;  %3501 = vmatpush1.bf16.msra.mxu1 %v5122_v8  ;;  %v5128_v21 = vld [vmem:[#allocation8 + $0x160] ss:$16 sps:$4 sm:$0xff]   ;;  %v5151_v8 = vld [vmem:[#allocation8 + $0x1cc] ss:$16 sps:$4 sm:$0xff]  }
 0x2eb   :  { %v1548_v37 = vrot.slane %v1547_v22, 1  ;;  %3502 = vmatprep.subr.bf16.mxu1 %v5130_v17 }
 0x2ec   :  { %v1561_v40 = vrot.slane %v1560_v30, 1  ;;  %v1242_v41 = vpop.f32.mrb[36].mxu0 }
 0x2ed   :  { %v6185_v42 = vmax.f32 %v1547_v22, %v1548_v37  ;;  %v1243_v43 = vadd.f32 %v1242_v41, %v6174_v54  ;;  %v1244_v44 = vpop.f32.mrb[37].mxu0  ;;  %v5131_v22 = vld [vmem:[#allocation8 + $0x168] ss:$16 sps:$4 sm:$0xff]   ;;  %v5136_v41 = vld [vmem:[#allocation8 + $0x184] ss:$16 sps:$4 sm:$0xff]  }
 0x2ee   :  { %v6188_v47 = vmax.f32 %v1560_v30, %v1561_v40  ;;  %v1245_v48 = vadd.f32 %v1244_v44, %v6179_v5  ;;  %v1246_v49 = vpop.f32.mrb[38].mxu0  ;;  %3503 = vmatpush1.bf16.msra.mxu1 %v5128_v21  ;;  %3667 = vmatpush1.bf16.msra.mxu0 %v5131_v22  ;;  %v5714_v21 = vmov 1966171168  }
 0x2ef   :  { %v1564_v55 = vmax.f32 %v1563_v23, %v1243_v43  ;;  %v1247_v56 = vadd.f32 %v1246_v49, %v6174_v54  ;;  %v1248_v26 = vpop.f32.mrb[39].mxu0  ;;  %v5139_v43 = vld [vmem:[#allocation8 + $0x18c] ss:$16 sps:$4 sm:$0xff]   ;;  %v5137_v49 = vld [vmem:[#allocation8 + $0x188] ss:$16 sps:$4 sm:$0xff]   ;;  %3504 = vmatprep.subr.bf16.mxu1 %v5136_v41  ;;  %v1654_v22 = vunpack.c.l.s4 %v5714_v21 }
 0x2f0   :  { %v1649_v13 = vcombine.low %v6185_v42, %v6188_v47  ;;  %v1577_v57 = vmax.f32 %v1576_v34, %v1245_v48  ;;  %v1249_v1 = vadd.f32 %v1248_v26, %v6179_v5  ;;  %v5134_v48 = vld [vmem:[#allocation8 + $0x180] ss:$16 sps:$4 sm:$0xff]   ;;  %3668 = vmatprep.subr.bf16.mxu0 %v5139_v43 }
 0x2f1   :  { %v1565_v59 = vmax.f32 %v1564_v55, %v1247_v56 }
 0x2f2   :  { %v1578_v60 = vmax.f32 %v1577_v57, %v1249_v1  ;;  %3505 = vmatpush1.bf16.msra.mxu1 %v5134_v48  ;;  %3669 = vmatpush1.bf16.msra.mxu0 %v5137_v49  ;;  %v5140_v1 = vld [vmem:[#allocation8 + $0x1a0] ss:$16 sps:$4 sm:$0xff]   ;;  %v1655_v49 = vunpack.c.0.s8 %v1654_v22 }
 0x2f3   :  { %3670 = vmatprep.subr.bf16.mxu0 %v5145_v33 }
 0x2f4   :  { %v1252_v62 = vpop.f32.mrb[40].mxu0 }
 0x2f5   :  { %v1253_v63 = vadd.f32 %v1252_v62, %v6174_v54  ;;  %v1254_v0 = vpop.f32.mrb[41].mxu0 }
 0x2f6   :  { %v1255_v4 = vadd.f32 %v1254_v0, %v6179_v5  ;;  %v1256_v6 = vpop.f32.mrb[42].mxu0  ;;  %v5148_v0 = vld [vmem:[#allocation8 + $0x1c4] ss:$16 sps:$4 sm:$0xff]   ;;  %3671 = vmatpush1.bf16.msra.mxu0 %v5143_v51 }
 0x2f7   :  { %v1566_v11 = vmax.f32 %v1565_v59, %v1253_v63  ;;  %v1257_v14 = vadd.f32 %v1256_v6, %v6174_v54  ;;  %v1258_v15 = vpop.f32.mrb[43].mxu0  ;;  %v5142_v59 = vld [vmem:[#allocation8 + $0x1a4] ss:$16 sps:$4 sm:$0xff]   ;;  %v5146_v6 = vld [vmem:[#allocation8 + $0x1c0] ss:$16 sps:$4 sm:$0xff]   ;;  %3672 = vmatprep.subr.bf16.mxu0 %v5151_v8 }
 0x2f8   :  { %v1579_v16 = vmax.f32 %v1578_v60, %v1255_v4  ;;  %v1259_v36 = vadd.f32 %v1258_v15, %v6179_v5  ;;  %3506 = vmatprep.subr.bf16.mxu1 %v5142_v59  ;;  %v5160_v51 = vld [vmem:[#allocation8 + $0x204] ss:$16 sps:$4 sm:$0xff]  }
 0x2f9   :  { %v1567_v7 = vmax.f32 %v1566_v11, %v1257_v14  ;;  %v1159_v58 = vpop.f32.mrb[0].mxu1  ;;  %3507 = vmatpush1.bf16.msra.mxu1 %v5140_v1 }
 0x2fa   :  { %v1580_v19 = vmax.f32 %v1579_v16, %v1259_v36  ;;  %v1161_v20 = vpop.f32.mrb[1].mxu1  ;;  %v1160_v27 = vadd.f32 %v1159_v58, %v6149_v24  ;;  %v5149_v36 = vld [vmem:[#allocation8 + $0x1c8] ss:$16 sps:$4 sm:$0xff]   ;;  %3508 = vmatprep.subr.bf16.mxu1 %v5148_v0 }
 0x2fb   :  { %v1163_v23 = vpop.f32.mrb[2].mxu1  ;;  %v1162_v38 = vadd.f32 %v1161_v20, %v6153_v12  ;;  %v5157_v20 = vld [vmem:[#allocation8 + $0x1ec] ss:$16 sps:$4 sm:$0xff]   ;;  %3673 = vmatpush1.bf16.msra.mxu0 %v5149_v36 }
 0x2fc   :  { %v1164_v29 = vadd.f32 %v1163_v23, %v6149_v24  ;;  %v1165_v30 = vpop.f32.mrb[3].mxu1  ;;  %v1262_v34 = vpop.f32.mrb[44].mxu0  ;;  %3674 = vmatprep.subr.bf16.mxu0 %v5157_v20 }
 0x2fd   :  { %v1166_v39 = vadd.f32 %v1165_v30, %v6153_v12  ;;  %v1263_v37 = vadd.f32 %v1262_v34, %v6174_v54  ;;  %v1264_v40 = vpop.f32.mrb[45].mxu0  ;;  %3509 = vmatpush1.bf16.msra.mxu1 %v5146_v6 }
 0x2fe   :  { %v1700_v44 = vmax.f32 %v1160_v27, %v1164_v29  ;;  %v1265_v45 = vadd.f32 %v1264_v40, %v6179_v5  ;;  %v1266_v46 = vpop.f32.mrb[46].mxu0 }
 0x2ff   :  { %v1713_v50 = vmax.f32 %v1162_v38, %v1166_v39  ;;  %v1568_v53 = vmax.f32 %v1567_v7, %v1263_v37  ;;  %v1267_v55 = vadd.f32 %v1266_v46, %v6174_v54  ;;  %v1268_v56 = vpop.f32.mrb[47].mxu0 }
 0x300   :  { %v1581_v26 = vmax.f32 %v1580_v19, %v1265_v45  ;;  %v1269_v57 = vadd.f32 %v1268_v56, %v6179_v5  ;;  %v5154_v19 = vld [vmem:[#allocation8 + $0x1e4] ss:$16 sps:$4 sm:$0xff]   ;;  %v5155_v45 = vld [vmem:[#allocation8 + $0x1e8] ss:$16 sps:$4 sm:$0xff]  }
 0x301   :  { %v1569_v35 = vmax.f32 %v1568_v53, %v1267_v55  ;;  %v1169_v60 = vpop.f32.mrb[4].mxu1  ;;  %3510 = vmatprep.subr.bf16.mxu1 %v5154_v19  ;;  %3675 = vmatpush1.bf16.msra.mxu0 %v5155_v45 }
 0x302   :  { %v1582_v61 = vmax.f32 %v1581_v26, %v1269_v57  ;;  %v1170_v62 = vadd.f32 %v1169_v60, %v6149_v24  ;;  %v1171_v63 = vpop.f32.mrb[5].mxu1  ;;  %v6229_v60 = vsub.s32 %v1655_v49, %v5935_v25 }
 0x303   :  { %v1570_v2 = vrot.slane %v1569_v35, 4  ;;  %v1172_v3 = vadd.f32 %v1171_v63, %v6153_v12  ;;  %v1173_v4 = vpop.f32.mrb[6].mxu1 }
 0x304   :  { %v1583_v10 = vrot.slane %v1582_v61, 4  ;;  %v6209_v11 = vmax.f32 %v1700_v44, %v1170_v62  ;;  %v6212_v14 = vadd.f32 %v1173_v4, %v6149_v24  ;;  %v1175_v15 = vpop.f32.mrb[7].mxu1  ;;  %v1272_v16 = vpop.f32.mrb[48].mxu0  ;;  %v5152_v44 = vld [vmem:[#allocation8 + $0x1e0] ss:$16 sps:$4 sm:$0xff]  }
 0x305   :  { %v1571_v7 = vmax.f32 %v1569_v35, %v1570_v2  ;;  %v6214_v58 = vmax.f32 %v1713_v50, %v1172_v3  ;;  %v6217_v17 = vadd.f32 %v1175_v15, %v6153_v12  ;;  %v1274_v18 = vpop.f32.mrb[49].mxu0  ;;  %v1273_v38 = vadd.f32 %v1272_v16, %v6174_v54  ;;  %3511 = vmatpush1.bf16.msra.mxu1 %v5152_v44  ;;  %v5163_v35 = vld [vmem:[#allocation8 + $0x20c] ss:$16 sps:$4 sm:$0xff]  }
 0x306   :  { %v1584_v23 = vmax.f32 %v1582_v61, %v1583_v10  ;;  %v1702_v27 = vmax.f32 %v6209_v11, %v6212_v14  ;;  %v1276_v29 = vpop.f32.mrb[50].mxu0  ;;  %v1275_v41 = vadd.f32 %v1274_v18, %v6179_v5  ;;  %3521 = vmatprep.subr.bf16.mxu1 %v5160_v51  ;;  %3685 = vmatprep.subr.bf16.mxu0 %v5163_v35  ;;  %v755_v51 = vsub.s32 7, %v5935_v25 }
 0x307   :  { %v1572_v30 = vrot.slane %v1571_v7, 2  ;;  %v1715_v34 = vmax.f32 %v6214_v58, %v6217_v17  ;;  %v1277_v39 = vadd.f32 %v1276_v29, %v6174_v54  ;;  %v1278_v37 = vpop.f32.mrb[51].mxu0  ;;  %v6238_v10 = vrot.slane %v1649_v13, %v6229_v60 }
 0x308   :  { %v1585_v40 = vrot.slane %v1584_v23, 2  ;;  %v1279_v43 = vadd.f32 %v1278_v37, %v6179_v5 }
 0x309   :  { %v1573_v46 = vmax.f32 %v1571_v7, %v1572_v30  ;;  %v1726_v48 = vmax.f32 %v1273_v38, %v1277_v39 }
 0x30a   :  { %v1586_v50 = vmax.f32 %v1584_v23, %v1585_v40  ;;  %v1739_v53 = vmax.f32 %v1275_v41, %v1279_v43 }
 0x30b   :  { %v1574_v55 = vrot.slane %v1573_v46, 1 }
 0x30c   :  { %v1587_v56 = vrot.slane %v1586_v50, 1  ;;  %v1282_v26 = vpop.f32.mrb[52].mxu0 }
 0x30d   :  { %v1575_v57 = vmax.f32 %v1573_v46, %v1574_v55  ;;  %v1283_v1 = vadd.f32 %v1282_v26, %v6174_v54  ;;  %v1284_v59 = vpop.f32.mrb[53].mxu0  ;;  %v743_v55 = vsub.s32 4, %v5935_v25 }
 0x30e   :  { %v1588_v33 = vmax.f32 %v1586_v50, %v1587_v56  ;;  %v1285_v61 = vadd.f32 %v1284_v59, %v6179_v5  ;;  %v1286_v62 = vpop.f32.mrb[54].mxu0  ;;  %v747_v59 = vsub.s32 5, %v5935_v25 }
 0x30f   :  { %v1727_v63 = vmax.f32 %v1726_v48, %v1283_v1  ;;  %v1287_v0 = vadd.f32 %v1286_v62, %v6174_v54  ;;  %v1288_v2 = vpop.f32.mrb[55].mxu0 }
 0x310   :  { %v1650_v3 = vcombine.low %v1575_v57, %v1588_v33  ;;  %v1740_v4 = vmax.f32 %v1739_v53, %v1285_v61  ;;  %v1289_v6 = vadd.f32 %v1288_v2, %v6179_v5 }
 0x311   :  { %v1728_v8 = vmax.f32 %v1727_v63, %v1287_v0 }
 0x312   :  { %v6241_v11 = vrot.slane %v1650_v3, %v6229_v60  ;;  %v1741_v14 = vmax.f32 %v1740_v4, %v1289_v6 }
 0x314   :  { %v1681_v15 = vcombine.low %v6238_v10, %v6241_v11 }
 0x31a   :  { %v1179_v16 = vpop.f32.mrb[8].mxu1  ;;  %v1292_v36 = vpop.f32.mrb[56].mxu0 }
 0x31b   :  { %v1180_v7 = vadd.f32 %v1179_v16, %v6149_v24  ;;  %v1293_v58 = vadd.f32 %v1292_v36, %v6174_v54  ;;  %v1181_v17 = vpop.f32.mrb[9].mxu1  ;;  %v1294_v18 = vpop.f32.mrb[57].mxu0  ;;  %v6266_v16 = vrot.slane %v6145_v9, %v743_v55 }
 0x31c   :  { %v1182_v19 = vadd.f32 %v1181_v17, %v6153_v12  ;;  %v1295_v42 = vadd.f32 %v1294_v18, %v6179_v5  ;;  %v1183_v47 = vpop.f32.mrb[10].mxu1  ;;  %v1296_v13 = vpop.f32.mrb[58].mxu0 }
 0x31d   :  { %v1703_v20 = vmax.f32 %v1702_v27, %v1180_v7  ;;  %v1729_v21 = vmax.f32 %v1728_v8, %v1293_v58  ;;  %v1184_v22 = vadd.f32 %v1183_v47, %v6149_v24  ;;  %v1297_v23 = vadd.f32 %v1296_v13, %v6174_v54  ;;  %v1185_v29 = vpop.f32.mrb[11].mxu1  ;;  %v1298_v30 = vpop.f32.mrb[59].mxu0 }
 0x31e   :  { %v1716_v38 = vmax.f32 %v1715_v34, %v1182_v19  ;;  %v1742_v39 = vmax.f32 %v1741_v14, %v1295_v42  ;;  %v1186_v37 = vadd.f32 %v1185_v29, %v6153_v12  ;;  %v1299_v40 = vadd.f32 %v1298_v30, %v6179_v5 }
 0x31f   :  { %v1704_v41 = vmax.f32 %v1703_v20, %v1184_v22  ;;  %v1730_v43 = vmax.f32 %v1729_v21, %v1297_v23  ;;  %v751_v34 = vsub.s32 6, %v5935_v25  ;;  %v6275_v58 = vrot.slane %v6145_v9, %v755_v51 }
 0x320   :  { %v1717_v44 = vmax.f32 %v1716_v38, %v1186_v37  ;;  %v1743_v45 = vmax.f32 %v1742_v39, %v1299_v40 }
 0x321   :  { %v6269_v36 = vrot.slane %v6145_v9, %v751_v34 }
 0x322   :  { %v1189_v46 = vpop.f32.mrb[12].mxu1  ;;  %v1302_v48 = vpop.f32.mrb[60].mxu0 }
 0x323   :  { %v1190_v27 = vadd.f32 %v1189_v46, %v6149_v24  ;;  %v1303_v49 = vadd.f32 %v1302_v48, %v6174_v54  ;;  %v1191_v50 = vpop.f32.mrb[13].mxu1  ;;  %v1304_v53 = vpop.f32.mrb[61].mxu0 }
 0x324   :  { %v1192_v56 = vadd.f32 %v1191_v50, %v6153_v12  ;;  %v1305_v26 = vadd.f32 %v1304_v53, %v6179_v5  ;;  %v1193_v57 = vpop.f32.mrb[14].mxu1  ;;  %v1306_v1 = vpop.f32.mrb[62].mxu0 }
 0x325   :  { %v1705_v35 = vmax.f32 %v1704_v41, %v1190_v27  ;;  %v1731_v33 = vmax.f32 %v1730_v43, %v1303_v49  ;;  %v1194_v61 = vadd.f32 %v1193_v57, %v6149_v24  ;;  %v1307_v62 = vadd.f32 %v1306_v1, %v6174_v54  ;;  %v1195_v63 = vpop.f32.mrb[15].mxu1  ;;  %v1308_v0 = vpop.f32.mrb[63].mxu0 }
 0x326   :  { %v1718_v2 = vmax.f32 %v1717_v44, %v1192_v56  ;;  %v1744_v3 = vmax.f32 %v1743_v45, %v1305_v26  ;;  %v1196_v4 = vadd.f32 %v1195_v63, %v6153_v12  ;;  %v1309_v6 = vadd.f32 %v1308_v0, %v6179_v5 }
 0x327   :  { %v1706_v8 = vmax.f32 %v1705_v35, %v1194_v61  ;;  %v1732_v14 = vmax.f32 %v1731_v33, %v1307_v62  ;;  %v6272_v54 = vrot.slane %v6145_v9, %v747_v59 }
 0x328   :  { %v1719_v7 = vmax.f32 %v1718_v2, %v1196_v4  ;;  %v1745_v24 = vmax.f32 %v1744_v3, %v1309_v6 }
 0x329   :  { %v1707_v17 = vrot.slane %v1706_v8, 4  ;;  %v1733_v12 = vrot.slane %v1732_v14, 4 }
 0x32a   :  { %v1720_v18 = vrot.slane %v1719_v7, 4  ;;  %v1746_v5 = vrot.slane %v1745_v24, 4  ;;  %v1345_v19 = vpop.f32.mrb[16].mxu1  ;;  %v1458_v42 = vpop.f32.mrb[64].mxu0 }
 0x32b   :  { %v1708_v47 = vmax.f32 %v1706_v8, %v1707_v17  ;;  %v1734_v13 = vmax.f32 %v1732_v14, %v1733_v12  ;;  %v1346_v20 = vadd.f32 %v1345_v19, %v6266_v16  ;;  %v1459_v21 = vadd.f32 %v1458_v42, %v6269_v36  ;;  %v1347_v22 = vpop.f32.mrb[17].mxu1  ;;  %v1460_v23 = vpop.f32.mrb[65].mxu0 }
 0x32c   :  { %v1721_v29 = vmax.f32 %v1719_v7, %v1720_v18  ;;  %v1747_v30 = vmax.f32 %v1745_v24, %v1746_v5  ;;  %v1348_v38 = vadd.f32 %v1347_v22, %v6272_v54  ;;  %v1461_v9 = vadd.f32 %v1460_v23, %v6275_v58  ;;  %v1349_v39 = vpop.f32.mrb[18].mxu1  ;;  %v1462_v37 = vpop.f32.mrb[66].mxu0 }
 0x32d   :  { %v1709_v40 = vrot.slane %v1708_v47, 2  ;;  %v1735_v41 = vrot.slane %v1734_v13, 2  ;;  %v1350_v43 = vadd.f32 %v1349_v39, %v6266_v16  ;;  %v1463_v44 = vadd.f32 %v1462_v37, %v6269_v36  ;;  %v1351_v45 = vpop.f32.mrb[19].mxu1  ;;  %v1464_v46 = vpop.f32.mrb[67].mxu0 }
 0x32e   :  { %v1722_v48 = vrot.slane %v1721_v29, 2  ;;  %v1748_v27 = vrot.slane %v1747_v30, 2  ;;  %v1352_v49 = vadd.f32 %v1351_v45, %v6272_v54  ;;  %v1465_v50 = vadd.f32 %v1464_v46, %v6275_v58 }
 0x32f   :  { %v1710_v53 = vmax.f32 %v1708_v47, %v1709_v40  ;;  %v1736_v55 = vmax.f32 %v1734_v13, %v1735_v41  ;;  %v1589_v34 = vmax.f32 %v1346_v20, %v1350_v43  ;;  %v1615_v56 = vmax.f32 %v1459_v21, %v1463_v44 }
 0x330   :  { %v1723_v26 = vmax.f32 %v1721_v29, %v1722_v48  ;;  %v1749_v57 = vmax.f32 %v1747_v30, %v1748_v27  ;;  %v1602_v1 = vmax.f32 %v1348_v38, %v1352_v49  ;;  %v1628_v59 = vmax.f32 %v1461_v9, %v1465_v50 }
 0x331   :  { %v1711_v51 = vrot.slane %v1710_v53, 1  ;;  %v1737_v35 = vrot.slane %v1736_v55, 1 }
 0x332   :  { %v1724_v33 = vrot.slane %v1723_v26, 1  ;;  %v1750_v61 = vrot.slane %v1749_v57, 1  ;;  %v1355_v62 = vpop.f32.mrb[20].mxu1  ;;  %v1468_v63 = vpop.f32.mrb[68].mxu0 }
 0x333   :  { %v1712_v0 = vmax.f32 %v1710_v53, %v1711_v51  ;;  %v1738_v2 = vmax.f32 %v1736_v55, %v1737_v35  ;;  %v1356_v3 = vadd.f32 %v1355_v62, %v6266_v16  ;;  %v1469_v4 = vadd.f32 %v1468_v63, %v6269_v36  ;;  %v1357_v6 = vpop.f32.mrb[21].mxu1  ;;  %v1470_v8 = vpop.f32.mrb[69].mxu0 }
 0x334   :  { %v1725_v14 = vmax.f32 %v1723_v26, %v1724_v33  ;;  %v1751_v7 = vmax.f32 %v1749_v57, %v1750_v61  ;;  %v1358_v24 = vadd.f32 %v1357_v6, %v6272_v54  ;;  %v1471_v17 = vadd.f32 %v1470_v8, %v6275_v58  ;;  %v1359_v12 = vpop.f32.mrb[22].mxu1  ;;  %v1472_v18 = vpop.f32.mrb[70].mxu0 }
 0x335   :  { %v1590_v5 = vmax.f32 %v1589_v34, %v1356_v3  ;;  %v1616_v19 = vmax.f32 %v1615_v56, %v1469_v4  ;;  %v1360_v42 = vadd.f32 %v1359_v12, %v6266_v16  ;;  %v1473_v47 = vadd.f32 %v1472_v18, %v6269_v36  ;;  %v1361_v13 = vpop.f32.mrb[23].mxu1  ;;  %v1474_v20 = vpop.f32.mrb[71].mxu0 }
 0x336   :  { %v1812_v21 = vcombine.low %v1712_v0, %v1725_v14  ;;  %v1813_v22 = vcombine.low %v1738_v2, %v1751_v7  ;;  %v1603_v23 = vmax.f32 %v1602_v1, %v1358_v24  ;;  %v1629_v29 = vmax.f32 %v1628_v59, %v1471_v17 }
 0x337   :  { %v1591_v30 = vmax.f32 %v1590_v5, %v1360_v42  ;;  %v1617_v38 = vmax.f32 %v1616_v19, %v1473_v47  ;;  %v1362_v9 = vadd.f32 %v1361_v13, %v6272_v54  ;;  %v1475_v39 = vadd.f32 %v1474_v20, %v6275_v58 }
 0x338   :  { %v6294_v37 = vrot.slane %v1812_v21, %v6229_v60  ;;  %v6297_v40 = vrot.slane %v1813_v22, %v6229_v60 }
 0x339   :  { %v1604_v41 = vmax.f32 %v1603_v23, %v1362_v9  ;;  %v1630_v43 = vmax.f32 %v1629_v29, %v1475_v39 }
 0x33a   :  { %v1844_v44 = vcombine.low %v6294_v37, %v6297_v40  ;;  %v1365_v45 = vpop.f32.mrb[24].mxu1  ;;  %v1478_v46 = vpop.f32.mrb[72].mxu0  ;;  %v5158_v40 = vld [vmem:[#allocation8 + $0x200] ss:$16 sps:$4 sm:$0xff]  }
 0x33b   :  { %v1366_v48 = vadd.f32 %v1365_v45, %v6266_v16  ;;  %v1479_v27 = vadd.f32 %v1478_v46, %v6269_v36  ;;  %v1367_v49 = vpop.f32.mrb[25].mxu1  ;;  %v1480_v50 = vpop.f32.mrb[73].mxu0 }
 0x33c   :  { %v1368_v53 = vadd.f32 %v1367_v49, %v6272_v54  ;;  %v1481_v55 = vadd.f32 %v1480_v50, %v6275_v58  ;;  %v1369_v34 = vpop.f32.mrb[26].mxu1  ;;  %v1482_v56 = vpop.f32.mrb[74].mxu0 }
 0x33d   :  { %v1592_v26 = vmax.f32 %v1591_v30, %v1366_v48  ;;  %v1618_v57 = vmax.f32 %v1617_v38, %v1479_v27  ;;  %v1370_v1 = vadd.f32 %v1369_v34, %v6266_v16  ;;  %v1483_v59 = vadd.f32 %v1482_v56, %v6269_v36  ;;  %v1371_v51 = vpop.f32.mrb[27].mxu1  ;;  %v1484_v35 = vpop.f32.mrb[75].mxu0 }
 0x33e   :  { %v1605_v33 = vmax.f32 %v1604_v41, %v1368_v53  ;;  %v1631_v61 = vmax.f32 %v1630_v43, %v1481_v55  ;;  %v1372_v62 = vadd.f32 %v1371_v51, %v6272_v54  ;;  %v1485_v63 = vadd.f32 %v1484_v35, %v6275_v58 }
 0x33f   :  { %v1593_v0 = vmax.f32 %v1592_v26, %v1370_v1  ;;  %v1619_v2 = vmax.f32 %v1618_v57, %v1483_v59 }
 0x340   :  { %v1606_v3 = vmax.f32 %v1605_v33, %v1372_v62  ;;  %v1632_v4 = vmax.f32 %v1631_v61, %v1485_v63 }
 0x342   :  { %v1375_v6 = vpop.f32.mrb[28].mxu1  ;;  %v1488_v8 = vpop.f32.mrb[76].mxu0 }
 0x343   :  { %v1376_v14 = vadd.f32 %v1375_v6, %v6266_v16  ;;  %v1489_v7 = vadd.f32 %v1488_v8, %v6269_v36  ;;  %v1377_v24 = vpop.f32.mrb[29].mxu1  ;;  %v1490_v17 = vpop.f32.mrb[77].mxu0 }
 0x344   :  { %v1378_v12 = vadd.f32 %v1377_v24, %v6272_v54  ;;  %v1491_v18 = vadd.f32 %v1490_v17, %v6275_v58  ;;  %v1379_v5 = vpop.f32.mrb[30].mxu1  ;;  %v1492_v19 = vpop.f32.mrb[78].mxu0 }
 0x345   :  { %v1594_v42 = vmax.f32 %v1593_v0, %v1376_v14  ;;  %v1620_v47 = vmax.f32 %v1619_v2, %v1489_v7  ;;  %v1380_v13 = vadd.f32 %v1379_v5, %v6266_v16  ;;  %v1493_v20 = vadd.f32 %v1492_v19, %v6269_v36  ;;  %v1381_v21 = vpop.f32.mrb[31].mxu1  ;;  %v1494_v22 = vpop.f32.mrb[79].mxu0 }
 0x346   :  { %v1607_v23 = vmax.f32 %v1606_v3, %v1378_v12  ;;  %v1633_v29 = vmax.f32 %v1632_v4, %v1491_v18  ;;  %v1382_v30 = vadd.f32 %v1381_v21, %v6272_v54  ;;  %v1495_v38 = vadd.f32 %v1494_v22, %v6275_v58 }
 0x347   :  { %v1595_v9 = vmax.f32 %v1594_v42, %v1380_v13  ;;  %v1621_v39 = vmax.f32 %v1620_v47, %v1493_v20 }
 0x348   :  { %v1608_v41 = vmax.f32 %v1607_v23, %v1382_v30  ;;  %v1634_v43 = vmax.f32 %v1633_v29, %v1495_v38 }
 0x349   :  { %v1596_v45 = vrot.slane %v1595_v9, 4  ;;  %v1622_v46 = vrot.slane %v1621_v39, 4 }
 0x34a   :  { %v1609_v48 = vrot.slane %v1608_v41, 4  ;;  %v1635_v27 = vrot.slane %v1634_v43, 4  ;;  %v1385_v49 = vpop.f32.mrb[32].mxu1  ;;  %v1498_v50 = vpop.f32.mrb[80].mxu0 }
 0x34b   :  { %v1597_v53 = vmax.f32 %v1595_v9, %v1596_v45  ;;  %v1623_v55 = vmax.f32 %v1621_v39, %v1622_v46  ;;  %v1386_v34 = vadd.f32 %v1385_v49, %v6266_v16  ;;  %v1499_v56 = vadd.f32 %v1498_v50, %v6269_v36  ;;  %v1387_v26 = vpop.f32.mrb[33].mxu1  ;;  %v1500_v57 = vpop.f32.mrb[81].mxu0 }
 0x34c   :  { %v1610_v1 = vmax.f32 %v1608_v41, %v1609_v48  ;;  %v1636_v59 = vmax.f32 %v1634_v43, %v1635_v27  ;;  %v1388_v51 = vadd.f32 %v1387_v26, %v6272_v54  ;;  %v1501_v35 = vadd.f32 %v1500_v57, %v6275_v58  ;;  %v1389_v33 = vpop.f32.mrb[34].mxu1  ;;  %v1502_v61 = vpop.f32.mrb[82].mxu0 }
 0x34d   :  { %v1598_v62 = vrot.slane %v1597_v53, 2  ;;  %v1624_v63 = vrot.slane %v1623_v55, 2  ;;  %v1390_v0 = vadd.f32 %v1389_v33, %v6266_v16  ;;  %v1503_v2 = vadd.f32 %v1502_v61, %v6269_v36  ;;  %v1391_v3 = vpop.f32.mrb[35].mxu1  ;;  %v1504_v4 = vpop.f32.mrb[83].mxu0 }
 0x34e   :  { %v1611_v6 = vrot.slane %v1610_v1, 2  ;;  %v1637_v8 = vrot.slane %v1636_v59, 2  ;;  %v1392_v14 = vadd.f32 %v1391_v3, %v6272_v54  ;;  %v1505_v7 = vadd.f32 %v1504_v4, %v6275_v58 }
 0x34f   :  { %v1599_v24 = vmax.f32 %v1597_v53, %v1598_v62  ;;  %v1625_v17 = vmax.f32 %v1623_v55, %v1624_v63  ;;  %v1752_v12 = vmax.f32 %v1386_v34, %v1390_v0  ;;  %v1778_v18 = vmax.f32 %v1499_v56, %v1503_v2 }
 0x350   :  { %v1612_v5 = vmax.f32 %v1610_v1, %v1611_v6  ;;  %v1638_v19 = vmax.f32 %v1636_v59, %v1637_v8  ;;  %v1765_v42 = vmax.f32 %v1388_v51, %v1392_v14  ;;  %v1791_v47 = vmax.f32 %v1501_v35, %v1505_v7 }
 0x351   :  { %v1600_v13 = vrot.slane %v1599_v24, 1  ;;  %v1626_v20 = vrot.slane %v1625_v17, 1 }
 0x352   :  { %v1613_v21 = vrot.slane %v1612_v5, 1  ;;  %v1639_v22 = vrot.slane %v1638_v19, 1  ;;  %v1395_v23 = vpop.f32.mrb[36].mxu1  ;;  %v1508_v29 = vpop.f32.mrb[84].mxu0 }
 0x353   :  { %v1601_v30 = vmax.f32 %v1599_v24, %v1600_v13  ;;  %v1627_v38 = vmax.f32 %v1625_v17, %v1626_v20  ;;  %v1396_v9 = vadd.f32 %v1395_v23, %v6266_v16  ;;  %v1509_v39 = vadd.f32 %v1508_v29, %v6269_v36  ;;  %v1397_v41 = vpop.f32.mrb[37].mxu1  ;;  %v1510_v43 = vpop.f32.mrb[85].mxu0 }
 0x354   :  { %v1614_v45 = vmax.f32 %v1612_v5, %v1613_v21  ;;  %v1640_v46 = vmax.f32 %v1638_v19, %v1639_v22  ;;  %v1398_v48 = vadd.f32 %v1397_v41, %v6272_v54  ;;  %v1511_v27 = vadd.f32 %v1510_v43, %v6275_v58  ;;  %v1399_v49 = vpop.f32.mrb[38].mxu1  ;;  %v1512_v50 = vpop.f32.mrb[86].mxu0 }
 0x355   :  { %v1753_v53 = vmax.f32 %v1752_v12, %v1396_v9  ;;  %v1779_v55 = vmax.f32 %v1778_v18, %v1509_v39  ;;  %v1400_v34 = vadd.f32 %v1399_v49, %v6266_v16  ;;  %v1513_v56 = vadd.f32 %v1512_v50, %v6269_v36  ;;  %v1401_v26 = vpop.f32.mrb[39].mxu1  ;;  %v1514_v57 = vpop.f32.mrb[87].mxu0 }
 0x356   :  { %v1651_v1 = vcombine.low %v1601_v30, %v1614_v45  ;;  %v1652_v59 = vcombine.low %v1627_v38, %v1640_v46  ;;  %v1766_v51 = vmax.f32 %v1765_v42, %v1398_v48  ;;  %v1792_v35 = vmax.f32 %v1791_v47, %v1511_v27 }
 0x357   :  { %v1754_v33 = vmax.f32 %v1753_v53, %v1400_v34  ;;  %v1780_v61 = vmax.f32 %v1779_v55, %v1513_v56  ;;  %v1402_v62 = vadd.f32 %v1401_v26, %v6272_v54  ;;  %v1515_v63 = vadd.f32 %v1514_v57, %v6275_v58 }
 0x358   :  { %v1673_v0 = vrot.slane %v1651_v1, %v6229_v60  ;;  %v1680_v2 = vrot.slane %v1652_v59, %v6229_v60  ;;  %v1689_v18 = vrot.slane %v1681_v15, %v6229_v60 }
 0x359   :  { %v1767_v3 = vmax.f32 %v1766_v51, %v1402_v62  ;;  %v1793_v4 = vmax.f32 %v1792_v35, %v1515_v63 }
 0x35a   :  { %v1682_v6 = vcombine.low %v1673_v0, %v1680_v2  ;;  %v1405_v8 = vpop.f32.mrb[40].mxu1  ;;  %v1518_v14 = vpop.f32.mrb[88].mxu0 }
 0x35b   :  { %v1406_v7 = vadd.f32 %v1405_v8, %v6266_v16  ;;  %v1519_v24 = vadd.f32 %v1518_v14, %v6269_v36  ;;  %v1407_v17 = vpop.f32.mrb[41].mxu1  ;;  %v1520_v12 = vpop.f32.mrb[89].mxu0 }
 0x35c   :  { %v1696_v5 = vrot.slane %v1682_v6, %v6229_v60  ;;  %v1408_v19 = vadd.f32 %v1407_v17, %v6272_v54  ;;  %v1521_v42 = vadd.f32 %v1520_v12, %v6275_v58  ;;  %v1409_v47 = vpop.f32.mrb[42].mxu1  ;;  %v1522_v13 = vpop.f32.mrb[90].mxu0 }
 0x35d   :  { %v1755_v20 = vmax.f32 %v1754_v33, %v1406_v7  ;;  %v1781_v21 = vmax.f32 %v1780_v61, %v1519_v24  ;;  %v1410_v22 = vadd.f32 %v1409_v47, %v6266_v16  ;;  %v1523_v23 = vadd.f32 %v1522_v13, %v6269_v36  ;;  %v1411_v29 = vpop.f32.mrb[43].mxu1  ;;  %v1524_v30 = vpop.f32.mrb[91].mxu0 }
 0x35e   :  { %v1697_v38 = vcombine.low %v1689_v18, %v1696_v5  ;;  %v1768_v9 = vmax.f32 %v1767_v3, %v1408_v19  ;;  %v1794_v10 = vmax.f32 %v1793_v4, %v1521_v42  ;;  %v1412_v11 = vadd.f32 %v1411_v29, %v6272_v54 }
 0x35f   :  { %v1756_v15 = vmax.f32 %v1755_v20, %v1410_v22  ;;  %v1782_v39 = vmax.f32 %v1781_v21, %v1523_v23  ;;  %v1525_v41 = vadd.f32 %v1524_v30, %v6275_v58 }
 0x360   :  { %1699 = vst [vmem:[#allocation2] ss:$2 sm:$0xff] %v1697_v38  ;;  %v1769_v43 = vmax.f32 %v1768_v9, %v1412_v11 }
 0x361   :  { %v1795_v45 = vmax.f32 %v1794_v10, %v1525_v41 }
 0x362   :  { %v1415_v46 = vpop.f32.mrb[44].mxu1  ;;  %v1528_v48 = vpop.f32.mrb[92].mxu0 }
 0x363   :  { %v1416_v27 = vadd.f32 %v1415_v46, %v6266_v16  ;;  %v1529_v49 = vadd.f32 %v1528_v48, %v6269_v36  ;;  %v1417_v50 = vpop.f32.mrb[45].mxu1  ;;  %v1530_v53 = vpop.f32.mrb[93].mxu0  ;;  %v5715_v46 = vmov 1983009808  }
 0x364   :  { %v1418_v55 = vadd.f32 %v1417_v50, %v6272_v54  ;;  %v1531_v34 = vadd.f32 %v1530_v53, %v6275_v58  ;;  %v1419_v56 = vpop.f32.mrb[46].mxu1  ;;  %v1532_v26 = vpop.f32.mrb[94].mxu0  ;;  %v1874_v48 = vunpack.c.l.s4 %v5715_v46  ;;  %v5228_v46 = vld [vmem:[#allocation8 + $0x368] ss:$16 sps:$4 sm:$0xff]  }
 0x365   :  { %v1757_v57 = vmax.f32 %v1756_v15, %v1416_v27  ;;  %v1783_v1 = vmax.f32 %v1782_v39, %v1529_v49  ;;  %v1420_v59 = vadd.f32 %v1419_v56, %v6266_v16  ;;  %v1533_v51 = vadd.f32 %v1532_v26, %v6269_v36  ;;  %v1421_v35 = vpop.f32.mrb[47].mxu1  ;;  %v1534_v33 = vpop.f32.mrb[95].mxu0 }
 0x366   :  { %v1770_v61 = vmax.f32 %v1769_v43, %v1418_v55  ;;  %v1796_v62 = vmax.f32 %v1795_v45, %v1531_v34  ;;  %v1422_v63 = vadd.f32 %v1421_v35, %v6272_v54  ;;  %v1535_v0 = vadd.f32 %v1534_v33, %v6275_v58  ;;  %v5165_v35 = vld [vmem:[#allocation8 + $0x220] ss:$16 sps:$4 sm:$0xff]   ;;  %v5168_v33 = vld [vmem:[#allocation8 + $0x228] ss:$16 sps:$4 sm:$0xff]  }
 0x367   :  { %v1758_v2 = vmax.f32 %v1757_v57, %v1420_v59  ;;  %v1784_v3 = vmax.f32 %v1783_v1, %v1533_v51  ;;  %v1852_v43 = vrot.slane %v1844_v44, %v6229_v60  ;;  %v1875_v49 = vunpack.c.0.s8 %v1874_v48  ;;  %v5161_v44 = vld [vmem:[#allocation8 + $0x208] ss:$16 sps:$4 sm:$0xff]   ;;  %v5167_v59 = vld [vmem:[#allocation8 + $0x224] ss:$16 sps:$4 sm:$0xff]   ;;  %v5170_v51 = vld [vmem:[#allocation8 + $0x22c] ss:$16 sps:$4 sm:$0xff]  }
 0x368   :  { %v1771_v4 = vmax.f32 %v1770_v61, %v1422_v63  ;;  %v1797_v6 = vmax.f32 %v1796_v62, %v1535_v0  ;;  %v5173_v61 = vld [vmem:[#allocation8 + $0x244] ss:$16 sps:$4 sm:$0xff]   ;;  %v5176_v62 = vld [vmem:[#allocation8 + $0x24c] ss:$16 sps:$4 sm:$0xff]   ;;  %v5171_v63 = vld [vmem:[#allocation8 + $0x240] ss:$16 sps:$4 sm:$0xff]  }
 0x369   :  { %v1759_v8 = vrot.slane %v1758_v2, 4  ;;  %v1785_v14 = vrot.slane %v1784_v3, 4  ;;  %v6364_v50 = vsub.s32 %v1875_v49, %v5935_v25  ;;  %v5174_v0 = vld [vmem:[#allocation8 + $0x248] ss:$16 sps:$4 sm:$0xff]   ;;  %v5233_v48 = vld [vmem:[#allocation8 + $0x384] ss:$16 sps:$4 sm:$0xff]  }
 0x36a   :  { %v1772_v7 = vrot.slane %v1771_v4, 4  ;;  %v1798_v24 = vrot.slane %v1797_v6, 4  ;;  %v5231_v49 = vld [vmem:[#allocation8 + $0x380] ss:$16 sps:$4 sm:$0xff]  }
 0x36b   :  { %v1760_v17 = vmax.f32 %v1758_v2, %v1759_v8  ;;  %v1786_v16 = vmax.f32 %v1784_v3, %v1785_v14  ;;  %v5179_v2 = vld [vmem:[#allocation8 + $0x264] ss:$16 sps:$4 sm:$0xff]   ;;  %v5182_v3 = vld [vmem:[#allocation8 + $0x26c] ss:$16 sps:$4 sm:$0xff]  }
 0x36c   :  { %v1773_v12 = vmax.f32 %v1771_v4, %v1772_v7  ;;  %v1799_v36 = vmax.f32 %v1797_v6, %v1798_v24  ;;  %v5177_v4 = vld [vmem:[#allocation8 + $0x260] ss:$16 sps:$4 sm:$0xff]   ;;  %v5180_v6 = vld [vmem:[#allocation8 + $0x268] ss:$16 sps:$4 sm:$0xff]   ;;  %v5185_v8 = vld [vmem:[#allocation8 + $0x284] ss:$16 sps:$4 sm:$0xff]  }
 0x36d   :  { %v1761_v18 = vrot.slane %v1760_v17, 2  ;;  %v1787_v5 = vrot.slane %v1786_v16, 2  ;;  %v5188_v14 = vld [vmem:[#allocation8 + $0x28c] ss:$16 sps:$4 sm:$0xff]   ;;  %v5183_v7 = vld [vmem:[#allocation8 + $0x280] ss:$16 sps:$4 sm:$0xff]  }
 0x36e   :  { %v1774_v19 = vrot.slane %v1773_v12, 2  ;;  %v1800_v42 = vrot.slane %v1799_v36, 2  ;;  %v5186_v24 = vld [vmem:[#allocation8 + $0x288] ss:$16 sps:$4 sm:$0xff]  }
 0x36f   :  { %v1762_v47 = vmax.f32 %v1760_v17, %v1761_v18  ;;  %v1788_v54 = vmax.f32 %v1786_v16, %v1787_v5  ;;  %v5191_v17 = vld [vmem:[#allocation8 + $0x2a4] ss:$16 sps:$4 sm:$0xff]   ;;  %v5194_v16 = vld [vmem:[#allocation8 + $0x2ac] ss:$16 sps:$4 sm:$0xff]  }
 0x370   :  { %v1775_v13 = vmax.f32 %v1773_v12, %v1774_v19  ;;  %v1801_v58 = vmax.f32 %v1799_v36, %v1800_v42  ;;  %v5189_v12 = vld [vmem:[#allocation8 + $0x2a0] ss:$16 sps:$4 sm:$0xff]   ;;  %v5192_v36 = vld [vmem:[#allocation8 + $0x2a8] ss:$16 sps:$4 sm:$0xff]   ;;  %v5197_v18 = vld [vmem:[#allocation8 + $0x2c4] ss:$16 sps:$4 sm:$0xff]  }
 0x371   :  { %v1763_v20 = vrot.slane %v1762_v47, 1  ;;  %v1789_v21 = vrot.slane %v1788_v54, 1  ;;  %v5200_v5 = vld [vmem:[#allocation8 + $0x2cc] ss:$16 sps:$4 sm:$0xff]   ;;  %v5195_v19 = vld [vmem:[#allocation8 + $0x2c0] ss:$16 sps:$4 sm:$0xff]  }
 0x372   :  { %v1776_v22 = vrot.slane %v1775_v13, 1  ;;  %v1802_v23 = vrot.slane %v1801_v58, 1  ;;  %v5198_v42 = vld [vmem:[#allocation8 + $0x2c8] ss:$16 sps:$4 sm:$0xff]  }
 0x373   :  { %v1764_v29 = vmax.f32 %v1762_v47, %v1763_v20  ;;  %v1790_v30 = vmax.f32 %v1788_v54, %v1789_v21  ;;  %v5203_v47 = vld [vmem:[#allocation8 + $0x2e4] ss:$16 sps:$4 sm:$0xff]   ;;  %v5206_v54 = vld [vmem:[#allocation8 + $0x2ec] ss:$16 sps:$4 sm:$0xff]  }
 0x374   :  { %v1777_v38 = vmax.f32 %v1775_v13, %v1776_v22  ;;  %v1803_v9 = vmax.f32 %v1801_v58, %v1802_v23  ;;  %v5201_v13 = vld [vmem:[#allocation8 + $0x2e0] ss:$16 sps:$4 sm:$0xff]   ;;  %v5204_v58 = vld [vmem:[#allocation8 + $0x2e8] ss:$16 sps:$4 sm:$0xff]   ;;  %v5209_v20 = vld [vmem:[#allocation8 + $0x304] ss:$16 sps:$4 sm:$0xff]  }
 0x375   :  { %v5212_v21 = vld [vmem:[#allocation8 + $0x30c] ss:$16 sps:$4 sm:$0xff]   ;;  %v5207_v22 = vld [vmem:[#allocation8 + $0x300] ss:$16 sps:$4 sm:$0xff]   ;;  %v5210_v23 = vld [vmem:[#allocation8 + $0x308] ss:$16 sps:$4 sm:$0xff]  }
 0x376   :  { %v1814_v10 = vcombine.low %v1764_v29, %v1777_v38  ;;  %v1815_v11 = vcombine.low %v1790_v30, %v1803_v9  ;;  %v5215_v29 = vld [vmem:[#allocation8 + $0x324] ss:$16 sps:$4 sm:$0xff]   ;;  %v5218_v30 = vld [vmem:[#allocation8 + $0x32c] ss:$16 sps:$4 sm:$0xff]   ;;  %v5213_v38 = vld [vmem:[#allocation8 + $0x320] ss:$16 sps:$4 sm:$0xff]  }
 0x377   :  { %v5216_v9 = vld [vmem:[#allocation8 + $0x328] ss:$16 sps:$4 sm:$0xff]  }
 0x378   :  { %v1836_v15 = vrot.slane %v1814_v10, %v6229_v60  ;;  %v1843_v39 = vrot.slane %v1815_v11, %v6229_v60  ;;  %v5221_v10 = vld [vmem:[#allocation8 + $0x344] ss:$16 sps:$4 sm:$0xff]   ;;  %v5224_v11 = vld [vmem:[#allocation8 + $0x34c] ss:$16 sps:$4 sm:$0xff]  }
 0x37a   :  { %v1845_v41 = vcombine.low %v1836_v15, %v1843_v39  ;;  %v5219_v15 = vld [vmem:[#allocation8 + $0x340] ss:$16 sps:$4 sm:$0xff]   ;;  %v5222_v39 = vld [vmem:[#allocation8 + $0x348] ss:$16 sps:$4 sm:$0xff]  }
 0x37c   :  { %v1859_v45 = vrot.slane %v1845_v41, %v6229_v60  ;;  %v5227_v41 = vld [vmem:[#allocation8 + $0x364] ss:$16 sps:$4 sm:$0xff]  }
 0x37e   :  { %v1860_v27 = vcombine.low %v1852_v43, %v1859_v45  ;;  %v5230_v43 = vld [vmem:[#allocation8 + $0x36c] ss:$16 sps:$4 sm:$0xff]   ;;  %v5225_v45 = vld [vmem:[#allocation8 + $0x360] ss:$16 sps:$4 sm:$0xff]  }
 0x380   :  { %1863 = vst [vmem:[#allocation2 + $0x1] ss:$2 sm:$0xff] %v1860_v27  ;;  %v5236_v27 = vld [vmem:[#allocation8 + $0x38c] ss:$16 sps:$4 sm:$0xff]  }
 0x387   :  { %v1868_v53 = vld [vmem:[#allocation2] sm:$0xff] }
 0x388   :  { %v1879_v55 = vrot.slane %v1868_v53, %v6364_v50  ;;  %v1872_v34 = vcombine.high %v1868_v53, %v1868_v53  ;;  %v5234_v53 = vld [vmem:[#allocation8 + $0x388] ss:$16 sps:$4 sm:$0xff]  }
 0x38a   :  { %v1887_v56 = vcombine.high %v1879_v55, %v1879_v55  ;;  %v6368_v26 = vrot.slane %v1872_v34, %v6364_v50  ;;  %v1914_v57 = vpack.c.bf16 %v1879_v55, %v1879_v55  ;;  %v5239_v55 = vld [vmem:[#allocation8 + $0x3a4] ss:$16 sps:$4 sm:$0xff]   ;;  %v5242_v34 = vld [vmem:[#allocation8 + $0x3ac] ss:$16 sps:$4 sm:$0xff]  }
 0x38c   :  { %v1915_v37 = vpack.c.bf16 %v1887_v56, %v1887_v56  ;;  %v1888_v60 = vcombine.high %v6368_v26, %v6368_v26  ;;  %v5237_v56 = vld [vmem:[#allocation8 + $0x3a0] ss:$16 sps:$4 sm:$0xff]  }
 0x38e   :  { %3512 = vmatprep.mubr.bf16.mxu1 %v1915_v37  ;;  %3676 = vmatprep.mubr.bf16.mxu0 %v1915_v37  ;;  %v1917_v1 = vpack.c.bf16 %v1888_v60, %v1888_v60  ;;  %v5240_v37 = vld [vmem:[#allocation8 + $0x3a8] ss:$16 sps:$4 sm:$0xff]  }
 0x38f   :  { %3513 = vmatmul.mubr.bf16.vlgmr.msra.gmra.mrb[48].mxu1 %v1914_v57  ;;  %3677 = vmatmul.mubr.bf16.vlgmr.msra.gmra.mrb[96].mxu0 %v1914_v57  ;;  %v6372_v60 = vld [vmem:[#allocation2 + $0x8] sm:$0xff]  ;;  %v5243_v57 = vld [vmem:[#allocation8 + $0x3c0] ss:$16 sps:$4 sm:$0xff]  }
 0x390   :  { %3522 = vmatpush1.bf16.msra.mxu1 %v5158_v40  ;;  %3686 = vmatpush1.bf16.msra.mxu0 %v5161_v44  ;;  %v5245_v40 = vld [vmem:[#allocation8 + $0x3c4] ss:$16 sps:$4 sm:$0xff]   ;;  %v5248_v44 = vld [vmem:[#allocation8 + $0x3cc] ss:$16 sps:$4 sm:$0xff]  }
 0x391   :  { %3553 = vmatprep.mubr.bf16.mxu1 %v1917_v1  ;;  %3717 = vmatprep.mubr.bf16.mxu0 %v1917_v1  ;;  %v5246_v1 = vld [vmem:[#allocation8 + $0x3c8] ss:$16 sps:$4 sm:$0xff]  }
 0x392   :  { %3523 = vmatprep.subr.bf16.mxu1 %v5167_v59  ;;  %3687 = vmatprep.subr.bf16.mxu0 %v5170_v51  ;;  %v5251_v59 = vld [vmem:[#allocation8 + $0x3e4] ss:$16 sps:$4 sm:$0xff]   ;;  %v5254_v51 = vld [vmem:[#allocation8 + $0x3ec] ss:$16 sps:$4 sm:$0xff]  }
 0x394   :  { %3524 = vmatpush1.bf16.msra.mxu1 %v5165_v35  ;;  %3688 = vmatpush1.bf16.msra.mxu0 %v5168_v33  ;;  %v6376_v35 = vrot.slane %v6372_v60, %v6364_v50  ;;  %v5249_v33 = vld [vmem:[#allocation8 + $0x3e0] ss:$16 sps:$4 sm:$0xff]  }
 0x395   :  { %3525 = vmatprep.subr.bf16.mxu1 %v5173_v61  ;;  %3689 = vmatprep.subr.bf16.mxu0 %v5176_v62  ;;  %v5252_v61 = vld [vmem:[#allocation8 + $0x3e8] ss:$16 sps:$4 sm:$0xff]   ;;  %v5257_v62 = vld [vmem:[#allocation8 + $0x404] ss:$16 sps:$4 sm:$0xff]  }
 0x398   :  { %3526 = vmatpush1.bf16.msra.mxu1 %v5171_v63  ;;  %3690 = vmatpush1.bf16.msra.mxu0 %v5174_v0  ;;  %v5260_v63 = vld [vmem:[#allocation8 + $0x40c] ss:$16 sps:$4 sm:$0xff]   ;;  %v1904_v0 = vcombine.high %v6376_v35, %v6376_v35 }
 0x399   :  { %3527 = vmatprep.subr.bf16.mxu1 %v5179_v2  ;;  %3691 = vmatprep.subr.bf16.mxu0 %v5182_v3  ;;  %v5255_v2 = vld [vmem:[#allocation8 + $0x400] ss:$16 sps:$4 sm:$0xff]   ;;  %v1916_v3 = vpack.c.bf16 %v6368_v26, %v6368_v26 }
 0x39a   :  { %v5267_v26 = vld [vmem:[#allocation8 + $0x440] ss:$16 sps:$4 sm:$0xff]  }
 0x39c   :  { %3528 = vmatpush1.bf16.msra.mxu1 %v5177_v4  ;;  %3692 = vmatpush1.bf16.msra.mxu0 %v5180_v6  ;;  %v5258_v4 = vld [vmem:[#allocation8 + $0x408] ss:$16 sps:$4 sm:$0xff]   ;;  %v1919_v6 = vpack.c.bf16 %v1904_v0, %v1904_v0 }
 0x39d   :  { %3529 = vmatprep.subr.bf16.mxu1 %v5185_v8  ;;  %3693 = vmatprep.subr.bf16.mxu0 %v5188_v14  ;;  %v5263_v8 = vld [vmem:[#allocation8 + $0x424] ss:$16 sps:$4 sm:$0xff]   ;;  %v5266_v14 = vld [vmem:[#allocation8 + $0x42c] ss:$16 sps:$4 sm:$0xff]   ;;  %v5336_v0 = vld [vmem:[#allocation8 + $0x5a8] ss:$16 sps:$4 sm:$0xff]  }
 0x3a0   :  { %3530 = vmatpush1.bf16.msra.mxu1 %v5183_v7  ;;  %3694 = vmatpush1.bf16.msra.mxu0 %v5186_v24  ;;  %v5261_v7 = vld [vmem:[#allocation8 + $0x420] ss:$16 sps:$4 sm:$0xff]   ;;  %v5264_v24 = vld [vmem:[#allocation8 + $0x428] ss:$16 sps:$4 sm:$0xff]  }
 0x3a1   :  { %3531 = vmatprep.subr.bf16.mxu1 %v5191_v17  ;;  %3695 = vmatprep.subr.bf16.mxu0 %v5194_v16  ;;  %v5269_v17 = vld [vmem:[#allocation8 + $0x444] ss:$16 sps:$4 sm:$0xff]   ;;  %v5272_v16 = vld [vmem:[#allocation8 + $0x44c] ss:$16 sps:$4 sm:$0xff]  }
 0x3a4   :  { %3532 = vmatpush1.bf16.msra.mxu1 %v5189_v12  ;;  %3696 = vmatpush1.bf16.msra.mxu0 %v5192_v36  ;;  %v5270_v12 = vld [vmem:[#allocation8 + $0x448] ss:$16 sps:$4 sm:$0xff]   ;;  %v5275_v36 = vld [vmem:[#allocation8 + $0x464] ss:$16 sps:$4 sm:$0xff]  }
 0x3a5   :  { %3533 = vmatprep.subr.bf16.mxu1 %v5197_v18  ;;  %3697 = vmatprep.subr.bf16.mxu0 %v5200_v5  ;;  %v5278_v18 = vld [vmem:[#allocation8 + $0x46c] ss:$16 sps:$4 sm:$0xff]   ;;  %v5273_v5 = vld [vmem:[#allocation8 + $0x460] ss:$16 sps:$4 sm:$0xff]  }
 0x3a8   :  { %3534 = vmatpush1.bf16.msra.mxu1 %v5195_v19  ;;  %3698 = vmatpush1.bf16.msra.mxu0 %v5198_v42  ;;  %v5276_v19 = vld [vmem:[#allocation8 + $0x468] ss:$16 sps:$4 sm:$0xff]   ;;  %v5281_v42 = vld [vmem:[#allocation8 + $0x484] ss:$16 sps:$4 sm:$0xff]  }
 0x3a9   :  { %3535 = vmatprep.subr.bf16.mxu1 %v5203_v47  ;;  %3699 = vmatprep.subr.bf16.mxu0 %v5206_v54  ;;  %v5284_v47 = vld [vmem:[#allocation8 + $0x48c] ss:$16 sps:$4 sm:$0xff]   ;;  %v5279_v54 = vld [vmem:[#allocation8 + $0x480] ss:$16 sps:$4 sm:$0xff]  }
 0x3ac   :  { %3536 = vmatpush1.bf16.msra.mxu1 %v5201_v13  ;;  %3700 = vmatpush1.bf16.msra.mxu0 %v5204_v58  ;;  %v5282_v13 = vld [vmem:[#allocation8 + $0x488] ss:$16 sps:$4 sm:$0xff]   ;;  %v5287_v58 = vld [vmem:[#allocation8 + $0x4a4] ss:$16 sps:$4 sm:$0xff]  }
 0x3ad   :  { %3537 = vmatprep.subr.bf16.mxu1 %v5209_v20  ;;  %3701 = vmatprep.subr.bf16.mxu0 %v5212_v21  ;;  %v5290_v20 = vld [vmem:[#allocation8 + $0x4ac] ss:$16 sps:$4 sm:$0xff]   ;;  %v5285_v21 = vld [vmem:[#allocation8 + $0x4a0] ss:$16 sps:$4 sm:$0xff]  }
 0x3b0   :  { %3538 = vmatpush1.bf16.msra.mxu1 %v5207_v22  ;;  %3702 = vmatpush1.bf16.msra.mxu0 %v5210_v23  ;;  %v5288_v22 = vld [vmem:[#allocation8 + $0x4a8] ss:$16 sps:$4 sm:$0xff]   ;;  %v5293_v23 = vld [vmem:[#allocation8 + $0x4c4] ss:$16 sps:$4 sm:$0xff]  }
 0x3b1   :  { %3539 = vmatprep.subr.bf16.mxu1 %v5215_v29  ;;  %3703 = vmatprep.subr.bf16.mxu0 %v5218_v30  ;;  %v5296_v29 = vld [vmem:[#allocation8 + $0x4cc] ss:$16 sps:$4 sm:$0xff]   ;;  %v5291_v30 = vld [vmem:[#allocation8 + $0x4c0] ss:$16 sps:$4 sm:$0xff]  }
 0x3b4   :  { %3540 = vmatpush1.bf16.msra.mxu1 %v5213_v38  ;;  %3704 = vmatpush1.bf16.msra.mxu0 %v5216_v9  ;;  %v5294_v38 = vld [vmem:[#allocation8 + $0x4c8] ss:$16 sps:$4 sm:$0xff]   ;;  %v5299_v9 = vld [vmem:[#allocation8 + $0x4e4] ss:$16 sps:$4 sm:$0xff]  }
 0x3b5   :  { %3541 = vmatprep.subr.bf16.mxu1 %v5221_v10  ;;  %3705 = vmatprep.subr.bf16.mxu0 %v5224_v11  ;;  %v5302_v10 = vld [vmem:[#allocation8 + $0x4ec] ss:$16 sps:$4 sm:$0xff]   ;;  %v5297_v11 = vld [vmem:[#allocation8 + $0x4e0] ss:$16 sps:$4 sm:$0xff]  }
 0x3b8   :  { %3542 = vmatpush1.bf16.msra.mxu1 %v5219_v15  ;;  %3706 = vmatpush1.bf16.msra.mxu0 %v5222_v39  ;;  %v5300_v15 = vld [vmem:[#allocation8 + $0x4e8] ss:$16 sps:$4 sm:$0xff]   ;;  %v5305_v39 = vld [vmem:[#allocation8 + $0x504] ss:$16 sps:$4 sm:$0xff]  }
 0x3b9   :  { %3543 = vmatprep.subr.bf16.mxu1 %v5227_v41  ;;  %3707 = vmatprep.subr.bf16.mxu0 %v5230_v43  ;;  %v5308_v41 = vld [vmem:[#allocation8 + $0x50c] ss:$16 sps:$4 sm:$0xff]   ;;  %v5303_v43 = vld [vmem:[#allocation8 + $0x500] ss:$16 sps:$4 sm:$0xff]  }
 0x3bc   :  { %3544 = vmatpush1.bf16.msra.mxu1 %v5225_v45  ;;  %3708 = vmatpush1.bf16.msra.mxu0 %v5228_v46  ;;  %v5306_v45 = vld [vmem:[#allocation8 + $0x508] ss:$16 sps:$4 sm:$0xff]   ;;  %v5311_v46 = vld [vmem:[#allocation8 + $0x524] ss:$16 sps:$4 sm:$0xff]  }
 0x3bd   :  { %3545 = vmatprep.subr.bf16.mxu1 %v5233_v48  ;;  %3709 = vmatprep.subr.bf16.mxu0 %v5236_v27  ;;  %v5314_v48 = vld [vmem:[#allocation8 + $0x52c] ss:$16 sps:$4 sm:$0xff]   ;;  %v5309_v27 = vld [vmem:[#allocation8 + $0x520] ss:$16 sps:$4 sm:$0xff]  }
 0x3c0   :  { %3546 = vmatpush1.bf16.msra.mxu1 %v5231_v49  ;;  %3710 = vmatpush1.bf16.msra.mxu0 %v5234_v53  ;;  %v5312_v49 = vld [vmem:[#allocation8 + $0x528] ss:$16 sps:$4 sm:$0xff]   ;;  %v5317_v53 = vld [vmem:[#allocation8 + $0x544] ss:$16 sps:$4 sm:$0xff]  }
 0x3c1   :  { %3547 = vmatprep.subr.bf16.mxu1 %v5239_v55  ;;  %3711 = vmatprep.subr.bf16.mxu0 %v5242_v34  ;;  %v5320_v55 = vld [vmem:[#allocation8 + $0x54c] ss:$16 sps:$4 sm:$0xff]   ;;  %v5315_v34 = vld [vmem:[#allocation8 + $0x540] ss:$16 sps:$4 sm:$0xff]  }
 0x3c4   :  { %3548 = vmatpush1.bf16.msra.mxu1 %v5237_v56  ;;  %3712 = vmatpush1.bf16.msra.mxu0 %v5240_v37  ;;  %v5318_v56 = vld [vmem:[#allocation8 + $0x548] ss:$16 sps:$4 sm:$0xff]   ;;  %v5323_v37 = vld [vmem:[#allocation8 + $0x564] ss:$16 sps:$4 sm:$0xff]  }
 0x3c5   :  { %3549 = vmatprep.subr.bf16.mxu1 %v5245_v40  ;;  %3713 = vmatprep.subr.bf16.mxu0 %v5248_v44  ;;  %v5326_v40 = vld [vmem:[#allocation8 + $0x56c] ss:$16 sps:$4 sm:$0xff]   ;;  %v5321_v44 = vld [vmem:[#allocation8 + $0x560] ss:$16 sps:$4 sm:$0xff]  }
 0x3c8   :  { %3550 = vmatpush1.bf16.msra.mxu1 %v5243_v57  ;;  %3714 = vmatpush1.bf16.msra.mxu0 %v5246_v1  ;;  %v5324_v57 = vld [vmem:[#allocation8 + $0x568] ss:$16 sps:$4 sm:$0xff]   ;;  %v5329_v1 = vld [vmem:[#allocation8 + $0x584] ss:$16 sps:$4 sm:$0xff]  }
 0x3c9   :  { %3551 = vmatprep.subr.bf16.mxu1 %v5251_v59  ;;  %3715 = vmatprep.subr.bf16.mxu0 %v5254_v51  ;;  %v5332_v59 = vld [vmem:[#allocation8 + $0x58c] ss:$16 sps:$4 sm:$0xff]   ;;  %v5327_v51 = vld [vmem:[#allocation8 + $0x580] ss:$16 sps:$4 sm:$0xff]  }
 0x3cc   :  { %3552 = vmatpush1.bf16.msra.mxu1 %v5249_v33  ;;  %3716 = vmatpush1.bf16.msra.mxu0 %v5252_v61  ;;  %v5330_v33 = vld [vmem:[#allocation8 + $0x588] ss:$16 sps:$4 sm:$0xff]   ;;  %v5335_v61 = vld [vmem:[#allocation8 + $0x5a4] ss:$16 sps:$4 sm:$0xff]  }
 0x3cd   :  { %3562 = vmatprep.subr.bf16.mxu1 %v5257_v62  ;;  %3726 = vmatprep.subr.bf16.mxu0 %v5260_v63  ;;  %v5338_v62 = vld [vmem:[#allocation8 + $0x5ac] ss:$16 sps:$4 sm:$0xff]   ;;  %v5333_v63 = vld [vmem:[#allocation8 + $0x5a0] ss:$16 sps:$4 sm:$0xff]  }
 0x3cf   :  { %3554 = vmatmul.mubr.bf16.vlgmr.msra.gmra.mrb[48].mxu1 %v1916_v3  ;;  %3718 = vmatmul.mubr.bf16.vlgmr.msra.gmra.mrb[96].mxu0 %v1916_v3  ;;  %v5344_v3 = vld [vmem:[#allocation8 + $0x5cc] ss:$16 sps:$4 sm:$0xff]  }
 0x3d0   :  { %3563 = vmatpush1.bf16.msra.mxu1 %v5255_v2  ;;  %3594 = vmatprep.mubr.bf16.mxu1 %v1919_v6  ;;  %v5341_v2 = vld [vmem:[#allocation8 + $0x5c4] ss:$16 sps:$4 sm:$0xff]  }
 0x3d1   :  { %3727 = vmatpush1.bf16.msra.mxu0 %v5258_v4  ;;  %3758 = vmatprep.mubr.bf16.mxu0 %v1919_v6  ;;  %v1889_v4 = vcombine.high %v6372_v60, %v6372_v60  ;;  %v5339_v6 = vld [vmem:[#allocation8 + $0x5c0] ss:$16 sps:$4 sm:$0xff]  }
 0x3d2   :  { %3564 = vmatprep.subr.bf16.mxu1 %v5263_v8  ;;  %3728 = vmatprep.subr.bf16.mxu0 %v5266_v14  ;;  %v5342_v8 = vld [vmem:[#allocation8 + $0x5c8] ss:$16 sps:$4 sm:$0xff]   ;;  %v5347_v14 = vld [vmem:[#allocation8 + $0x5e4] ss:$16 sps:$4 sm:$0xff]  }
 0x3d4   :  { %3565 = vmatpush1.bf16.msra.mxu1 %v5261_v7  ;;  %v5350_v7 = vld [vmem:[#allocation8 + $0x5ec] ss:$16 sps:$4 sm:$0xff]  }
 0x3d5   :  { %3729 = vmatpush1.bf16.msra.mxu0 %v5264_v24  ;;  %3566 = vmatprep.subr.bf16.mxu1 %v5269_v17  ;;  %v6385_v24 = vrot.slane %v1889_v4, %v6364_v50  ;;  %v5345_v17 = vld [vmem:[#allocation8 + $0x5e0] ss:$16 sps:$4 sm:$0xff]   ;;  %v5354_v50 = vld [vmem:[#allocation8 + $0x608] ss:$16 sps:$4 sm:$0xff]   ;;  %v5426_v4 = vld [vmem:[#allocation8 + $0x784] ss:$16 sps:$4 sm:$0xff]  }
 0x3d6   :  { %3730 = vmatprep.subr.bf16.mxu0 %v5272_v16  ;;  %v5348_v16 = vld [vmem:[#allocation8 + $0x5e8] ss:$16 sps:$4 sm:$0xff]  }
 0x3d7   :  { %v1905_v60 = vcombine.high %v6385_v24, %v6385_v24 }
 0x3d8   :  { %3567 = vmatpush1.bf16.msra.mxu1 %v5267_v26  ;;  %v5353_v26 = vld [vmem:[#allocation8 + $0x604] ss:$16 sps:$4 sm:$0xff]  }
 0x3d9   :  { %3731 = vmatpush1.bf16.msra.mxu0 %v5270_v12  ;;  %3568 = vmatprep.subr.bf16.mxu1 %v5275_v36  ;;  %v5356_v12 = vld [vmem:[#allocation8 + $0x60c] ss:$16 sps:$4 sm:$0xff]   ;;  %v5351_v36 = vld [vmem:[#allocation8 + $0x600] ss:$16 sps:$4 sm:$0xff]  }
 0x3da   :  { %3732 = vmatprep.subr.bf16.mxu0 %v5278_v18  ;;  %v1918_v18 = vpack.c.bf16 %v6376_v35, %v6376_v35  ;;  %v5364_v35 = vld [vmem:[#allocation8 + $0x640] ss:$16 sps:$4 sm:$0xff]  }
 0x3dc   :  { %3569 = vmatpush1.bf16.msra.mxu1 %v5273_v5  ;;  %v5360_v5 = vld [vmem:[#allocation8 + $0x624] ss:$16 sps:$4 sm:$0xff]  }
 0x3dd   :  { %3733 = vmatpush1.bf16.msra.mxu0 %v5276_v19  ;;  %3570 = vmatprep.subr.bf16.mxu1 %v5281_v42  ;;  %v1921_v19 = vpack.c.bf16 %v1905_v60, %v1905_v60  ;;  %v5363_v42 = vld [vmem:[#allocation8 + $0x62c] ss:$16 sps:$4 sm:$0xff]  }
 0x3de   :  { %3734 = vmatprep.subr.bf16.mxu0 %v5284_v47  ;;  %v5358_v47 = vld [vmem:[#allocation8 + $0x620] ss:$16 sps:$4 sm:$0xff]   ;;  %v5441_v60 = vld [vmem:[#allocation8 + $0x7cc] ss:$16 sps:$4 sm:$0xff]  }
 0x3e0   :  { %3571 = vmatpush1.bf16.msra.mxu1 %v5279_v54  ;;  %v5361_v54 = vld [vmem:[#allocation8 + $0x628] ss:$16 sps:$4 sm:$0xff]  }
 0x3e1   :  { %3735 = vmatpush1.bf16.msra.mxu0 %v5282_v13  ;;  %3572 = vmatprep.subr.bf16.mxu1 %v5287_v58  ;;  %v5366_v13 = vld [vmem:[#allocation8 + $0x644] ss:$16 sps:$4 sm:$0xff]   ;;  %v5369_v58 = vld [vmem:[#allocation8 + $0x64c] ss:$16 sps:$4 sm:$0xff]  }
 0x3e2   :  { %3736 = vmatprep.subr.bf16.mxu0 %v5290_v20  ;;  %v5367_v20 = vld [vmem:[#allocation8 + $0x648] ss:$16 sps:$4 sm:$0xff]  }
 0x3e4   :  { %3573 = vmatpush1.bf16.msra.mxu1 %v5285_v21  ;;  %v5372_v21 = vld [vmem:[#allocation8 + $0x664] ss:$16 sps:$4 sm:$0xff]  }
 0x3e5   :  { %3737 = vmatpush1.bf16.msra.mxu0 %v5288_v22  ;;  %3574 = vmatprep.subr.bf16.mxu1 %v5293_v23  ;;  %v5375_v22 = vld [vmem:[#allocation8 + $0x66c] ss:$16 sps:$4 sm:$0xff]   ;;  %v5370_v23 = vld [vmem:[#allocation8 + $0x660] ss:$16 sps:$4 sm:$0xff]  }
 0x3e6   :  { %3738 = vmatprep.subr.bf16.mxu0 %v5296_v29  ;;  %v5373_v29 = vld [vmem:[#allocation8 + $0x668] ss:$16 sps:$4 sm:$0xff]  }
 0x3e8   :  { %3575 = vmatpush1.bf16.msra.mxu1 %v5291_v30  ;;  %v5378_v30 = vld [vmem:[#allocation8 + $0x684] ss:$16 sps:$4 sm:$0xff]  }
 0x3e9   :  { %3739 = vmatpush1.bf16.msra.mxu0 %v5294_v38  ;;  %3576 = vmatprep.subr.bf16.mxu1 %v5299_v9  ;;  %v5381_v38 = vld [vmem:[#allocation8 + $0x68c] ss:$16 sps:$4 sm:$0xff]   ;;  %v5376_v9 = vld [vmem:[#allocation8 + $0x680] ss:$16 sps:$4 sm:$0xff]  }
 0x3ea   :  { %3740 = vmatprep.subr.bf16.mxu0 %v5302_v10  ;;  %v5379_v10 = vld [vmem:[#allocation8 + $0x688] ss:$16 sps:$4 sm:$0xff]  }
 0x3ec   :  { %3577 = vmatpush1.bf16.msra.mxu1 %v5297_v11  ;;  %v5384_v11 = vld [vmem:[#allocation8 + $0x6a4] ss:$16 sps:$4 sm:$0xff]  }
 0x3ed   :  { %3741 = vmatpush1.bf16.msra.mxu0 %v5300_v15  ;;  %3578 = vmatprep.subr.bf16.mxu1 %v5305_v39  ;;  %v5387_v15 = vld [vmem:[#allocation8 + $0x6ac] ss:$16 sps:$4 sm:$0xff]   ;;  %v5382_v39 = vld [vmem:[#allocation8 + $0x6a0] ss:$16 sps:$4 sm:$0xff]  }
 0x3ee   :  { %3742 = vmatprep.subr.bf16.mxu0 %v5308_v41  ;;  %v5385_v41 = vld [vmem:[#allocation8 + $0x6a8] ss:$16 sps:$4 sm:$0xff]  }
 0x3f0   :  { %3579 = vmatpush1.bf16.msra.mxu1 %v5303_v43  ;;  %v5390_v43 = vld [vmem:[#allocation8 + $0x6c4] ss:$16 sps:$4 sm:$0xff]  }
 0x3f1   :  { %3743 = vmatpush1.bf16.msra.mxu0 %v5306_v45  ;;  %3580 = vmatprep.subr.bf16.mxu1 %v5311_v46  ;;  %v5393_v45 = vld [vmem:[#allocation8 + $0x6cc] ss:$16 sps:$4 sm:$0xff]   ;;  %v5388_v46 = vld [vmem:[#allocation8 + $0x6c0] ss:$16 sps:$4 sm:$0xff]  }
 0x3f2   :  { %3744 = vmatprep.subr.bf16.mxu0 %v5314_v48  ;;  %v5391_v48 = vld [vmem:[#allocation8 + $0x6c8] ss:$16 sps:$4 sm:$0xff]  }
 0x3f4   :  { %3581 = vmatpush1.bf16.msra.mxu1 %v5309_v27  ;;  %v5396_v27 = vld [vmem:[#allocation8 + $0x6e4] ss:$16 sps:$4 sm:$0xff]  }
 0x3f5   :  { %3745 = vmatpush1.bf16.msra.mxu0 %v5312_v49  ;;  %3582 = vmatprep.subr.bf16.mxu1 %v5317_v53  ;;  %v5399_v49 = vld [vmem:[#allocation8 + $0x6ec] ss:$16 sps:$4 sm:$0xff]   ;;  %v5394_v53 = vld [vmem:[#allocation8 + $0x6e0] ss:$16 sps:$4 sm:$0xff]  }
 0x3f6   :  { %3746 = vmatprep.subr.bf16.mxu0 %v5320_v55  ;;  %v5397_v55 = vld [vmem:[#allocation8 + $0x6e8] ss:$16 sps:$4 sm:$0xff]  }
 0x3f8   :  { %3583 = vmatpush1.bf16.msra.mxu1 %v5315_v34  ;;  %v5402_v34 = vld [vmem:[#allocation8 + $0x704] ss:$16 sps:$4 sm:$0xff]  }
 0x3f9   :  { %3747 = vmatpush1.bf16.msra.mxu0 %v5318_v56  ;;  %3584 = vmatprep.subr.bf16.mxu1 %v5323_v37  ;;  %v5405_v56 = vld [vmem:[#allocation8 + $0x70c] ss:$16 sps:$4 sm:$0xff]   ;;  %v5400_v37 = vld [vmem:[#allocation8 + $0x700] ss:$16 sps:$4 sm:$0xff]  }
 0x3fa   :  { %3748 = vmatprep.subr.bf16.mxu0 %v5326_v40  ;;  %v5403_v40 = vld [vmem:[#allocation8 + $0x708] ss:$16 sps:$4 sm:$0xff]  }
 0x3fc   :  { %3585 = vmatpush1.bf16.msra.mxu1 %v5321_v44  ;;  %v5408_v44 = vld [vmem:[#allocation8 + $0x724] ss:$16 sps:$4 sm:$0xff]  }
 0x3fd   :  { %3749 = vmatpush1.bf16.msra.mxu0 %v5324_v57  ;;  %3586 = vmatprep.subr.bf16.mxu1 %v5329_v1  ;;  %v5411_v57 = vld [vmem:[#allocation8 + $0x72c] ss:$16 sps:$4 sm:$0xff]   ;;  %v5406_v1 = vld [vmem:[#allocation8 + $0x720] ss:$16 sps:$4 sm:$0xff]  }
 0x3fe   :  { %3750 = vmatprep.subr.bf16.mxu0 %v5332_v59  ;;  %v5409_v59 = vld [vmem:[#allocation8 + $0x728] ss:$16 sps:$4 sm:$0xff]  }
 0x400   :  { %3587 = vmatpush1.bf16.msra.mxu1 %v5327_v51  ;;  %v5414_v51 = vld [vmem:[#allocation8 + $0x744] ss:$16 sps:$4 sm:$0xff]  }
 0x401   :  { %3751 = vmatpush1.bf16.msra.mxu0 %v5330_v33  ;;  %3588 = vmatprep.subr.bf16.mxu1 %v5335_v61  ;;  %v5417_v33 = vld [vmem:[#allocation8 + $0x74c] ss:$16 sps:$4 sm:$0xff]   ;;  %v5412_v61 = vld [vmem:[#allocation8 + $0x740] ss:$16 sps:$4 sm:$0xff]  }
 0x402   :  { %3752 = vmatprep.subr.bf16.mxu0 %v5338_v62  ;;  %v5415_v62 = vld [vmem:[#allocation8 + $0x748] ss:$16 sps:$4 sm:$0xff]  }
 0x404   :  { %3589 = vmatpush1.bf16.msra.mxu1 %v5333_v63  ;;  %v5420_v63 = vld [vmem:[#allocation8 + $0x764] ss:$16 sps:$4 sm:$0xff]  }
 0x405   :  { %3753 = vmatpush1.bf16.msra.mxu0 %v5336_v0  ;;  %3590 = vmatprep.subr.bf16.mxu1 %v5341_v2  ;;  %v5423_v0 = vld [vmem:[#allocation8 + $0x76c] ss:$16 sps:$4 sm:$0xff]   ;;  %v5418_v2 = vld [vmem:[#allocation8 + $0x760] ss:$16 sps:$4 sm:$0xff]  }
 0x406   :  { %3754 = vmatprep.subr.bf16.mxu0 %v5344_v3  ;;  %v5421_v3 = vld [vmem:[#allocation8 + $0x768] ss:$16 sps:$4 sm:$0xff]  }
 0x408   :  { %3591 = vmatpush1.bf16.msra.mxu1 %v5339_v6  ;;  %v5429_v6 = vld [vmem:[#allocation8 + $0x78c] ss:$16 sps:$4 sm:$0xff]  }
 0x409   :  { %3755 = vmatpush1.bf16.msra.mxu0 %v5342_v8  ;;  %3592 = vmatprep.subr.bf16.mxu1 %v5347_v14  ;;  %v5424_v8 = vld [vmem:[#allocation8 + $0x780] ss:$16 sps:$4 sm:$0xff]   ;;  %v5427_v14 = vld [vmem:[#allocation8 + $0x788] ss:$16 sps:$4 sm:$0xff]  }
 0x40a   :  { %3756 = vmatprep.subr.bf16.mxu0 %v5350_v7  ;;  %v5432_v7 = vld [vmem:[#allocation8 + $0x7a4] ss:$16 sps:$4 sm:$0xff]  }
 0x40c   :  { %3593 = vmatpush1.bf16.msra.mxu1 %v5345_v17  ;;  %v5435_v17 = vld [vmem:[#allocation8 + $0x7ac] ss:$16 sps:$4 sm:$0xff]  }
 0x40d   :  { %3757 = vmatpush1.bf16.msra.mxu0 %v5348_v16  ;;  %3603 = vmatprep.subr.bf16.mxu1 %v5353_v26  ;;  %v5430_v16 = vld [vmem:[#allocation8 + $0x7a0] ss:$16 sps:$4 sm:$0xff]   ;;  %v5433_v26 = vld [vmem:[#allocation8 + $0x7a8] ss:$16 sps:$4 sm:$0xff]  }
 0x40e   :  { %3767 = vmatprep.subr.bf16.mxu0 %v5356_v12  ;;  %v5438_v12 = vld [vmem:[#allocation8 + $0x7c4] ss:$16 sps:$4 sm:$0xff]  }
 0x40f   :  { %3595 = vmatmul.mubr.bf16.vlgmr.msra.gmra.mrb[48].mxu1 %v1918_v18 }
 0x410   :  { %3759 = vmatmul.mubr.bf16.vlgmr.msra.gmra.mrb[96].mxu0 %v1918_v18  ;;  %3604 = vmatpush1.bf16.msra.mxu1 %v5351_v36  ;;  %v5436_v36 = vld [vmem:[#allocation8 + $0x7c0] ss:$16 sps:$4 sm:$0xff]   ;;  %v5439_v18 = vld [vmem:[#allocation8 + $0x7c8] ss:$16 sps:$4 sm:$0xff]  }
 0x411   :  { %3635 = vmatprep.mubr.bf16.mxu1 %v1921_v19  ;;  %3768 = vmatpush1.bf16.msra.mxu0 %v5354_v50  ;;  %v5444_v50 = vld [vmem:[#allocation8 + $0x7e4] ss:$16 sps:$4 sm:$0xff]  }
 0x412   :  { %3799 = vmatprep.mubr.bf16.mxu0 %v1921_v19  ;;  %3605 = vmatprep.subr.bf16.mxu1 %v5360_v5  ;;  %v5447_v5 = vld [vmem:[#allocation8 + $0x7ec] ss:$16 sps:$4 sm:$0xff]   ;;  %v5442_v19 = vld [vmem:[#allocation8 + $0x7e0] ss:$16 sps:$4 sm:$0xff]  }
 0x413   :  { %3769 = vmatprep.subr.bf16.mxu0 %v5363_v42  ;;  %v5445_v42 = vld [vmem:[#allocation8 + $0x7e8] ss:$16 sps:$4 sm:$0xff]  }
 0x414   :  { %3606 = vmatpush1.bf16.msra.mxu1 %v5358_v47  ;;  %v5450_v47 = vld [vmem:[#allocation11 + $0x4] ss:$8 sps:$4 sm:$0xff]  }
 0x415   :  { %3770 = vmatpush1.bf16.msra.mxu0 %v5361_v54  ;;  %3607 = vmatprep.subr.bf16.mxu1 %v5366_v13  ;;  %v5448_v54 = vld [vmem:[#allocation11] ss:$8 sps:$4 sm:$0xff]   ;;  %v1920_v13 = vpack.c.bf16 %v6385_v24, %v6385_v24  ;;  %v5465_v24 = vld [vmem:[#allocation11 + $0x54] ss:$8 sps:$4 sm:$0xff]  }
 0x416   :  { %3771 = vmatprep.subr.bf16.mxu0 %v5369_v58  ;;  %v5453_v58 = vld [vmem:[#allocation11 + $0x14] ss:$8 sps:$4 sm:$0xff]  }
 0x418   :  { %3608 = vmatpush1.bf16.msra.mxu1 %v5364_v35  ;;  %v5451_v35 = vld [vmem:[#allocation11 + $0x10] ss:$8 sps:$4 sm:$0xff]  }
 0x419   :  { %3772 = vmatpush1.bf16.msra.mxu0 %v5367_v20  ;;  %3609 = vmatprep.subr.bf16.mxu1 %v5372_v21  ;;  %v5456_v20 = vld [vmem:[#allocation11 + $0x24] ss:$8 sps:$4 sm:$0xff]   ;;  %v5454_v21 = vld [vmem:[#allocation11 + $0x20] ss:$8 sps:$4 sm:$0xff]  }
 0x41a   :  { %3773 = vmatprep.subr.bf16.mxu0 %v5375_v22  ;;  %v5459_v22 = vld [vmem:[#allocation11 + $0x34] ss:$8 sps:$4 sm:$0xff]  }
 0x41c   :  { %3610 = vmatpush1.bf16.msra.mxu1 %v5370_v23  ;;  %v5457_v23 = vld [vmem:[#allocation11 + $0x30] ss:$8 sps:$4 sm:$0xff]  }
 0x41d   :  { %3774 = vmatpush1.bf16.msra.mxu0 %v5373_v29  ;;  %3611 = vmatprep.subr.bf16.mxu1 %v5378_v30  ;;  %v5462_v29 = vld [vmem:[#allocation11 + $0x44] ss:$8 sps:$4 sm:$0xff]   ;;  %v5460_v30 = vld [vmem:[#allocation11 + $0x40] ss:$8 sps:$4 sm:$0xff]  }
 0x41e   :  { %3775 = vmatprep.subr.bf16.mxu0 %v5381_v38  ;;  %v5463_v38 = vld [vmem:[#allocation11 + $0x50] ss:$8 sps:$4 sm:$0xff]  }
 0x420   :  { %3612 = vmatpush1.bf16.msra.mxu1 %v5376_v9  ;;  %v5468_v9 = vld [vmem:[#allocation11 + $0x64] ss:$8 sps:$4 sm:$0xff]  }
 0x421   :  { %3776 = vmatpush1.bf16.msra.mxu0 %v5379_v10  ;;  %3613 = vmatprep.subr.bf16.mxu1 %v5384_v11  ;;  %v5466_v10 = vld [vmem:[#allocation11 + $0x60] ss:$8 sps:$4 sm:$0xff]   ;;  %v5471_v11 = vld [vmem:[#allocation11 + $0x74] ss:$8 sps:$4 sm:$0xff]  }
 0x422   :  { %3777 = vmatprep.subr.bf16.mxu0 %v5387_v15  ;;  %v5469_v15 = vld [vmem:[#allocation11 + $0x70] ss:$8 sps:$4 sm:$0xff]  }
 0x424   :  { %3614 = vmatpush1.bf16.msra.mxu1 %v5382_v39  ;;  %v5474_v39 = vld [vmem:[#allocation11 + $0x84] ss:$8 sps:$4 sm:$0xff]  }
 0x425   :  { %3778 = vmatpush1.bf16.msra.mxu0 %v5385_v41  ;;  %3615 = vmatprep.subr.bf16.mxu1 %v5390_v43  ;;  %v5472_v41 = vld [vmem:[#allocation11 + $0x80] ss:$8 sps:$4 sm:$0xff]   ;;  %v5477_v43 = vld [vmem:[#allocation11 + $0x94] ss:$8 sps:$4 sm:$0xff]  }
 0x426   :  { %3779 = vmatprep.subr.bf16.mxu0 %v5393_v45  ;;  %v5475_v45 = vld [vmem:[#allocation11 + $0x90] ss:$8 sps:$4 sm:$0xff]  }
 0x428   :  { %3616 = vmatpush1.bf16.msra.mxu1 %v5388_v46  ;;  %v5480_v46 = vld [vmem:[#allocation11 + $0xa4] ss:$8 sps:$4 sm:$0xff]  }
 0x429   :  { %3780 = vmatpush1.bf16.msra.mxu0 %v5391_v48  ;;  %3617 = vmatprep.subr.bf16.mxu1 %v5396_v27  ;;  %v5478_v48 = vld [vmem:[#allocation11 + $0xa0] ss:$8 sps:$4 sm:$0xff]   ;;  %v5483_v27 = vld [vmem:[#allocation11 + $0xb4] ss:$8 sps:$4 sm:$0xff]  }
 0x42a   :  { %3781 = vmatprep.subr.bf16.mxu0 %v5399_v49  ;;  %v5481_v49 = vld [vmem:[#allocation11 + $0xb0] ss:$8 sps:$4 sm:$0xff]  }
 0x42c   :  { %3618 = vmatpush1.bf16.msra.mxu1 %v5394_v53  ;;  %v5486_v53 = vld [vmem:[#allocation11 + $0xc4] ss:$8 sps:$4 sm:$0xff]  }
 0x42d   :  { %3782 = vmatpush1.bf16.msra.mxu0 %v5397_v55  ;;  %3619 = vmatprep.subr.bf16.mxu1 %v5402_v34  ;;  %v5484_v55 = vld [vmem:[#allocation11 + $0xc0] ss:$8 sps:$4 sm:$0xff]   ;;  %v5489_v34 = vld [vmem:[#allocation11 + $0xd4] ss:$8 sps:$4 sm:$0xff]  }
 0x42e   :  { %3783 = vmatprep.subr.bf16.mxu0 %v5405_v56  ;;  %v5487_v56 = vld [vmem:[#allocation11 + $0xd0] ss:$8 sps:$4 sm:$0xff]  }
 0x430   :  { %3620 = vmatpush1.bf16.msra.mxu1 %v5400_v37  ;;  %v5492_v37 = vld [vmem:[#allocation11 + $0xe4] ss:$8 sps:$4 sm:$0xff]  }
 0x431   :  { %3784 = vmatpush1.bf16.msra.mxu0 %v5403_v40  ;;  %3621 = vmatprep.subr.bf16.mxu1 %v5408_v44  ;;  %v5490_v40 = vld [vmem:[#allocation11 + $0xe0] ss:$8 sps:$4 sm:$0xff]   ;;  %v5495_v44 = vld [vmem:[#allocation11 + $0xf4] ss:$8 sps:$4 sm:$0xff]  }
 0x432   :  { %3785 = vmatprep.subr.bf16.mxu0 %v5411_v57  ;;  %v5493_v57 = vld [vmem:[#allocation11 + $0xf0] ss:$8 sps:$4 sm:$0xff]  }
 0x434   :  { %3622 = vmatpush1.bf16.msra.mxu1 %v5406_v1  ;;  %v5498_v1 = vld [vmem:[#allocation11 + $0x104] ss:$8 sps:$4 sm:$0xff]  }
 0x435   :  { %3786 = vmatpush1.bf16.msra.mxu0 %v5409_v59  ;;  %3623 = vmatprep.subr.bf16.mxu1 %v5414_v51  ;;  %v5544_v59 = vld [vmem:[%s6486_s11 + $0x40] sm:$0xff]  }
 0x436   :  { %3787 = vmatprep.subr.bf16.mxu0 %v5417_v33  ;;  %v5545_v51 = vld [vmem:[%s6486_s11] sm:$0xff]   ;;  %v5546_v33 = vld [vmem:[%s6486_s11 + $0x48] sm:$0xff]  }
 0x438   :  { %3624 = vmatpush1.bf16.msra.mxu1 %v5412_v61  ;;  %v5547_v61 = vld [vmem:[%s6486_s11 + $0x8] sm:$0xff]  }
 0x439   :  { %3788 = vmatpush1.bf16.msra.mxu0 %v5415_v62  ;;  %3625 = vmatprep.subr.bf16.mxu1 %v5420_v63  ;;  %v5548_v62 = vld [vmem:[%s6486_s11 + $0x50] sm:$0xff]  }
 0x43a   :  { %3789 = vmatprep.subr.bf16.mxu0 %v5423_v0  ;;  %v5549_v63 = vld [vmem:[%s6486_s11 + $0x10] sm:$0xff]   ;;  %v5550_v0 = vld [vmem:[%s6486_s11 + $0x58] sm:$0xff]  }
 0x43c   :  { %3626 = vmatpush1.bf16.msra.mxu1 %v5418_v2  ;;  %v5551_v2 = vld [vmem:[%s6486_s11 + $0x18] sm:$0xff]  }
 0x43d   :  { %3790 = vmatpush1.bf16.msra.mxu0 %v5421_v3  ;;  %3627 = vmatprep.subr.bf16.mxu1 %v5426_v4  ;;  %v5552_v3 = vld [vmem:[%s6486_s11 + $0x60] sm:$0xff]  }
 0x43e   :  { %3791 = vmatprep.subr.bf16.mxu0 %v5429_v6  ;;  %v5553_v4 = vld [vmem:[%s6486_s11 + $0x20] sm:$0xff]   ;;  %v5554_v6 = vld [vmem:[%s6486_s11 + $0x68] sm:$0xff]  }
 0x440   :  { %3628 = vmatpush1.bf16.msra.mxu1 %v5424_v8  ;;  %v5555_v8 = vld [vmem:[%s6486_s11 + $0x28] sm:$0xff]  }
 0x441   :  { %3792 = vmatpush1.bf16.msra.mxu0 %v5427_v14  ;;  %3629 = vmatprep.subr.bf16.mxu1 %v5432_v7  ;;  %v6429_v14 = vld [vmem:[#allocation9] sm:$0xf] }
 0x442   :  { %3793 = vmatprep.subr.bf16.mxu0 %v5435_v17  ;;  %v2183_v7 = vrot.slane %v6429_v14, %v5938_v28  ;;  %v2187_v17 = vrot.slane %v6429_v14, %v5944_v31 }
 0x444   :  { %3630 = vmatpush1.bf16.msra.mxu1 %v5430_v16  ;;  %v2195_v16 = vrot.slane %v6429_v14, %v739_v52 }
 0x445   :  { %3794 = vmatpush1.bf16.msra.mxu0 %v5433_v26  ;;  %3631 = vmatprep.subr.bf16.mxu1 %v5438_v12 }
 0x446   :  { %3795 = vmatprep.subr.bf16.mxu0 %v5441_v60 }
 0x448   :  { %3632 = vmatpush1.bf16.msra.mxu1 %v5436_v36 }
 0x449   :  { %3796 = vmatpush1.bf16.msra.mxu0 %v5439_v18  ;;  %3633 = vmatprep.subr.bf16.mxu1 %v5444_v50 }
 0x44a   :  { %3797 = vmatprep.subr.bf16.mxu0 %v5447_v5 }
 0x44c   :  { %3634 = vmatpush1.bf16.msra.mxu1 %v5442_v19 }
 0x44d   :  { %3798 = vmatpush1.bf16.msra.mxu0 %v5445_v42  ;;  %4212 = vmatprep.subr.bf16.mxu1 %v5450_v47 }
 0x44e   :  { %4918 = vmatprep.subr.bf16.mxu0 %v5544_v59  ;;  %v5540_v59 = vld [vmem:[#allocation11 + $0x1e4] ss:$8 sps:$4 sm:$0xff]  }
 0x44f   :  { %3636 = vmatmul.mubr.bf16.vlgmr.msra.gmra.mrb[48].mxu1 %v1920_v13 }
 0x450   :  { %3800 = vmatmul.mubr.bf16.vlgmr.msra.gmra.mrb[96].mxu0 %v1920_v13  ;;  %4213 = vmatpush1.bf16.msra.mxu1 %v5448_v54 }
 0x451   :  { %4214 = vmatprep.subr.bf16.mxu1 %v5453_v58  ;;  %4919 = vmatpush3.bf16.msra.mxu0 %v5545_v51  ;;  %v5538_v51 = vld [vmem:[#allocation11 + $0x1e0] ss:$8 sps:$4 sm:$0xff]  }
 0x452   :  { %4920 = vmatprep.subr.bf16.mxu0 %v5546_v33 }
 0x454   :  { %4215 = vmatpush1.bf16.msra.mxu1 %v5451_v35 }
 0x455   :  { %4216 = vmatprep.subr.bf16.mxu1 %v5456_v20  ;;  %4921 = vmatpush3.bf16.msra.mxu0 %v5547_v61  ;;  %v5543_v61 = vld [vmem:[#allocation11 + $0x1f4] ss:$8 sps:$4 sm:$0xff]  }
 0x456   :  { %4922 = vmatprep.subr.bf16.mxu0 %v5548_v62  ;;  %v5541_v62 = vld [vmem:[#allocation11 + $0x1f0] ss:$8 sps:$4 sm:$0xff]  }
 0x458   :  { %4217 = vmatpush1.bf16.msra.mxu1 %v5454_v21  ;;  %v5496_v21 = vld [vmem:[#allocation11 + $0x100] ss:$8 sps:$4 sm:$0xff]  }
 0x459   :  { %4218 = vmatprep.subr.bf16.mxu1 %v5459_v22  ;;  %4923 = vmatpush3.bf16.msra.mxu0 %v5549_v63  ;;  %v5501_v22 = vld [vmem:[#allocation11 + $0x114] ss:$8 sps:$4 sm:$0xff]  }
 0x45a   :  { %4924 = vmatprep.subr.bf16.mxu0 %v5550_v0 }
 0x45c   :  { %4219 = vmatpush1.bf16.msra.mxu1 %v5457_v23  ;;  %v5499_v23 = vld [vmem:[#allocation11 + $0x110] ss:$8 sps:$4 sm:$0xff]  }
 0x45d   :  { %4220 = vmatprep.subr.bf16.mxu1 %v5462_v29  ;;  %4925 = vmatpush3.bf16.msra.mxu0 %v5551_v2  ;;  %v5504_v29 = vld [vmem:[#allocation11 + $0x124] ss:$8 sps:$4 sm:$0xff]   ;;  %v5556_v2 = vld [vmem:[%s6486_s11 + $0x70] sm:$0xff]  }
 0x45e   :  { %4926 = vmatprep.subr.bf16.mxu0 %v5552_v3  ;;  %v5558_v3 = vld [vmem:[%s6486_s11 + $0x78] sm:$0xff]  }
 0x460   :  { %4221 = vmatpush1.bf16.msra.mxu1 %v5460_v30  ;;  %v5502_v30 = vld [vmem:[#allocation11 + $0x120] ss:$8 sps:$4 sm:$0xff]  }
 0x461   :  { %4222 = vmatprep.subr.bf16.mxu1 %v5465_v24  ;;  %4927 = vmatpush3.bf16.msra.mxu0 %v5553_v4  ;;  %v5507_v24 = vld [vmem:[#allocation11 + $0x134] ss:$8 sps:$4 sm:$0xff]   ;;  %v5559_v4 = vld [vmem:[%s6486_s11 + $0x38] sm:$0xff]  }
 0x462   :  { %4928 = vmatprep.subr.bf16.mxu0 %v5554_v6  ;;  %v3880_v6 = vld [vmem:[%s6485_s10] sm:$0x3]  ;;  %s5716_s10 = smov [#allocation12]  }
 0x463   :  { %s4480_s4 = sshll.u32 %s5716_s10, 4  ;;  %s4481_s4 = int_to_ptr.vmem [resolvable:$true] %s4480_s4 }
 0x464   :  { %4223 = vmatpush1.bf16.msra.mxu1 %v5463_v38  ;;  %v5505_v38 = vld [vmem:[#allocation11 + $0x130] ss:$8 sps:$4 sm:$0xff]   ;;  %s5670_s25 = scalar_lea.vmem %s4481_s4, 32  ;;  %p5675_p13 = scmp.lt.s32.totalorder %s4481_s4, %s4481_s4 }
 0x465   :  { %4224 = vmatprep.subr.bf16.mxu1 %v5468_v9  ;;  %4929 = vmatpush3.bf16.msra.mxu0 %v5555_v8  ;;  %v5510_v9 = vld [vmem:[#allocation11 + $0x144] ss:$8 sps:$4 sm:$0xff]   ;;  %v3885_v8 = vrot.slane %v3880_v6, %v5938_v28  ;;  %p5671_p12 = scmp.ne.s32.totalorder %s4481_s4, %s5670_s25  ;;  %p5676_p0 = scmp.lt.s32.totalorder %s5670_s25, %s5670_s25 }
 0x466   :  { %4930 = vmatprep.subr.bf16.mxu0 %v5556_v2 }
 0x467   :  { %p5677_p1 = por %p5676_p0, %p5675_p13 }
 0x468   :  { %4225 = vmatpush1.bf16.msra.mxu1 %v5466_v10  ;;  %v5508_v10 = vld [vmem:[#allocation11 + $0x140] ss:$8 sps:$4 sm:$0xff]  }
 0x469   :  { %4226 = vmatprep.subr.bf16.mxu1 %v5471_v11  ;;  %v5513_v11 = vld [vmem:[#allocation11 + $0x154] ss:$8 sps:$4 sm:$0xff]   ;;  %p5678_p2 = pnand %p5677_p1, %p5671_p12 }
 0x46c   :  { %4227 = vmatpush1.bf16.msra.mxu1 %v5469_v15  ;;  %v5511_v15 = vld [vmem:[#allocation11 + $0x150] ss:$8 sps:$4 sm:$0xff]  }
 0x46d   :  { %4228 = vmatprep.subr.bf16.mxu1 %v5474_v39  ;;  %v5516_v39 = vld [vmem:[#allocation11 + $0x164] ss:$8 sps:$4 sm:$0xff]  }
 0x470   :  { %4229 = vmatpush1.bf16.msra.mxu1 %v5472_v41  ;;  %v5514_v41 = vld [vmem:[#allocation11 + $0x160] ss:$8 sps:$4 sm:$0xff]  }
 0x471   :  { %4230 = vmatprep.subr.bf16.mxu1 %v5477_v43  ;;  %v5519_v43 = vld [vmem:[#allocation11 + $0x174] ss:$8 sps:$4 sm:$0xff]  }
 0x474   :  { %4231 = vmatpush1.bf16.msra.mxu1 %v5475_v45  ;;  %v5517_v45 = vld [vmem:[#allocation11 + $0x170] ss:$8 sps:$4 sm:$0xff]  }
 0x475   :  { %4232 = vmatprep.subr.bf16.mxu1 %v5480_v46  ;;  %v5522_v46 = vld [vmem:[#allocation11 + $0x184] ss:$8 sps:$4 sm:$0xff]  }
 0x478   :  { %4233 = vmatpush1.bf16.msra.mxu1 %v5478_v48  ;;  %v5520_v48 = vld [vmem:[#allocation11 + $0x180] ss:$8 sps:$4 sm:$0xff]  }
 0x479   :  { %4234 = vmatprep.subr.bf16.mxu1 %v5483_v27  ;;  %v5525_v27 = vld [vmem:[#allocation11 + $0x194] ss:$8 sps:$4 sm:$0xff]  }
 0x47c   :  { %4235 = vmatpush1.bf16.msra.mxu1 %v5481_v49  ;;  %v5523_v49 = vld [vmem:[#allocation11 + $0x190] ss:$8 sps:$4 sm:$0xff]  }
 0x47d   :  { %4236 = vmatprep.subr.bf16.mxu1 %v5486_v53  ;;  %v5528_v53 = vld [vmem:[#allocation11 + $0x1a4] ss:$8 sps:$4 sm:$0xff]  }
 0x480   :  { %4237 = vmatpush1.bf16.msra.mxu1 %v5484_v55  ;;  %v5526_v55 = vld [vmem:[#allocation11 + $0x1a0] ss:$8 sps:$4 sm:$0xff]  }
 0x481   :  { %4238 = vmatprep.subr.bf16.mxu1 %v5489_v34  ;;  %v5531_v34 = vld [vmem:[#allocation11 + $0x1b4] ss:$8 sps:$4 sm:$0xff]  }
 0x484   :  { %4239 = vmatpush1.bf16.msra.mxu1 %v5487_v56  ;;  %v5529_v56 = vld [vmem:[#allocation11 + $0x1b0] ss:$8 sps:$4 sm:$0xff]  }
 0x485   :  { %4240 = vmatprep.subr.bf16.mxu1 %v5492_v37  ;;  %v5534_v37 = vld [vmem:[#allocation11 + $0x1c4] ss:$8 sps:$4 sm:$0xff]  }
 0x488   :  { %4241 = vmatpush1.bf16.msra.mxu1 %v5490_v40  ;;  %v5532_v40 = vld [vmem:[#allocation11 + $0x1c0] ss:$8 sps:$4 sm:$0xff]  }
 0x489   :  { %4242 = vmatprep.subr.bf16.mxu1 %v5495_v44  ;;  %v5537_v44 = vld [vmem:[#allocation11 + $0x1d4] ss:$8 sps:$4 sm:$0xff]  }
 0x48c   :  { %4243 = vmatpush1.bf16.msra.mxu1 %v5493_v57  ;;  %v5535_v57 = vld [vmem:[#allocation11 + $0x1d0] ss:$8 sps:$4 sm:$0xff]  }
 0x48d   :  { %4253 = vmatprep.subr.bf16.mxu1 %v5498_v1  ;;  %v2191_v1 = vrot.slane %v6429_v14, %v5947_v32  ;;  %v5557_v32 = vld [vmem:[%s6486_s11 + $0x30] sm:$0xff]   ;;  %v3889_v14 = vrot.slane %v3880_v6, %v5944_v31 }
 0x48e   :  { %4931 = vmatpush3.bf16.msra.mxu0 %v5557_v32 }
 0x48f   :  { %4932 = vmatprep.subr.bf16.mxu0 %v5558_v3 }
 0x492   :  { %4933 = vmatpush3.bf16.msra.mxu0 %v5559_v4 }
 0x522   :  { %v3637_v26 = vpop.f32.mrb[48].mxu1 }
 0x523   :  { %v4980_v12 = vadd.f32 %v3637_v26, %v2183_v7  ;;  %v6438_v60 = vpop.f32.mrb[96].mxu0  ;;  %v3639_v36 = vpop.f32.mrb[49].mxu1 }
 0x524   :  { %v4981_v18 = vadd.f32 %v3639_v36, %v2187_v17  ;;  %v3803_v50 = vpop.f32.mrb[97].mxu0  ;;  %v3641_v5 = vpop.f32.mrb[50].mxu1  ;;  %v4982_v33 = vadd.f32 %v6438_v60, %v2191_v1 }
 0x525   :  { %v3808_v19 = vmax.f32 %v4980_v12, 0.0  ;;  %v4983_v42 = vadd.f32 %v3803_v50, %v2195_v16  ;;  %v3805_v47 = vpop.f32.mrb[98].mxu0  ;;  %v3642_v54 = vpop.f32.mrb[51].mxu1 }
 0x526   :  { %v3809_v13 = vmax.f32 %v4981_v18, 0.0  ;;  %v3806_v58 = vpop.f32.mrb[99].mxu0  ;;  %v3810_v63 = vmax.f32 %v4982_v33, 0.0 }
 0x527   :  { %v3811_v35 = vmax.f32 %v4983_v42, 0.0  ;;  %v3812_v25 = vpack.c.bf16 %v3808_v19, %v3808_v19  ;;  %v4889_v42 = vld [vmem:[%s6487_s12] ss:$0 sm:$0xff] }
 0x528   :  { %v3813_v20 = vpack.c.bf16 %v3809_v13, %v3809_v13  ;;  %v3814_v0 = vpack.c.bf16 %v3810_v63, %v3810_v63 }
 0x529   :  { %v3815_v52 = vpack.c.bf16 %v3811_v35, %v3811_v35 }
 0x52a   :  { %4244 = vmatprep.mubr.bf16.mxu1 %v3813_v20 }
 0x52b   :  { %4245 = vmatmul.mubr.bf16.vlgmr.msra.gmra.mrb[52].mxu1 %v3812_v25 }
 0x52c   :  { %4254 = vmatpush1.bf16.msra.mxu1 %v5496_v21  ;;  %4285 = vmatprep.mubr.bf16.mxu1 %v3815_v52 }
 0x52d   :  { %4255 = vmatprep.subr.bf16.mxu1 %v5501_v22 }
 0x530   :  { %4256 = vmatpush1.bf16.msra.mxu1 %v5499_v23 }
 0x531   :  { %4257 = vmatprep.subr.bf16.mxu1 %v5504_v29 }
 0x534   :  { %4258 = vmatpush1.bf16.msra.mxu1 %v5502_v30 }
 0x535   :  { %4259 = vmatprep.subr.bf16.mxu1 %v5507_v24 }
 0x538   :  { %4260 = vmatpush1.bf16.msra.mxu1 %v5505_v38 }
 0x539   :  { %4261 = vmatprep.subr.bf16.mxu1 %v5510_v9 }
 0x53c   :  { %4262 = vmatpush1.bf16.msra.mxu1 %v5508_v10 }
 0x53d   :  { %4263 = vmatprep.subr.bf16.mxu1 %v5513_v11 }
 0x540   :  { %4264 = vmatpush1.bf16.msra.mxu1 %v5511_v15 }
 0x541   :  { %4265 = vmatprep.subr.bf16.mxu1 %v5516_v39 }
 0x544   :  { %4266 = vmatpush1.bf16.msra.mxu1 %v5514_v41 }
 0x545   :  { %4267 = vmatprep.subr.bf16.mxu1 %v5519_v43 }
 0x548   :  { %4268 = vmatpush1.bf16.msra.mxu1 %v5517_v45 }
 0x549   :  { %4269 = vmatprep.subr.bf16.mxu1 %v5522_v46 }
 0x54c   :  { %4270 = vmatpush1.bf16.msra.mxu1 %v5520_v48 }
 0x54d   :  { %4271 = vmatprep.subr.bf16.mxu1 %v5525_v27 }
 0x550   :  { %4272 = vmatpush1.bf16.msra.mxu1 %v5523_v49 }
 0x551   :  { %4273 = vmatprep.subr.bf16.mxu1 %v5528_v53 }
 0x554   :  { %4274 = vmatpush1.bf16.msra.mxu1 %v5526_v55 }
 0x555   :  { %4275 = vmatprep.subr.bf16.mxu1 %v5531_v34 }
 0x558   :  { %4276 = vmatpush1.bf16.msra.mxu1 %v5529_v56 }
 0x559   :  { %4277 = vmatprep.subr.bf16.mxu1 %v5534_v37 }
 0x55c   :  { %4278 = vmatpush1.bf16.msra.mxu1 %v5532_v40 }
 0x55d   :  { %4279 = vmatprep.subr.bf16.mxu1 %v5537_v44 }
 0x560   :  { %4280 = vmatpush1.bf16.msra.mxu1 %v5535_v57 }
 0x561   :  { %4281 = vmatprep.subr.bf16.mxu1 %v5540_v59 }
 0x564   :  { %4282 = vmatpush1.bf16.msra.mxu1 %v5538_v51 }
 0x565   :  { %4283 = vmatprep.subr.bf16.mxu1 %v5543_v61 }
 0x568   :  { %4284 = vmatpush1.bf16.msra.mxu1 %v5541_v62 }
 0x56b   :  { %4286 = vmatmul.mubr.bf16.vlgmr.msra.gmra.mrb[52].mxu1 %v3814_v0 }
 0x63e   :  { %v4287_v7 = vpop.f32.mrb[52].mxu1 }
 0x63f   :  { %v4984_v17 = vadd.f32 %v4287_v7, %v3885_v8  ;;  %v4289_v16 = vpop.f32.mrb[53].mxu1 }
 0x640   :  { %v4985_v26 = vadd.f32 %v4289_v16, %v3889_v14  ;;  %v4291_v12 = vpop.f32.mrb[54].mxu1 }
 0x641   :  { %v4294_v60 = vmax.f32 %v4984_v17, 0.0  ;;  %v4292_v36 = vpop.f32.mrb[55].mxu1 }
 0x642   :  { %v4295_v18 = vmax.f32 %v4985_v26, 0.0 }
 0x643   :  { %v4296_v5 = vpack.c.bf16 %v4294_v60, %v4294_v60 }
 0x644   :  { %v4297_v50 = vpack.c.bf16 %v4295_v18, %v4295_v18 }
 0x646   :  { %4465 = vmatprep.mubr.bf16.mxu0 %v4297_v50 }
 0x647   :  { %4466 = vmatmul.mubr.bf16.vlgmr.msra.gmra.mrb[100].mxu0 %v4296_v5 }
 0x71a   :  { %v4934_v19 = vpop.f32.mrb[100].mxu0 }
 0x71b   :  { %v4935_v28 = vpop.f32.mrb[101].mxu0 }
 0x71c   :  { %v4936_v31 = vadd.f32 %v4935_v28, %v4934_v19  ;;  %v4937_v47 = vpop.f32.mrb[102].mxu0 }
 0x71d   :  { %v4938_v54 = vpop.f32.mrb[103].mxu0 }
 0x71e   :  { %v4468_v13 = vadd.f32 %v4936_v31, %v4889_v42 }
 0x720   :  { %4473 = vst [vmem:[#allocation12] sm:$0x3] %v4468_v13 }
 0x721   :  { %5681 = shalt.err (!%p5678_p2)
}
 0x722   :  { %s5682_s12 = scalar_lea.hbm %s6488_s13, 32 }
 0x723   :  { %p5683_p3 = scmp.ne.s32.totalorder %s6488_s13, %s5682_s12  ;;  %p5686_p4 = scmp.lt.u32.totalorder %s5682_s12, %s6488_s13 }
 0x725   :  { %p5688_p5 = pnand %p5686_p4, %p5683_p3 }
 0x727   :  { %5691 = shalt.err (!%p5688_p5)
}
 0x728   :  { %4483 = dma.vmem_to_hbm [thread:$0]  %s4481_s4, 32, %s6488_s13, [#allocation5]  }
 0x729   :  { %5698 = dma.done.wait [#allocation5], 32  }
 0x72a   :  { %5699 = vsyncadd [#allocation5], 4294967264 }
 0x72b   :  { %4487 = vsyncpa [#allocation4], 1 }
 0x72c   :  { %4488 = vsyncpa [#allocation7], 1 }
 0x72d   :  { %4489 = vsyncpa [#allocation10], 1 }
 0x72e   :  { %4490 = vsyncpa [#allocation5], 1 }

</bundles_post_ra>
